<compile_context>
chip_gen: v5e
topology: v5e:2x2
jax: 0.10.0
libtpu: 0.0.40
codegen_flags: <defaults>
</compile_context>

<pallas_src>
import functools

import jax
import jax.numpy as jnp
from jax.experimental import pallas as pl
from jax.experimental.pallas import tpu as pltpu

# ---------------------------------------------------------------------------
# Model sizes (small, consistent with the module's args)
# ---------------------------------------------------------------------------
BATCH = 256        # all (threads x agents) rows in one call
TILE_B = 128       # batch rows per grid step (fills the MXU row dimension)
OBS_DIM = 32       # args.actor_input_dim
HIDDEN = 128       # args.hidden_size  (lane-aligned)
N_ACTIONS = 16     # discrete action space size
A_PAD = 128        # action head padded to a full lane register
RNN_LAYERS = 1     # args.rnn_layers
VEC_ROWS = 16      # rows in the small-parameter slab (12 used, padded to 16)
EPS = 1e-5         # LayerNorm eps (PyTorch default)


# ---------------------------------------------------------------------------
# Pallas kernel: whole actor forward hot path, VMEM-resident
# ---------------------------------------------------------------------------
def _r_actor_kernel(obs_ref, masks_ref, h0_ref, avail_ref,
                    wmlp_ref, wgru_ref, vec_ref,
                    logp_ref, hnew_ref):
    f32, bf16 = jnp.float32, jnp.bfloat16
    H = HIDDEN

    def layernorm(x, g, b):
        mu = jnp.mean(x, axis=-1, keepdims=True)
        var = jnp.mean((x - mu) * (x - mu), axis=-1, keepdims=True)  # biased, like torch
        return (x - mu) * jax.lax.rsqrt(var + EPS) * g + b

    # ---- small-parameter slab views (static, sublane/lane aligned) ----------
    ln0_g = vec_ref[0:1, 0:OBS_DIM]
    ln0_b = vec_ref[1:2, 0:OBS_DIM]
    b1    = vec_ref[2:3, 0:H]
    ln1_g = vec_ref[3:4, 0:H]
    ln1_b = vec_ref[4:5, 0:H]
    b2    = vec_ref[5:6, 0:H]
    ln2_g = vec_ref[6:7, 0:H]
    ln2_b = vec_ref[7:8, 0:H]
    b_gru = vec_ref[8:9, :]               # (1, 4H): [b_ir+b_hr | b_iz+b_hz | b_in | b_hn]
    lnr_g = vec_ref[9:10, 0:H]
    lnr_b = vec_ref[10:11, 0:H]
    b_act = vec_ref[11:12, 0:A_PAD]

    # ---- stacked bf16 weight slab ------------------------------------------
    w1    = wmlp_ref[0:OBS_DIM, :]                      # (OBS_DIM, H)
    w2    = wmlp_ref[OBS_DIM:OBS_DIM + H, :]            # (H, H)
    w_act = wmlp_ref[OBS_DIM + H:OBS_DIM + 2 * H, :]    # (H, A_PAD)

    # ---- MLPBase -------------------------------------------------------------
    x = obs_ref[...].astype(f32)
    x = layernorm(x, ln0_g, ln0_b)                                    # feature_norm
    x = jnp.dot(x.astype(bf16), w1, preferred_element_type=f32) + b1
    x = jnp.maximum(x, 0.0)                                            # ReLU
    x = layernorm(x, ln1_g, ln1_b)
    x = jnp.dot(x.astype(bf16), w2, preferred_element_type=f32) + b2
    x = jnp.maximum(x, 0.0)
    x = layernorm(x, ln2_g, ln2_b)

    # ---- RNNLayer: one fused GRU matmul (K = 2H = 256) -----------------------
    h = h0_ref[...].astype(f32) * masks_ref[...]          # masks reinitialise hidden
    xh = jnp.concatenate([x, h], axis=-1).astype(bf16)    # (TB, 2H)
    g = jnp.dot(xh, wgru_ref[...], preferred_element_type=f32) + b_gru   # (TB, 4H)

    r = jax.nn.sigmoid(g[:, 0:H])                 # sigma(W_ir x + W_hr h + b_ir + b_hr)
    z = jax.nn.sigmoid(g[:, H:2 * H])
    n = jnp.tanh(g[:, 2 * H:3 * H] + r * g[:, 3 * H:4 * H])   # tanh(i_n + r*(W_hn h + b_hn))
    h_new = (1.0 - z) * n + z * h
    hnew_ref[...] = h_new

    feat = layernorm(h_new, lnr_g, lnr_b)                 # RNNLayer's LayerNorm

    # ---- ACTLayer: masked logits -> log-softmax -------------------------------
    logits = jnp.dot(feat.astype(bf16), w_act, preferred_element_type=f32) + b_act
    logits = jnp.where(avail_ref[...] > 0.0, logits, -1e10)
    m = jnp.max(logits, axis=-1, keepdims=True)
    lse = jnp.log(jnp.sum(jnp.exp(logits - m), axis=-1, keepdims=True)) + m
    logp_ref[...] = logits - lse


# ---------------------------------------------------------------------------
# Wrapper: pallas_call + tiny glue (padding, action selection, log-prob gather)
# ---------------------------------------------------------------------------
@functools.partial(jax.jit, static_argnames=("deterministic",))
def r_actor_forward(packed, obs, masks, available_actions, rnn_hidden_states,
                    deterministic=True, key=None):
    """Returns (actions, action_log_probs, rnn_hidden_states) like R_Actor.forward."""
    B = obs.shape[0]
    h0 = rnn_hidden_states.reshape(B, HIDDEN).astype(jnp.float32)   # RNN_LAYERS == 1

    if available_actions is None:
        available_actions = jnp.ones((B, N_ACTIONS), jnp.float32)
    avail = jnp.zeros((B, A_PAD), jnp.float32).at[:, :N_ACTIONS].set(
        available_actions.astype(jnp.float32))

    b_pad = ((B + TILE_B - 1) // TILE_B) * TILE_B
    pad = b_pad - B

    def padb(x):
        return jnp.pad(x, ((0, pad), (0, 0))) if pad else x

    obs_p = padb(obs.astype(jnp.float32))
    masks_p = padb(masks.astype(jnp.float32))
    h0_p = padb(h0)
    avail_p = padb(avail)

    grid = (b_pad // TILE_B,)
    logp_pad, h_new_pad = pl.pallas_call(
        _r_actor_kernel,
        out_shape=(
            jax.ShapeDtypeStruct((b_pad, A_PAD), jnp.float32),
            jax.ShapeDtypeStruct((b_pad, HIDDEN), jnp.float32),
        ),
        grid_spec=pltpu.PrefetchScalarGridSpec(
            num_scalar_prefetch=0,
            grid=grid,
            in_specs=[
                pl.BlockSpec((TILE_B, OBS_DIM), lambda i: (i, 0)),      # obs
                pl.BlockSpec((TILE_B, 1), lambda i: (i, 0)),            # masks
                pl.BlockSpec((TILE_B, HIDDEN), lambda i: (i, 0)),       # h0
                pl.BlockSpec((TILE_B, A_PAD), lambda i: (i, 0)),        # avail (padded)
                # weights: constant index_map -> DMA'd once, VMEM-resident
                pl.BlockSpec((OBS_DIM + 2 * HIDDEN, HIDDEN), lambda i: (0, 0)),
                pl.BlockSpec((2 * HIDDEN, 4 * HIDDEN), lambda i: (0, 0)),
                pl.BlockSpec((VEC_ROWS, 4 * HIDDEN), lambda i: (0, 0)),
            ],
            out_specs=[
                pl.BlockSpec((TILE_B, A_PAD), lambda i: (i, 0)),        # log-probs
                pl.BlockSpec((TILE_B, HIDDEN), lambda i: (i, 0)),       # new hidden
            ],
        ),
        input_output_aliases={2: 1},   # h0 buffer reused for h_new
        compiler_params=pltpu.CompilerParams(
            dimension_semantics=("parallel",)),
    )(obs_p, masks_p, h0_p, avail_p,
      packed["w_mlp"], packed["w_gru"], packed["vecs"])

    log_probs = logp_pad[:B, :N_ACTIONS]
    h_new = h_new_pad[:B]

    if deterministic:
        actions = jnp.argmax(log_probs, axis=-1, keepdims=True).astype(jnp.int32)
    else:
        # TODO(synk): torch samples inside the Categorical distribution; here we sample
        # from the kernel-produced log-probs with jax.random (glue, not hot path).
        actions = jax.random.categorical(key, log_probs, axis=-1)[:, None].astype(jnp.int32)

    action_log_probs = jnp.take_along_axis(log_probs, actions, axis=-1)      # (B, 1)
    return actions, action_log_probs, h_new.reshape(B, RNN_LAYERS, HIDDEN)


# ---------------------------------------------------------------------------
# Parameter init (module shapes) + host-side packing into the kernel slabs
# ---------------------------------------------------------------------------
def init_params(key):
    s = 0.1
    H = HIDDEN

    def rnd(i, shape):
        return s * jax.random.normal(jax.random.fold_in(key, i), shape, jnp.float32)

    def ln(i, dim):
        return 1.0 + rnd(i, (dim,)), rnd(i + 100, (dim,))

    ln0_g, ln0_b = ln(0, OBS_DIM)
    ln1_g, ln1_b = ln(1, H)
    ln2_g, ln2_b = ln(2, H)
    lnr_g, lnr_b = ln(3, H)
    return dict(
        ln0_g=ln0_g, ln0_b=ln0_b,
        w1=rnd(10, (OBS_DIM, H)), b1=rnd(11, (H,)),
        ln1_g=ln1_g, ln1_b=ln1_b,
        w2=rnd(12, (H, H)), b2=rnd(13, (H,)),
        ln2_g=ln2_g, ln2_b=ln2_b,
        # GRU packed (in, 3H), gate order (r, z, n) like PyTorch
        w_ih=rnd(14, (H, 3 * H)), b_ih=rnd(15, (3 * H,)),
        w_hh=rnd(16, (H, 3 * H)), b_hh=rnd(17, (3 * H,)),
        lnr_g=lnr_g, lnr_b=lnr_b,
        w_act=rnd(18, (H, N_ACTIONS)), b_act=rnd(19, (N_ACTIONS,)),
    )


def pack_params(p):
    """Pack module parameters into the 3 kernel inputs (done once, host side)."""
    H, A, W = HIDDEN, A_PAD, 4 * HIDDEN

    # bf16 weight slab: [W1 ; W2 ; W_act (padded to A_PAD cols)] stacked on rows.
    w_act_p = jnp.zeros((H, A), jnp.float32).at[:, :N_ACTIONS].set(p["w_act"])
    w_mlp = jnp.concatenate([p["w1"], p["w2"], w_act_p], axis=0).astype(jnp.bfloat16)

    # Fused GRU weight: [x | h] (2H) -> [ r_sum | z_sum | i_n | h_n ] (4H).
    w_ir, w_iz, w_in = p["w_ih"][:, 0:H], p["w_ih"][:, H:2 * H], p["w_ih"][:, 2 * H:3 * H]
    w_hr, w_hz, w_hn = p["w_hh"][:, 0:H], p["w_hh"][:, H:2 * H], p["w_hh"][:, 2 * H:3 * H]
    zero = jnp.zeros((H, H), jnp.float32)
    w_gru = jnp.concatenate([
        jnp.concatenate([w_ir, w_iz, w_in, zero], axis=1),   # x rows
        jnp.concatenate([w_hr, w_hz, zero, w_hn], axis=1),   # h rows
    ], axis=0).astype(jnp.bfloat16)                          # (2H, 4H)

    b_ih, b_hh = p["b_ih"], p["b_hh"]
    b_gru = jnp.concatenate([
        b_ih[0:H] + b_hh[0:H],          # r : biases may be summed
        b_ih[H:2 * H] + b_hh[H:2 * H],  # z : biases may be summed
        b_ih[2 * H:3 * H],              # i_n (input-side n bias)
        b_hh[2 * H:3 * H],              # h_n (hidden-side n bias, scaled by r in-kernel)
    ])

    # f32 vector slab: one (1, 4H) row per small parameter.
    def row(v):
        v = jnp.asarray(v, jnp.float32).reshape(-1)
        return jnp.zeros((W,), jnp.float32).at[:v.shape[0]].set(v)

    b_act_p = jnp.zeros((A,), jnp.float32).at[:N_ACTIONS].set(p["b_act"])
    rows = [p["ln0_g"], p["ln0_b"],
            p["b1"], p["ln1_g"], p["ln1_b"],
            p["b2"], p["ln2_g"], p["ln2_b"],
            b_gru,
            p["lnr_g"], p["lnr_b"],
            b_act_p]
    vecs = jnp.stack([row(v) for v in rows], axis=0)
    vecs = jnp.concatenate(
        [vecs, jnp.zeros((VEC_ROWS - vecs.shape[0], W), jnp.float32)], axis=0)
    return {"w_mlp": w_mlp, "w_gru": w_gru, "vecs": vecs}


# ---------------------------------------------------------------------------
# Pure-JAX f32 reference (PyTorch semantics) for a loose numerical check
# ---------------------------------------------------------------------------
def r_actor_reference(p, obs, masks, avail, rnn_hidden_states):
    H = HIDDEN

    def ln(x, g, b):
        mu = x.mean(-1, keepdims=True)
        var = ((x - mu) ** 2).mean(-1, keepdims=True)
        return (x - mu) / jnp.sqrt(var + EPS) * g + b

    x = ln(obs, p["ln0_g"], p["ln0_b"])
    x = jnp.maximum(x @ p["w1"] + p["b1"], 0.0)
    x = ln(x, p["ln1_g"], p["ln1_b"])
    x = jnp.maximum(x @ p["w2"] + p["b2"], 0.0)
    x = ln(x, p["ln2_g"], p["ln2_b"])

    h = rnn_hidden_states.reshape(-1, H) * masks
    gi = x @ p["w_ih"] + p["b_ih"]
    gh = h @ p["w_hh"] + p["b_hh"]
    r = jax.nn.sigmoid(gi[:, :H] + gh[:, :H])
    z = jax.nn.sigmoid(gi[:, H:2 * H] + gh[:, H:2 * H])
    n = jnp.tanh(gi[:, 2 * H:] + r * gh[:, 2 * H:])
    h_new = (1.0 - z) * n + z * h

    feat = ln(h_new, p["lnr_g"], p["lnr_b"])
    logits = feat @ p["w_act"] + p["b_act"]
    logits = jnp.where(avail > 0, logits, -1e10)
    logp = jax.nn.log_softmax(logits, axis=-1)
    return logp, h_new


if __name__ == "__main__":
    key = jax.random.PRNGKey(0)
    k_obs = jax.random.fold_in(key, 1000)
    k_h = jax.random.fold_in(key, 1001)
    k_avail = jax.random.fold_in(key, 1002)
    k_mask = jax.random.fold_in(key, 1003)

    params = init_params(key)
    packed = pack_params(params)

    obs = jax.random.normal(k_obs, (BATCH, OBS_DIM), jnp.float32)
    masks = (jax.random.uniform(k_mask, (BATCH, 1)) > 0.1).astype(jnp.float32)
    rnn_hidden_states = jax.random.normal(k_h, (BATCH, RNN_LAYERS, HIDDEN), jnp.float32)
    avail = (jax.random.uniform(k_avail, (BATCH, N_ACTIONS)) > 0.3).astype(jnp.float32)
    avail = avail.at[:, 0].set(1.0)   # keep at least one action available per row

    actions, action_log_probs, new_hidden = r_actor_forward(
        packed, obs, masks, avail, rnn_hidden_states, deterministic=True)
    jax.block_until_ready((actions, action_log_probs, new_hidden))

    # shape / sanity checks
    assert actions.shape == (BATCH, 1)
    assert action_log_probs.shape == (BATCH, 1)
    assert new_hidden.shape == (BATCH, RNN_LAYERS, HIDDEN)
    assert bool(jnp.all(jnp.isfinite(action_log_probs)))
    assert bool(jnp.all(jnp.take_along_axis(avail, actions, axis=-1) > 0))

    # numerical check vs f32 reference (kernel uses bf16 MXU inputs -> loose tolerance)
    ref_logp, ref_hnew = r_actor_reference(params, obs, masks, avail, rnn_hidden_states)
    ref_alp = jnp.take_along_axis(ref_logp, actions, axis=-1)
    assert float(jnp.max(jnp.abs(action_log_probs - ref_alp))) < 0.15
    assert float(jnp.max(jnp.abs(new_hidden.reshape(BATCH, HIDDEN) - ref_hnew))) < 0.1

    print("KERNEL_OK")
</pallas_src>

<mosaic_0001>
module attributes {stable_mosaic.version = 11 : i64} {
  func.func @_r_actor_kernel(%arg0: i32, %arg1: memref<128x32xf32, #tpu.memory_space<vmem>>, %arg2: memref<128x1xf32, #tpu.memory_space<vmem>>, %arg3: memref<128x128xf32, #tpu.memory_space<vmem>>, %arg4: memref<128x128xf32, #tpu.memory_space<vmem>>, %arg5: memref<288x128xbf16, #tpu.memory_space<vmem>>, %arg6: memref<256x512xbf16, #tpu.memory_space<vmem>>, %arg7: memref<16x512xf32, #tpu.memory_space<vmem>>, %arg8: memref<128x128xf32, #tpu.memory_space<vmem>>, %arg9: memref<128x128xf32, #tpu.memory_space<vmem>>) attributes {dimension_semantics = [#tpu.dimension_semantics<parallel>], iteration_bounds = array<i64: 2>, scalar_prefetch = 0 : i64, scratch_operands = 0 : i64, tpu.core_type = #tpu.core_type<tc>, window_params = [{transform_indices = @transform_0, window_bounds = array<i64: 128, 32>}, {transform_indices = @transform_1, window_bounds = array<i64: 128, 1>}, {transform_indices = @transform_2, window_bounds = array<i64: 128, 128>}, {transform_indices = @transform_3, window_bounds = array<i64: 128, 128>}, {pipeline_mode = #tpu.pipeline_mode<synchronous>, transform_indices = @transform_4, window_bounds = array<i64: 288, 128>}, {pipeline_mode = #tpu.pipeline_mode<synchronous>, transform_indices = @transform_5, window_bounds = array<i64: 256, 512>}, {pipeline_mode = #tpu.pipeline_mode<synchronous>, transform_indices = @transform_6, window_bounds = array<i64: 16, 512>}, {transform_indices = @transform_7, window_bounds = array<i64: 128, 128>}, {transform_indices = @transform_8, window_bounds = array<i64: 128, 128>}]} {
    %c0 = arith.constant 0 : index
    %c0_0 = arith.constant 0 : index
    %0 = vector.load %arg7[%c0, %c0_0] : memref<16x512xf32, #tpu.memory_space<vmem>>, vector<1x32xf32>
    %c1 = arith.constant 1 : index
    %c0_1 = arith.constant 0 : index
    %1 = vector.load %arg7[%c1, %c0_1] : memref<16x512xf32, #tpu.memory_space<vmem>>, vector<1x32xf32>
    %c2 = arith.constant 2 : index
    %c0_2 = arith.constant 0 : index
    %2 = vector.load %arg7[%c2, %c0_2] : memref<16x512xf32, #tpu.memory_space<vmem>>, vector<1x128xf32>
    %c3 = arith.constant 3 : index
    %c0_3 = arith.constant 0 : index
    %3 = vector.load %arg7[%c3, %c0_3] : memref<16x512xf32, #tpu.memory_space<vmem>>, vector<1x128xf32>
    %c4 = arith.constant 4 : index
    %c0_4 = arith.constant 0 : index
    %4 = vector.load %arg7[%c4, %c0_4] : memref<16x512xf32, #tpu.memory_space<vmem>>, vector<1x128xf32>
    %c5 = arith.constant 5 : index
    %c0_5 = arith.constant 0 : index
    %5 = vector.load %arg7[%c5, %c0_5] : memref<16x512xf32, #tpu.memory_space<vmem>>, vector<1x128xf32>
    %c6 = arith.constant 6 : index
    %c0_6 = arith.constant 0 : index
    %6 = vector.load %arg7[%c6, %c0_6] : memref<16x512xf32, #tpu.memory_space<vmem>>, vector<1x128xf32>
    %c7 = arith.constant 7 : index
    %c0_7 = arith.constant 0 : index
    %7 = vector.load %arg7[%c7, %c0_7] : memref<16x512xf32, #tpu.memory_space<vmem>>, vector<1x128xf32>
    %c8 = arith.constant 8 : index
    %c0_8 = arith.constant 0 : index
    %8 = vector.load %arg7[%c8, %c0_8] : memref<16x512xf32, #tpu.memory_space<vmem>>, vector<1x512xf32>
    %c9 = arith.constant 9 : index
    %c0_9 = arith.constant 0 : index
    %9 = vector.load %arg7[%c9, %c0_9] : memref<16x512xf32, #tpu.memory_space<vmem>>, vector<1x128xf32>
    %c10 = arith.constant 10 : index
    %c0_10 = arith.constant 0 : index
    %10 = vector.load %arg7[%c10, %c0_10] : memref<16x512xf32, #tpu.memory_space<vmem>>, vector<1x128xf32>
    %c11 = arith.constant 11 : index
    %c0_11 = arith.constant 0 : index
    %11 = vector.load %arg7[%c11, %c0_11] : memref<16x512xf32, #tpu.memory_space<vmem>>, vector<1x128xf32>
    %c0_12 = arith.constant 0 : index
    %c0_13 = arith.constant 0 : index
    %12 = vector.load %arg5[%c0_12, %c0_13] : memref<288x128xbf16, #tpu.memory_space<vmem>>, vector<32x128xbf16>
    %c32 = arith.constant 32 : index
    %c0_14 = arith.constant 0 : index
    %13 = vector.load %arg5[%c32, %c0_14] : memref<288x128xbf16, #tpu.memory_space<vmem>>, vector<128x128xbf16>
    %c160 = arith.constant 160 : index
    %c0_15 = arith.constant 0 : index
    %14 = vector.load %arg5[%c160, %c0_15] : memref<288x128xbf16, #tpu.memory_space<vmem>>, vector<128x128xbf16>
    %c0_16 = arith.constant 0 : index
    %c0_17 = arith.constant 0 : index
    %15 = vector.load %arg1[%c0_16, %c0_17] : memref<128x32xf32, #tpu.memory_space<vmem>>, vector<128x32xf32>
    %cst = arith.constant dense<0.000000e+00> : vector<128xf32>
    %16 = vector.multi_reduction <add>, %15, %cst [1] : vector<128x32xf32> to vector<128xf32>
    %17 = vector.shape_cast %16 : vector<128xf32> to vector<128x1xf32>
    %cst_18 = arith.constant 3.200000e+01 : f32
    %18 = vector.broadcast %cst_18 : f32 to vector<128x1xf32>
    %19 = arith.divf %17, %18 : vector<128x1xf32>
    %20 = vector.broadcast %19 : vector<128x1xf32> to vector<128x32xf32>
    %21 = arith.subf %15, %20 : vector<128x32xf32>
    %22 = vector.broadcast %19 : vector<128x1xf32> to vector<128x32xf32>
    %23 = arith.subf %15, %22 : vector<128x32xf32>
    %24 = arith.mulf %21, %23 : vector<128x32xf32>
    %cst_19 = arith.constant dense<0.000000e+00> : vector<128xf32>
    %25 = vector.multi_reduction <add>, %24, %cst_19 [1] : vector<128x32xf32> to vector<128xf32>
    %26 = vector.shape_cast %25 : vector<128xf32> to vector<128x1xf32>
    %cst_20 = arith.constant 3.200000e+01 : f32
    %27 = vector.broadcast %cst_20 : f32 to vector<128x1xf32>
    %28 = arith.divf %26, %27 : vector<128x1xf32>
    %29 = vector.broadcast %19 : vector<128x1xf32> to vector<128x32xf32>
    %30 = arith.subf %15, %29 : vector<128x32xf32>
    %cst_21 = arith.constant 9.99999974E-6 : f32
    %31 = vector.broadcast %cst_21 : f32 to vector<128x1xf32>
    %32 = arith.addf %28, %31 : vector<128x1xf32>
    %33 = math.rsqrt %32 : vector<128x1xf32>
    %34 = vector.broadcast %33 : vector<128x1xf32> to vector<128x32xf32>
    %35 = arith.mulf %30, %34 : vector<128x32xf32>
    %36 = vector.broadcast %0 : vector<1x32xf32> to vector<128x32xf32>
    %37 = arith.mulf %35, %36 : vector<128x32xf32>
    %38 = vector.broadcast %1 : vector<1x32xf32> to vector<128x32xf32>
    %39 = arith.addf %37, %38 : vector<128x32xf32>
    %40 = arith.truncf %39 : vector<128x32xf32> to vector<128x32xbf16>
    %cst_22 = arith.constant dense<0.000000e+00> : vector<128x128xf32>
    %41 = tpu.matmul %40, %12, %cst_22 {dimension_numbers = #tpu.dot_dimension_numbers<[1], [0], [0], [1], [0, 0, 1, 1], [], []>} : vector<128x32xbf16>, vector<32x128xbf16>, vector<128x128xf32> -> vector<128x128xf32>
    %42 = vector.broadcast %2 : vector<1x128xf32> to vector<128x128xf32>
    %43 = arith.addf %41, %42 : vector<128x128xf32>
    %cst_23 = arith.constant 0.000000e+00 : f32
    %44 = vector.broadcast %cst_23 : f32 to vector<128x128xf32>
    %45 = arith.maximumf %43, %44 : vector<128x128xf32>
    %cst_24 = arith.constant dense<0.000000e+00> : vector<128xf32>
    %46 = vector.multi_reduction <add>, %45, %cst_24 [1] : vector<128x128xf32> to vector<128xf32>
    %47 = vector.shape_cast %46 : vector<128xf32> to vector<128x1xf32>
    %cst_25 = arith.constant 1.280000e+02 : f32
    %48 = vector.broadcast %cst_25 : f32 to vector<128x1xf32>
    %49 = arith.divf %47, %48 : vector<128x1xf32>
    %50 = vector.broadcast %49 : vector<128x1xf32> to vector<128x128xf32>
    %51 = arith.subf %45, %50 : vector<128x128xf32>
    %52 = vector.broadcast %49 : vector<128x1xf32> to vector<128x128xf32>
    %53 = arith.subf %45, %52 : vector<128x128xf32>
    %54 = arith.mulf %51, %53 : vector<128x128xf32>
    %cst_26 = arith.constant dense<0.000000e+00> : vector<128xf32>
    %55 = vector.multi_reduction <add>, %54, %cst_26 [1] : vector<128x128xf32> to vector<128xf32>
    %56 = vector.shape_cast %55 : vector<128xf32> to vector<128x1xf32>
    %cst_27 = arith.constant 1.280000e+02 : f32
    %57 = vector.broadcast %cst_27 : f32 to vector<128x1xf32>
    %58 = arith.divf %56, %57 : vector<128x1xf32>
    %59 = vector.broadcast %49 : vector<128x1xf32> to vector<128x128xf32>
    %60 = arith.subf %45, %59 : vector<128x128xf32>
    %cst_28 = arith.constant 9.99999974E-6 : f32
    %61 = vector.broadcast %cst_28 : f32 to vector<128x1xf32>
    %62 = arith.addf %58, %61 : vector<128x1xf32>
    %63 = math.rsqrt %62 : vector<128x1xf32>
    %64 = vector.broadcast %63 : vector<128x1xf32> to vector<128x128xf32>
    %65 = arith.mulf %60, %64 : vector<128x128xf32>
    %66 = vector.broadcast %3 : vector<1x128xf32> to vector<128x128xf32>
    %67 = arith.mulf %65, %66 : vector<128x128xf32>
    %68 = vector.broadcast %4 : vector<1x128xf32> to vector<128x128xf32>
    %69 = arith.addf %67, %68 : vector<128x128xf32>
    %70 = arith.truncf %69 : vector<128x128xf32> to vector<128x128xbf16>
    %cst_29 = arith.constant dense<0.000000e+00> : vector<128x128xf32>
    %71 = tpu.matmul %70, %13, %cst_29 {dimension_numbers = #tpu.dot_dimension_numbers<[1], [0], [0], [1], [0, 0, 1, 1], [], []>} : vector<128x128xbf16>, vector<128x128xbf16>, vector<128x128xf32> -> vector<128x128xf32>
    %72 = vector.broadcast %5 : vector<1x128xf32> to vector<128x128xf32>
    %73 = arith.addf %71, %72 : vector<128x128xf32>
    %cst_30 = arith.constant 0.000000e+00 : f32
    %74 = vector.broadcast %cst_30 : f32 to vector<128x128xf32>
    %75 = arith.maximumf %73, %74 : vector<128x128xf32>
    %cst_31 = arith.constant dense<0.000000e+00> : vector<128xf32>
    %76 = vector.multi_reduction <add>, %75, %cst_31 [1] : vector<128x128xf32> to vector<128xf32>
    %77 = vector.shape_cast %76 : vector<128xf32> to vector<128x1xf32>
    %cst_32 = arith.constant 1.280000e+02 : f32
    %78 = vector.broadcast %cst_32 : f32 to vector<128x1xf32>
    %79 = arith.divf %77, %78 : vector<128x1xf32>
    %80 = vector.broadcast %79 : vector<128x1xf32> to vector<128x128xf32>
    %81 = arith.subf %75, %80 : vector<128x128xf32>
    %82 = vector.broadcast %79 : vector<128x1xf32> to vector<128x128xf32>
    %83 = arith.subf %75, %82 : vector<128x128xf32>
    %84 = arith.mulf %81, %83 : vector<128x128xf32>
    %cst_33 = arith.constant dense<0.000000e+00> : vector<128xf32>
    %85 = vector.multi_reduction <add>, %84, %cst_33 [1] : vector<128x128xf32> to vector<128xf32>
    %86 = vector.shape_cast %85 : vector<128xf32> to vector<128x1xf32>
    %cst_34 = arith.constant 1.280000e+02 : f32
    %87 = vector.broadcast %cst_34 : f32 to vector<128x1xf32>
    %88 = arith.divf %86, %87 : vector<128x1xf32>
    %89 = vector.broadcast %79 : vector<128x1xf32> to vector<128x128xf32>
    %90 = arith.subf %75, %89 : vector<128x128xf32>
    %cst_35 = arith.constant 9.99999974E-6 : f32
    %91 = vector.broadcast %cst_35 : f32 to vector<128x1xf32>
    %92 = arith.addf %88, %91 : vector<128x1xf32>
    %93 = math.rsqrt %92 : vector<128x1xf32>
    %94 = vector.broadcast %93 : vector<128x1xf32> to vector<128x128xf32>
    %95 = arith.mulf %90, %94 : vector<128x128xf32>
    %96 = vector.broadcast %6 : vector<1x128xf32> to vector<128x128xf32>
    %97 = arith.mulf %95, %96 : vector<128x128xf32>
    %98 = vector.broadcast %7 : vector<1x128xf32> to vector<128x128xf32>
    %99 = arith.addf %97, %98 : vector<128x128xf32>
    %c0_36 = arith.constant 0 : index
    %c0_37 = arith.constant 0 : index
    %100 = vector.load %arg3[%c0_36, %c0_37] : memref<128x128xf32, #tpu.memory_space<vmem>>, vector<128x128xf32>
    %c0_38 = arith.constant 0 : index
    %c0_39 = arith.constant 0 : index
    %101 = vector.load %arg2[%c0_38, %c0_39] : memref<128x1xf32, #tpu.memory_space<vmem>>, vector<128x1xf32>
    %102 = vector.broadcast %101 : vector<128x1xf32> to vector<128x128xf32>
    %103 = arith.mulf %100, %102 : vector<128x128xf32>
    %104 = tpu.concatenate %99, %103 in 1 : vector<128x128xf32>, vector<128x128xf32> -> vector<128x256xf32>
    %105 = arith.truncf %104 : vector<128x256xf32> to vector<128x256xbf16>
    %c0_40 = arith.constant 0 : index
    %c0_41 = arith.constant 0 : index
    %106 = vector.load %arg6[%c0_40, %c0_41] : memref<256x512xbf16, #tpu.memory_space<vmem>>, vector<256x512xbf16>
    %cst_42 = arith.constant dense<0.000000e+00> : vector<128x512xf32>
    %107 = tpu.matmul %105, %106, %cst_42 {dimension_numbers = #tpu.dot_dimension_numbers<[1], [0], [0], [1], [0, 0, 1, 1], [], []>} : vector<128x256xbf16>, vector<256x512xbf16>, vector<128x512xf32> -> vector<128x512xf32>
    %108 = vector.broadcast %8 : vector<1x512xf32> to vector<128x512xf32>
    %109 = arith.addf %107, %108 : vector<128x512xf32>
    %110 = vector.extract_strided_slice %109 {offsets = [0, 0], sizes = [128, 128], strides = [1, 1]} : vector<128x512xf32> to vector<128x128xf32>
    %111 = arith.negf %110 : vector<128x128xf32>
    %112 = math.exp %111 : vector<128x128xf32>
    %cst_43 = arith.constant 1.000000e+00 : f32
    %113 = vector.broadcast %cst_43 : f32 to vector<128x128xf32>
    %114 = arith.addf %113, %112 : vector<128x128xf32>
    %115 = arith.divf %113, %114 : vector<128x128xf32>
    %116 = vector.extract_strided_slice %109 {offsets = [0, 128], sizes = [128, 128], strides = [1, 1]} : vector<128x512xf32> to vector<128x128xf32>
    %117 = arith.negf %116 : vector<128x128xf32>
    %118 = math.exp %117 : vector<128x128xf32>
    %cst_44 = arith.constant 1.000000e+00 : f32
    %119 = vector.broadcast %cst_44 : f32 to vector<128x128xf32>
    %120 = arith.addf %119, %118 : vector<128x128xf32>
    %121 = arith.divf %119, %120 : vector<128x128xf32>
    %122 = vector.extract_strided_slice %109 {offsets = [0, 256], sizes = [128, 128], strides = [1, 1]} : vector<128x512xf32> to vector<128x128xf32>
    %123 = vector.extract_strided_slice %109 {offsets = [0, 384], sizes = [128, 128], strides = [1, 1]} : vector<128x512xf32> to vector<128x128xf32>
    %124 = arith.mulf %115, %123 : vector<128x128xf32>
    %125 = arith.addf %122, %124 : vector<128x128xf32>
    %126 = math.tanh %125 : vector<128x128xf32>
    %cst_45 = arith.constant 1.000000e+00 : f32
    %127 = vector.broadcast %cst_45 : f32 to vector<128x128xf32>
    %128 = arith.subf %127, %121 : vector<128x128xf32>
    %129 = arith.mulf %128, %126 : vector<128x128xf32>
    %130 = arith.mulf %121, %103 : vector<128x128xf32>
    %131 = arith.addf %129, %130 : vector<128x128xf32>
    %c0_46 = arith.constant 0 : index
    %c0_47 = arith.constant 0 : index
    %132 = vector.load %arg9[%c0_46, %c0_47] : memref<128x128xf32, #tpu.memory_space<vmem>>, vector<128x128xf32>
    tpu.vector_store %arg9[%c0_46, %c0_47], %131 {strides = array<i32>} : memref<128x128xf32, #tpu.memory_space<vmem>>, vector<128x128xf32>,
    %cst_48 = arith.constant dense<0.000000e+00> : vector<128xf32>
    %133 = vector.multi_reduction <add>, %131, %cst_48 [1] : vector<128x128xf32> to vector<128xf32>
    %134 = vector.shape_cast %133 : vector<128xf32> to vector<128x1xf32>
    %cst_49 = arith.constant 1.280000e+02 : f32
    %135 = vector.broadcast %cst_49 : f32 to vector<128x1xf32>
    %136 = arith.divf %134, %135 : vector<128x1xf32>
    %137 = vector.broadcast %136 : vector<128x1xf32> to vector<128x128xf32>
    %138 = arith.subf %131, %137 : vector<128x128xf32>
    %139 = vector.broadcast %136 : vector<128x1xf32> to vector<128x128xf32>
    %140 = arith.subf %131, %139 : vector<128x128xf32>
    %141 = arith.mulf %138, %140 : vector<128x128xf32>
    %cst_50 = arith.constant dense<0.000000e+00> : vector<128xf32>
    %142 = vector.multi_reduction <add>, %141, %cst_50 [1] : vector<128x128xf32> to vector<128xf32>
    %143 = vector.shape_cast %142 : vector<128xf32> to vector<128x1xf32>
    %cst_51 = arith.constant 1.280000e+02 : f32
    %144 = vector.broadcast %cst_51 : f32 to vector<128x1xf32>
    %145 = arith.divf %143, %144 : vector<128x1xf32>
    %146 = vector.broadcast %136 : vector<128x1xf32> to vector<128x128xf32>
    %147 = arith.subf %131, %146 : vector<128x128xf32>
    %cst_52 = arith.constant 9.99999974E-6 : f32
    %148 = vector.broadcast %cst_52 : f32 to vector<128x1xf32>
    %149 = arith.addf %145, %148 : vector<128x1xf32>
    %150 = math.rsqrt %149 : vector<128x1xf32>
    %151 = vector.broadcast %150 : vector<128x1xf32> to vector<128x128xf32>
    %152 = arith.mulf %147, %151 : vector<128x128xf32>
    %153 = vector.broadcast %9 : vector<1x128xf32> to vector<128x128xf32>
    %154 = arith.mulf %152, %153 : vector<128x128xf32>
    %155 = vector.broadcast %10 : vector<1x128xf32> to vector<128x128xf32>
    %156 = arith.addf %154, %155 : vector<128x128xf32>
    %157 = arith.truncf %156 : vector<128x128xf32> to vector<128x128xbf16>
    %cst_53 = arith.constant dense<0.000000e+00> : vector<128x128xf32>
    %158 = tpu.matmul %157, %14, %cst_53 {dimension_numbers = #tpu.dot_dimension_numbers<[1], [0], [0], [1], [0, 0, 1, 1], [], []>} : vector<128x128xbf16>, vector<128x128xbf16>, vector<128x128xf32> -> vector<128x128xf32>
    %159 = vector.broadcast %11 : vector<1x128xf32> to vector<128x128xf32>
    %160 = arith.addf %158, %159 : vector<128x128xf32>
    %c0_54 = arith.constant 0 : index
    %c0_55 = arith.constant 0 : index
    %161 = vector.load %arg4[%c0_54, %c0_55] : memref<128x128xf32, #tpu.memory_space<vmem>>, vector<128x128xf32>
    %cst_56 = arith.constant 0.000000e+00 : f32
    %162 = vector.broadcast %cst_56 : f32 to vector<128x128xf32>
    %163 = arith.cmpf ogt, %161, %162 : vector<128x128xf32>
    %cst_57 = arith.constant -1.000000e+10 : f32
    %164 = vector.broadcast %cst_57 : f32 to vector<128x128xf32>
    %165 = arith.select %163, %160, %164 : vector<128x128xi1>, vector<128x128xf32>
    %cst_58 = arith.constant dense<0xFF800000> : vector<128xf32>
    %166 = vector.multi_reduction <maximumf>, %165, %cst_58 [1] : vector<128x128xf32> to vector<128xf32>
    %167 = vector.shape_cast %166 : vector<128xf32> to vector<128x1xf32>
    %168 = vector.broadcast %167 : vector<128x1xf32> to vector<128x128xf32>
    %169 = arith.subf %165, %168 : vector<128x128xf32>
    %170 = math.exp %169 : vector<128x128xf32>
    %cst_59 = arith.constant dense<0.000000e+00> : vector<128xf32>
    %171 = vector.multi_reduction <add>, %170, %cst_59 [1] : vector<128x128xf32> to vector<128xf32>
    %172 = vector.shape_cast %171 : vector<128xf32> to vector<128x1xf32>
    %173 = math.log %172 : vector<128x1xf32>
    %174 = arith.addf %173, %167 : vector<128x1xf32>
    %175 = vector.broadcast %174 : vector<128x1xf32> to vector<128x128xf32>
    %176 = arith.subf %165, %175 : vector<128x128xf32>
    %c0_60 = arith.constant 0 : index
    %c0_61 = arith.constant 0 : index
    %177 = vector.load %arg8[%c0_60, %c0_61] : memref<128x128xf32, #tpu.memory_space<vmem>>, vector<128x128xf32>
    tpu.vector_store %arg8[%c0_60, %c0_61], %176 {strides = array<i32>} : memref<128x128xf32, #tpu.memory_space<vmem>>, vector<128x128xf32>,
    return
  }
  func.func @transform_0(%arg0: i32) -> (i32, i32) {
    %c0_i32 = arith.constant 0 : i32
    %c0_i32_0 = arith.constant 0 : i32
    return %arg0, %c0_i32 : i32, i32
  }
  func.func @transform_1(%arg0: i32) -> (i32, i32) {
    %c0_i32 = arith.constant 0 : i32
    %c0_i32_0 = arith.constant 0 : i32
    return %arg0, %c0_i32 : i32, i32
  }
  func.func @transform_2(%arg0: i32) -> (i32, i32) {
    %c0_i32 = arith.constant 0 : i32
    %c0_i32_0 = arith.constant 0 : i32
    return %arg0, %c0_i32 : i32, i32
  }
  func.func @transform_3(%arg0: i32) -> (i32, i32) {
    %c0_i32 = arith.constant 0 : i32
    %c0_i32_0 = arith.constant 0 : i32
    return %arg0, %c0_i32 : i32, i32
  }
  func.func @transform_4(%arg0: i32) -> (i32, i32) {
    %c0_i32 = arith.constant 0 : i32
    %c0_i32_0 = arith.constant 0 : i32
    %c0_i32_1 = arith.constant 0 : i32
    return %c0_i32, %c0_i32_0 : i32, i32
  }
  func.func @transform_5(%arg0: i32) -> (i32, i32) {
    %c0_i32 = arith.constant 0 : i32
    %c0_i32_0 = arith.constant 0 : i32
    %c0_i32_1 = arith.constant 0 : i32
    return %c0_i32, %c0_i32_0 : i32, i32
  }
  func.func @transform_6(%arg0: i32) -> (i32, i32) {
    %c0_i32 = arith.constant 0 : i32
    %c0_i32_0 = arith.constant 0 : i32
    %c0_i32_1 = arith.constant 0 : i32
    return %c0_i32, %c0_i32_0 : i32, i32
  }
  func.func @transform_7(%arg0: i32) -> (i32, i32) {
    %c0_i32 = arith.constant 0 : i32
    %c0_i32_0 = arith.constant 0 : i32
    return %arg0, %c0_i32 : i32, i32
  }
  func.func @transform_8(%arg0: i32) -> (i32, i32) {
    %c0_i32 = arith.constant 0 : i32
    %c0_i32_0 = arith.constant 0 : i32
    return %arg0, %c0_i32 : i32, i32
  }
}

</mosaic_0001>

<bundles_post_ra>
// kernel: r_actor_forward.1
= control target key start
LH: loop header
LB: loop body
LE: loop exit
PB: predicated region body
PF: predicated region fallthrough
CT: control target
= control target key end

     0   :  { %s5192_s27 = smov 0   ;;  %s8750_s0 = inlined_call_operand.vmem [shape: f32[256,32], index: 0, kind: input, shape index: {}]   ;;  %s8751_s1 = inlined_call_operand.vmem [shape: f32[256,1], index: 1, kind: input, shape index: {}]   ;;  %s8752_s2 = inlined_call_operand.vmem [shape: f32[256,128], index: 2, kind: input, shape index: {}, may-alias: {2,8}]   ;;  %s8753_s3 = inlined_call_operand.vmem [shape: f32[256,128], index: 3, kind: input, shape index: {}]   ;;  %s8754_s4 = inlined_call_operand.vmem [shape: bf16[288,128], index: 4, kind: input, shape index: {}]   ;;  %s8755_s5 = inlined_call_operand.vmem [shape: bf16[256,512], index: 5, kind: input, shape index: {}]   ;;  %s8756_s6 = inlined_call_operand.vmem [shape: f32[16,512], index: 6, kind: input, shape index: {}]   ;;  %s8757_s7 = inlined_call_operand.vmem [shape: f32[256,128], index: 7, kind: output, shape index: {0}]   ;;  %s8758_s8 = inlined_call_operand.vmem [shape: f32[256,128], index: 8, kind: output, shape index: {1}, may-alias: {2,8}]  }
   0x1 LB: > { %s4276_s28 = sadd.s32 4294967295, %s5142_s27   ;;  %p4280_p0 = scmp.ge.s32.totalorder %s5142_s27, 1  ;;  %s5142_s27 = sphi %s5192_s27, %s19_s27  }
   0x2   : > { %p299_p1 = scmp.lt.s32.totalorder %s5142_s27, 3 }
   0x4   : > { %p300_p2 = pnand %p4280_p0, %p299_p1 }
   0x6   : > { %303 = sbr.rel (%p300_p2) target bundleno = 2565 (0xa05), region = 48 }
   0xb   : > { %s4281_s29 = sshll.u32 %s4276_s28, 4  ;;  %vm455_vm0 = vcmask 261120   ;;  %v5144_v18 = vmov 32.0  }
   0xc   : > { %p354_p3 = scmp.lt.s32.totalorder %s4281_s29, 31  ;;  %4776 = vrcp.f32 %v5144_v18 }
   0xe   : > { %s8941_s29 = smov (!%p354_p3, %s4281_s29), 31 }
   0xf   : > { %s5200_s30 = sshll.u32 %s8941_s29, 3 }
  0x10   : > { %s5206_s11 = scalar_lea.vmem %s8750_s0, %s5200_s30  ;;  %s5863_s26 = scalar_lea.vmem %s8751_s1, %s5200_s30 }
  0x11   : > { %v441_v0 = vld [vmem:[%s5206_s11 + $0x10] sm:$0xff]  ;;  %v439_v1 = vld [vmem:[%s5206_s11] sm:$0xff]  ;;  %v442_v4 = vld [vmem:[%s5206_s11 + $0x18] sm:$0xff]  ;;  %s6003_s14 = scalar_lea.vmem %s8752_s2, %s5200_s30  ;;  %s8514_s17 = scalar_lea.vmem %s8753_s3, %s5200_s30 }
  0x12   : > { %v462_v2 = vsel %vm455_vm0, %v441_v0, 0.0  ;;  %v456_v3 = vsel %vm455_vm0, %v439_v1, 0.0  ;;  %v440_v5 = vld [vmem:[%s5206_s11 + $0x8] sm:$0xff]  ;;  %v465_v6 = vsel %vm455_vm0, %v442_v4, 0.0  ;;  %v443_v9 = vld [vmem:[%s5206_s11 + $0x20] sm:$0xff]  ;;  %v445_v12 = vld [vmem:[%s5206_s11 + $0x30] sm:$0xff]  ;;  %v4777_v19 = vpop.eup %4776  ;;  %s8690_s22 = scalar_lea.vmem %s8757_s7, %s5200_s30 }
  0x13   : > { %463 = vadd.xlane.f32.xlu1 %v462_v2  ;;  %457 = vadd.xlane.f32.xlu0 %v456_v3  ;;  %v459_v7 = vsel %vm455_vm0, %v440_v5, 0.0  ;;  %v444_v8 = vld [vmem:[%s5206_s11 + $0x28] sm:$0xff]  ;;  %v468_v11 = vsel %vm455_vm0, %v443_v9, 0.0  ;;  %v474_v13 = vsel %vm455_vm0, %v445_v12, 0.0  ;;  %v5228_v16 = vld [vmem:[%s5206_s11 + $0x50] sm:$0xff]  ;;  %v505_v20 = vmul.f32 32.0, %v4777_v19 }
  0x14   : > { %v471_v10 = vsel %vm455_vm0, %v444_v8, 0.0  ;;  %v5223_v14 = vld [vmem:[%s5206_s11 + $0x48] sm:$0xff]  ;;  %v486_v17 = vsel %vm455_vm0, %v5228_v16, 0.0  ;;  %vm509_vm1 = vweird.f32 %v4777_v19  ;;  %v5259_v46 = vld [vmem:[%s5206_s11 + $0x40] sm:$0xff]  ;;  %v5271_v55 = vld [vmem:[%s5206_s11 + $0x38] sm:$0xff] }
  0x15   : > { %v483_v15 = vsel %vm455_vm0, %v5223_v14, 0.0  ;;  %v506_v21 = vsub.f32 1.0, %v505_v20  ;;  %v480_v48 = vsel %vm455_vm0, %v5259_v46, 0.0  ;;  %v477_v58 = vsel %vm455_vm0, %v5271_v55, 0.0 }
  0x17   : > { %v507_v22 = vmul.f32 %v4777_v19, %v506_v21 }
  0x19   : > { %v508_v23 = vadd.f32 %v4777_v19, %v507_v22 }
  0x1b   : > { %466 = vadd.xlane.f32.xlu1 %v465_v6  ;;  %460 = vadd.xlane.f32.xlu0 %v459_v7  ;;  %v5232_v24 = vsel %vm509_vm1, %v4777_v19, %v508_v23  ;;  %v5298_v6 = vld [vmem:[%s5206_s11 + $0x70] sm:$0xff]  ;;  %v5301_v7 = vld [vmem:[%s5206_s11 + $0x60] sm:$0xff]  ;;  %v4665_v19 = vld [vmem:[%s8754_s4 + $0x8] sm:$0xff] }
  0x1c   : > { %897 = vmatpush.bf16.msra.mxu0 %v4665_v19 }
  0x23   : > { %472 = vadd.xlane.f32.xlu1 %v471_v10  ;;  %469 = vadd.xlane.f32.xlu0 %v468_v11  ;;  %v492_v10 = vsel %vm455_vm0, %v5301_v7, 0.0 }
  0x2b   : > { %475 = vadd.xlane.f32.xlu1 %v474_v13 }
  0x33   : > { %484 = vadd.xlane.f32.xlu1 %v483_v15 }
  0x3b   : > { %487 = vadd.xlane.f32.xlu1 %v486_v17 }
  0x86   : > { %v464_v25 = vpop.xlane.xlu1 %463  ;;  %v458_v26 = vpop.xlane.xlu0 %457 }
  0x87   : > { %v511_v27 = vmul.f32 %v5232_v24, %v458_v26  ;;  %v513_v33 = vmul.f32 %v5232_v24, %v464_v25 }
  0x89   : > { %v5235_v28 = vsub.f32 %v439_v1, %v511_v27  ;;  %v5247_v38 = vsub.f32 %v441_v0, %v513_v33  ;;  %v5287_v0 = vld [vmem:[%s5206_s11 + $0x68] sm:$0xff]  ;;  %v5290_v1 = vld [vmem:[%s5206_s11 + $0x58] sm:$0xff] }
  0x8a   : > { %v495_v2 = vsel %vm455_vm0, %v5287_v0, 0.0  ;;  %v489_v3 = vsel %vm455_vm0, %v5290_v1, 0.0 }
  0x8b   : > { %v543_v29 = vmul.f32 %v5235_v28, %v5235_v28  ;;  %v545_v45 = vmul.f32 %v5247_v38, %v5247_v38 }
  0x8d   : > { %v559_v30 = vsel %vm455_vm0, %v543_v29, 0.0  ;;  %v565_v49 = vsel %vm455_vm0, %v545_v45, 0.0 }
  0x8e   : > { %v467_v31 = vpop.xlane.xlu1 %466  ;;  %560 = vadd.xlane.f32.xlu2 %v559_v30  ;;  %v461_v32 = vpop.xlane.xlu0 %460 }
  0x8f   : > { %v514_v34 = vmul.f32 %v5232_v24, %v467_v31  ;;  %v512_v35 = vmul.f32 %v5232_v24, %v461_v32 }
  0x91   : > { %v5243_v36 = vsub.f32 %v442_v4, %v514_v34  ;;  %v5245_v37 = vsub.f32 %v440_v5, %v512_v35 }
  0x93   : > { %v546_v39 = vmul.f32 %v5243_v36, %v5243_v36  ;;  %v544_v40 = vmul.f32 %v5245_v37, %v5245_v37 }
  0x95   : > { %v568_v41 = vsel %vm455_vm0, %v546_v39, 0.0  ;;  %v562_v42 = vsel %vm455_vm0, %v544_v40, 0.0 }
  0x96   : > { %569 = vadd.xlane.f32.xlu0 %v568_v41  ;;  %563 = vadd.xlane.f32.xlu2 %v562_v42  ;;  %v473_v43 = vpop.xlane.xlu1 %472  ;;  %v470_v50 = vpop.xlane.xlu0 %469 }
  0x97   : > { %v516_v44 = vmul.f32 %v5232_v24, %v473_v43  ;;  %v515_v54 = vmul.f32 %v5232_v24, %v470_v50 }
  0x99   : > { %v5261_v47 = vsub.f32 %v444_v8, %v516_v44  ;;  %v5278_v59 = vsub.f32 %v443_v9, %v515_v54  ;;  %v498_v9 = vsel %vm455_vm0, %v5298_v6, 0.0 }
  0x9b   : > { %v548_v53 = vmul.f32 %v5261_v47, %v5261_v47  ;;  %v547_v61 = vmul.f32 %v5278_v59, %v5278_v59 }
  0x9d   : > { %v574_v57 = vsel %vm455_vm0, %v548_v53, 0.0  ;;  %v571_v63 = vsel %vm455_vm0, %v547_v61, 0.0 }
  0x9e   : > { %481 = vadd.xlane.f32.xlu0 %v480_v48  ;;  %566 = vadd.xlane.f32.xlu2 %v565_v49  ;;  %v476_v51 = vpop.xlane.xlu1 %475 }
  0x9f   : > { %v517_v52 = vmul.f32 %v5232_v24, %v476_v51 }
  0xa1   : > { %v5273_v56 = vsub.f32 %v445_v12, %v517_v52 }
  0xa3   : > { %v549_v60 = vmul.f32 %v5273_v56, %v5273_v56 }
  0xa5   : > { %v577_v62 = vsel %vm455_vm0, %v549_v60, 0.0 }
  0xa6   : > { %575 = vadd.xlane.f32.xlu0 %v574_v57  ;;  %478 = vadd.xlane.f32.xlu2 %v477_v58  ;;  %v485_v4 = vpop.xlane.xlu1 %484 }
  0xa7   : > { %v520_v5 = vmul.f32 %v5232_v24, %v485_v4 }
  0xa9   : > { %v5304_v8 = vsub.f32 %v5223_v14, %v520_v5 }
  0xab   : > { %v552_v12 = vmul.f32 %v5304_v8, %v5304_v8 }
  0xad   : > { %v586_v15 = vsel %vm455_vm0, %v552_v12, 0.0 }
  0xae   : > { %578 = vadd.xlane.f32.xlu0 %v577_v62  ;;  %572 = vadd.xlane.f32.xlu2 %v571_v63  ;;  %v488_v11 = vpop.xlane.xlu1 %487 }
  0xaf   : > { %v521_v13 = vmul.f32 %v5232_v24, %v488_v11  ;;  %v5350_v11 = vld [vmem:[%s8756_s6] ss:$0 sm:$0xff] }
  0xb1   : > { %v5315_v17 = vsub.f32 %v5228_v16, %v521_v13  ;;  %v4664_v16 = vld [vmem:[%s8754_s4] sm:$0xff] }
  0xb2   : > { %898 = vmatpush.bf16.msra.mxu0 %v4664_v16 }
  0xb3   : > { %v553_v14 = vmul.f32 %v5315_v17, %v5315_v17 }
  0xb5   : > { %v589_v18 = vsel %vm455_vm0, %v553_v14, 0.0 }
  0xb6   : > { %496 = vadd.xlane.f32.xlu0 %v495_v2  ;;  %490 = vadd.xlane.f32.xlu2 %v489_v3 }
  0xbe   : > { %499 = vadd.xlane.f32.xlu0 %v498_v9  ;;  %493 = vadd.xlane.f32.xlu2 %v492_v10 }
  0xc6   : > { %587 = vadd.xlane.f32.xlu2 %v586_v15 }
  0xce   : > { %590 = vadd.xlane.f32.xlu2 %v589_v18 }
 0x101   : > { %v561_v20 = vpop.xlane.xlu2 %560 }
 0x102   : > { %v607_v21 = vmul.f32 %v561_v20, %v5232_v24 }
 0x104   : > { %v623_v22 = vadd.f32 1e-05, %v607_v21 }
 0x106   : > { %4778 = vrsqrt.f32 %v623_v22  ;;  %vm645_vm3 = vweird.f32 %v623_v22 }
 0x109   : > { %v564_v23 = vpop.xlane.xlu2 %563  ;;  %v570_v25 = vpop.xlane.xlu0 %569 }
 0x10a   : > { %v608_v26 = vmul.f32 %v564_v23, %v5232_v24  ;;  %v610_v27 = vmul.f32 %v570_v25, %v5232_v24 }
 0x10c   : > { %v4779_v29 = vpop.eup %4778  ;;  %v624_v30 = vadd.f32 1e-05, %v608_v26  ;;  %v5329_v31 = vadd.f32 1e-05, %v610_v27 }
 0x10d   : > { %v640_v32 = vmul.f32 %v4779_v29, %v623_v22  ;;  %vm646_vm2 = vweird.f32 %v4779_v29  ;;  %v5367_v22 = vld [vmem:[%s8756_s6 + $0x1] ss:$0 sm:$0xff] }
 0x10e   : > { %4780 = vrsqrt.f32 %v624_v30  ;;  %vm647_vm4 = vmor %vm645_vm3, %vm646_vm2  ;;  %vm655_vm6 = vweird.f32 %v624_v30  ;;  %vm675_vm8 = vweird.f32 %v5329_v31 }
 0x10f   : > { %v641_v33 = vmul.f32 %v4779_v29, %v640_v32  ;;  %4782 = vrsqrt.f32 %v5329_v31 }
 0x111   : > { %v642_v34 = vmul.f32 0.5, %v641_v33  ;;  %v567_v35 = vpop.xlane.xlu2 %566  ;;  %v482_v39 = vpop.xlane.xlu0 %481 }
 0x112   : > { %v609_v40 = vmul.f32 %v567_v35, %v5232_v24  ;;  %v519_v58 = vmul.f32 %v5232_v24, %v482_v39 }
 0x113   : > { %v643_v41 = vsub.f32 1.5, %v642_v34 }
 0x114   : > { %v4781_v42 = vpop.eup %4780  ;;  %v625_v43 = vadd.f32 1e-05, %v609_v40  ;;  %v5353_v12 = vsub.f32 %v5259_v46, %v519_v58 }
 0x115   : > { %v5333_v44 = vpop.eup %4782  ;;  %v644_v45 = vmul.f32 %v4779_v29, %v643_v41  ;;  %v650_v48 = vmul.f32 %v4781_v42, %v624_v30  ;;  %vm656_vm5 = vweird.f32 %v4781_v42 }
 0x116   : > { %v670_v49 = vmul.f32 %v5333_v44, %v5329_v31  ;;  %4784 = vrsqrt.f32 %v625_v43  ;;  %vm657_vm7 = vmor %vm655_vm6, %vm656_vm5  ;;  %vm676_vm9 = vweird.f32 %v5333_v44  ;;  %v551_v23 = vmul.f32 %v5353_v12, %v5353_v12 }
 0x117   : > { %v651_v50 = vmul.f32 %v4781_v42, %v650_v48  ;;  %v648_v51 = vsel %vm647_vm4, %v4779_v29, %v644_v45  ;;  %vm5381_vm11 = vmor %vm675_vm8, %vm676_vm9  ;;  %vm665_vm12 = vweird.f32 %v625_v43 }
 0x118   : > { %v671_v53 = vmul.f32 %v5333_v44, %v670_v49  ;;  %v799_v4 = vmul.f32 %v648_v51, %v5235_v28  ;;  %v583_v40 = vsel %vm455_vm0, %v551_v23, 0.0  ;;  %v5397_v51 = vld [vmem:[%s5206_s11 + $0x78] sm:$0xff] }
 0x119   : > { %v652_v52 = vmul.f32 0.5, %v651_v50  ;;  %v479_v54 = vpop.xlane.xlu2 %478  ;;  %v576_v57 = vpop.xlane.xlu0 %575 }
 0x11a   : > { %v518_v60 = vmul.f32 %v5232_v24, %v479_v54  ;;  %v612_v61 = vmul.f32 %v576_v57, %v5232_v24  ;;  %v672_v9 = vmul.f32 0.5, %v671_v53  ;;  %v815_v18 = vmul.f32 %v799_v4, %v5350_v11 }
 0x11b   : > { %v653_v62 = vsub.f32 1.5, %v652_v52 }
 0x11c   : > { %v4785_v63 = vpop.eup %4784  ;;  %v5342_v2 = vsub.f32 %v5271_v55, %v518_v60  ;;  %v5344_v3 = vadd.f32 1e-05, %v612_v61  ;;  %v673_v19 = vsub.f32 1.5, %v672_v9  ;;  %v831_v29 = vadd.f32 %v815_v18, %v5367_v22 }
 0x11d   : > { %v654_v5 = vmul.f32 %v4781_v42, %v653_v62  ;;  %v660_v10 = vmul.f32 %v4785_v63, %v625_v43  ;;  %vm666_vm10 = vweird.f32 %v4785_v63  ;;  %v501_v61 = vsel %vm455_vm0, %v5397_v51, 0.0 }
 0x11e   : > { %4786 = vrsqrt.f32 %v5344_v3  ;;  %v550_v55 = vmul.f32 %v5342_v2, %v5342_v2  ;;  %v674_v32 = vmul.f32 %v5333_v44, %v673_v19  ;;  %vm667_vm13 = vmor %vm665_vm12, %vm666_vm10  ;;  %vm695_vm1 = vweird.f32 %v5344_v3 }
 0x11f   : > { %v658_v13 = vsel %vm657_vm7, %v4781_v42, %v654_v5  ;;  %v661_v28 = vmul.f32 %v4785_v63, %v660_v10 }
 0x120   : > { %v580_v15 = vsel %vm455_vm0, %v550_v55, 0.0  ;;  %v800_v14 = vmul.f32 %v658_v13, %v5245_v37  ;;  %v678_v31 = vsel %vm5381_vm11, %v5333_v44, %v674_v32 }
 0x121   : > { %v662_v20 = vmul.f32 0.5, %v661_v28  ;;  %581 = vadd.xlane.f32.xlu1 %v580_v15  ;;  %v573_v46 = vpop.xlane.xlu2 %572  ;;  %v5362_v21 = vpop.xlane.xlu0 %578  ;;  %v802_v44 = vmul.f32 %v678_v31, %v5243_v36 }
 0x122   : > { %v611_v16 = vmul.f32 %v573_v46, %v5232_v24  ;;  %v816_v37 = vmul.f32 %v800_v14, %v5350_v11 }
 0x123   : > { %v663_v25 = vsub.f32 1.5, %v662_v20  ;;  %v818_v36 = vmul.f32 %v802_v44, %v5350_v11 }
 0x124   : > { %v5374_v26 = vpop.eup %4786  ;;  %v627_v27 = vadd.f32 1e-05, %v611_v16  ;;  %v832_v30 = vadd.f32 %v816_v37, %v5367_v22 }
 0x125   : > { %v664_v34 = vmul.f32 %v4785_v63, %v663_v25  ;;  %v690_v35 = vmul.f32 %v5374_v26, %v5344_v3  ;;  %vm696_vm2 = vweird.f32 %v5374_v26  ;;  %v834_v20 = vadd.f32 %v818_v36, %v5367_v22 }
 0x126   : > { %4788 = vrsqrt.f32 %v627_v27  ;;  %v847_v39 = vpack.c.bf16 %v832_v30, %v831_v29  ;;  %vm685_vm14 = vweird.f32 %v627_v27  ;;  %vm697_vm4 = vmor %vm695_vm1, %vm696_vm2 }
 0x127   : > { %v668_v41 = vsel %vm667_vm13, %v4785_v63, %v664_v34  ;;  %v691_v42 = vmul.f32 %v5374_v26, %v690_v35 }
 0x128   : > { %4302 = vmatmul.msk.bf16.vlgmr.msra.gmra.mxu0 %vm455_vm0, %v847_v39  ;;  %v801_v50 = vmul.f32 %v668_v41, %v5247_v38 }
 0x129   : > { %v491_v45 = vpop.xlane.xlu2 %490  ;;  %584 = vadd.xlane.f32.xlu1 %v583_v40  ;;  %v497_v43 = vpop.xlane.xlu0 %496  ;;  %v692_v57 = vmul.f32 0.5, %v691_v42 }
 0x12a   : > { %v522_v48 = vmul.f32 %v5232_v24, %v491_v45  ;;  %v524_v49 = vmul.f32 %v5232_v24, %v497_v43  ;;  %v817_v62 = vmul.f32 %v801_v50, %v5350_v11 }
 0x12b   : > { %v693_v4 = vsub.f32 1.5, %v692_v57 }
 0x12c   : > { %v4789_v52 = vpop.eup %4788  ;;  %v5400_v53 = vsub.f32 %v5290_v1, %v522_v48  ;;  %v5403_v54 = vsub.f32 %v5287_v0, %v524_v49  ;;  %v833_v28 = vadd.f32 %v817_v62, %v5367_v22 }
 0x12d   : > { %v680_v58 = vmul.f32 %v4789_v52, %v627_v27  ;;  %vm686_vm15 = vweird.f32 %v4789_v52  ;;  %v694_v46 = vmul.f32 %v5374_v26, %v693_v4  ;;  %v5473_v4 = vld [vmem:[%s8756_s6 + $0x2] ss:$0 sm:$0xff] }
 0x12e   : > { %v554_v60 = vmul.f32 %v5400_v53, %v5400_v53  ;;  %v556_v38 = vmul.f32 %v5403_v54, %v5403_v54  ;;  %vm5421_vm3 = vmor %vm685_vm14, %vm686_vm15  ;;  %v848_v3 = vpack.c.bf16 %v834_v20, %v833_v28 }
 0x12f   : > { %v681_v1 = vmul.f32 %v4789_v52, %v680_v58  ;;  %v698_v27 = vsel %vm697_vm4, %v5374_v26, %v694_v46  ;;  %v613_v26 = vmul.f32 %v5362_v21, %v5232_v24 }
 0x130   : > { %v592_v63 = vsel %vm455_vm0, %v554_v60, 0.0  ;;  %v598_v0 = vsel %vm455_vm0, %v556_v38, 0.0  ;;  %v804_v30 = vmul.f32 %v698_v27, %v5261_v47 }
 0x131   : > { %v682_v5 = vmul.f32 0.5, %v681_v1  ;;  %593 = vadd.xlane.f32.xlu0 %v592_v63  ;;  %v494_v9 = vpop.xlane.xlu2 %493  ;;  %502 = vadd.xlane.f32.xlu1 %v501_v61  ;;  %v500_v10 = vpop.xlane.xlu0 %499  ;;  %v629_v40 = vadd.f32 1e-05, %v613_v26 }
 0x132   : > { %v523_v55 = vmul.f32 %v5232_v24, %v494_v9  ;;  %599 = vadd.xlane.f32.xlu2 %v598_v0  ;;  %v525_v13 = vmul.f32 %v5232_v24, %v500_v10  ;;  %v820_v33 = vmul.f32 %v804_v30, %v5350_v11 }
 0x133   : > { %v683_v15 = vsub.f32 1.5, %v682_v5  ;;  %4790 = vrsqrt.f32 %v629_v40  ;;  %vm705_vm5 = vweird.f32 %v629_v40 }
 0x134   : > { %v5426_v18 = vsub.f32 %v5301_v7, %v523_v55  ;;  %v5429_v19 = vsub.f32 %v5298_v6, %v525_v13  ;;  %v836_v35 = vadd.f32 %v820_v33, %v5367_v22 }
 0x135   : > { %v684_v16 = vmul.f32 %v4789_v52, %v683_v15 }
 0x136   : > { %v555_v37 = vmul.f32 %v5426_v18, %v5426_v18  ;;  %v557_v23 = vmul.f32 %v5429_v19, %v5429_v19 }
 0x137   : > { %v688_v7 = vsel %vm5421_vm3, %v4789_v52, %v684_v16 }
 0x138   : > { %4303 = vmatmul.msk.bf16.gmra.mxu0 %vm455_vm0, %v848_v3  ;;  %v595_v6 = vsel %vm455_vm0, %v555_v37, 0.0  ;;  %v601_v25 = vsel %vm455_vm0, %v557_v23, 0.0  ;;  %v803_v29 = vmul.f32 %v688_v7, %v5278_v59 }
 0x139   : > { %596 = vadd.xlane.f32.xlu1 %v595_v6  ;;  %602 = vadd.xlane.f32.xlu0 %v601_v25  ;;  %v588_v41 = vpop.xlane.xlu2 %587  ;;  %v4791_v59 = vpop.eup %4790 }
 0x13a   : > { %v819_v32 = vmul.f32 %v803_v29, %v5350_v11  ;;  %v616_v47 = vmul.f32 %v588_v41, %v5232_v24  ;;  %v700_v31 = vmul.f32 %v4791_v59, %v629_v40  ;;  %vm706_vm6 = vweird.f32 %v4791_v59 }
 0x13b   : > { %vm5464_vm7 = vmor %vm705_vm5, %vm706_vm6 }
 0x13c   : > { %v835_v34 = vadd.f32 %v819_v32, %v5367_v22  ;;  %v5453_v42 = vadd.f32 1e-05, %v616_v47  ;;  %v701_v43 = vmul.f32 %v4791_v59, %v700_v31 }
 0x13e   : > { %v849_v39 = vpack.c.bf16 %v836_v35, %v835_v34  ;;  %4792 = vrsqrt.f32 %v5453_v42  ;;  %v702_v50 = vmul.f32 0.5, %v701_v43  ;;  %vm735_vm11 = vweird.f32 %v5453_v42 }
 0x140   : > { %v703_v21 = vsub.f32 1.5, %v702_v50 }
 0x141   : > { %v591_v44 = vpop.xlane.xlu2 %590 }
 0x142   : > { %v617_v38 = vmul.f32 %v591_v44, %v5232_v24  ;;  %v704_v1 = vmul.f32 %v4791_v59, %v703_v21 }
 0x144   : > { %v5458_v58 = vpop.eup %4792  ;;  %v5475_v5 = vadd.f32 1e-05, %v617_v38  ;;  %v708_v13 = vsel %vm5464_vm7, %v4791_v59, %v704_v1 }
 0x145   : > { %v730_v0 = vmul.f32 %v5458_v58, %v5453_v42  ;;  %v805_v29 = vmul.f32 %v708_v13, %v5273_v56  ;;  %vm736_vm12 = vweird.f32 %v5458_v58 }
 0x146   : > { %vm5520_vm14 = vmor %vm735_vm11, %vm736_vm12  ;;  %vm745_vm4 = vweird.f32 %v5475_v5 }
 0x147   : > { %v731_v20 = vmul.f32 %v5458_v58, %v730_v0  ;;  %v821_v40 = vmul.f32 %v805_v29, %v5350_v11 }
 0x148   : > { %4304 = vmatmul.msk.bf16.gmra.mxu0 %vm455_vm0, %v849_v39 }
 0x149   : > { %v837_v44 = vadd.f32 %v821_v40, %v5367_v22 }
 0x194   : > { %v582_v45 = vpop.xlane.xlu1 %581 }
 0x195   : > { %v614_v48 = vmul.f32 %v582_v45, %v5232_v24 }
 0x197   : > { %v630_v49 = vadd.f32 1e-05, %v614_v48 }
 0x199   : > { %4794 = vrsqrt.f32 %v630_v49  ;;  %vm715_vm9 = vweird.f32 %v630_v49 }
 0x19c   : > { %v585_v52 = vpop.xlane.xlu1 %584 }
 0x19d   : > { %v615_v57 = vmul.f32 %v585_v52, %v5232_v24 }
 0x19f   : > { %v4795_v60 = vpop.eup %4794  ;;  %v5460_v61 = vadd.f32 1e-05, %v615_v57 }
 0x1a0   : > { %v710_v62 = vmul.f32 %v4795_v60, %v630_v49  ;;  %vm716_vm8 = vweird.f32 %v4795_v60 }
 0x1a1   : > { %4796 = vrsqrt.f32 %v5460_v61  ;;  %vm717_vm10 = vmor %vm715_vm9, %vm716_vm8  ;;  %vm725_vm15 = vweird.f32 %v5460_v61 }
 0x1a2   : > { %v711_v36 = vmul.f32 %v4795_v60, %v710_v62  ;;  %4798 = vrsqrt.f32 %v5475_v5 }
 0x1a4   : > { %v712_v9 = vmul.f32 0.5, %v711_v36  ;;  %v503_v10 = vpop.xlane.xlu1 %502  ;;  %v594_v55 = vpop.xlane.xlu0 %593 }
 0x1a5   : > { %v526_v28 = vmul.f32 %v5232_v24, %v503_v10  ;;  %v618_v15 = vmul.f32 %v594_v55, %v5232_v24  ;;  %v900_v14 = vpop.f32.mrf.mxu0  ;;  %v600_v31 = vpop.xlane.xlu2 %599 }
 0x1a6   : > { %v713_v46 = vsub.f32 1.5, %v712_v9  ;;  %v5483_v16 = vadd.f32 %v900_v14, %v5473_v4  ;;  %v620_v21 = vmul.f32 %v600_v31, %v5232_v24 }
 0x1a7   : > { %v4797_v3 = vpop.eup %4796  ;;  %v5486_v37 = vsub.f32 %v5397_v51, %v526_v28  ;;  %v5488_v23 = vadd.f32 1e-05, %v618_v15  ;;  %v732_v51 = vmul.f32 0.5, %v731_v20 }
 0x1a8   : > { %v714_v7 = vmul.f32 %v4795_v60, %v713_v46  ;;  %v720_v6 = vmul.f32 %v4797_v3, %v5460_v61  ;;  %v940_v25 = vmax.f32 %v5483_v16, 0.0  ;;  %v5503_v59 = vpop.eup %4798  ;;  %vm726_vm13 = vweird.f32 %v4797_v3 }
 0x1a9   : > { %4800 = vrsqrt.f32 %v5488_v23  ;;  %v558_v27 = vmul.f32 %v5486_v37, %v5486_v37  ;;  %v733_v56 = vsub.f32 1.5, %v732_v51  ;;  %vm727_vm1 = vmor %vm725_vm15, %vm726_vm13  ;;  %v5532_v0 = vadd.f32 1e-05, %v620_v21 }
 0x1aa   : > { %v718_v30 = vsel %vm717_vm10, %v4795_v60, %v714_v7  ;;  %v721_v32 = vmul.f32 %v4797_v3, %v720_v6  ;;  %956 = vadd.xlane.f32.xlu2 %v940_v25  ;;  %v740_v60 = vmul.f32 %v5503_v59, %v5475_v5  ;;  %vm755_vm2 = vweird.f32 %v5488_v23 }
 0x1ab   : > { %v604_v33 = vsel %vm455_vm0, %v558_v27, 0.0  ;;  %v806_v34 = vmul.f32 %v718_v30, %v5342_v2  ;;  %v734_v57 = vmul.f32 %v5458_v58, %v733_v56  ;;  %vm746_vm5 = vweird.f32 %v5503_v59 }
 0x1ac   : > { %v722_v35 = vmul.f32 0.5, %v721_v32  ;;  %605 = vadd.xlane.f32.xlu1 %v604_v33  ;;  %v597_v39 = vpop.xlane.xlu1 %596  ;;  %v741_v61 = vmul.f32 %v5503_v59, %v740_v60  ;;  %vm747_vm7 = vmor %vm745_vm4, %vm746_vm5  ;;  %vm775_vm10 = vweird.f32 %v5532_v0 }
 0x1ad   : > { %v902_v26 = vpop.f32.mrf.mxu0  ;;  %v822_v41 = vmul.f32 %v806_v34, %v5350_v11  ;;  %v619_v2 = vmul.f32 %v597_v39, %v5232_v24  ;;  %v738_v9 = vsel %vm5520_vm14, %v5458_v58, %v734_v57 }
 0x1ae   : > { %v723_v47 = vsub.f32 1.5, %v722_v35  ;;  %v5506_v45 = vadd.f32 %v902_v26, %v5473_v4  ;;  %v808_v15 = vmul.f32 %v738_v9, %v5304_v8  ;;  %v742_v14 = vmul.f32 0.5, %v741_v61 }
 0x1af   : > { %v5508_v43 = vpop.eup %4800  ;;  %v838_v48 = vadd.f32 %v822_v41, %v5367_v22  ;;  %v5529_v38 = vadd.f32 1e-05, %v619_v2  ;;  %v5145_v61 = vmov 128.0  }
 0x1b0   : > { %v724_v49 = vmul.f32 %v4797_v3, %v723_v47  ;;  %v750_v50 = vmul.f32 %v5508_v43, %v5488_v23  ;;  %v941_v52 = vmax.f32 %v5506_v45, 0.0  ;;  %v743_v7 = vsub.f32 1.5, %v742_v14 }
 0x1b1   : > { %v850_v62 = vpack.c.bf16 %v838_v48, %v837_v44  ;;  %4802 = vrsqrt.f32 %v5529_v38  ;;  %vm756_vm3 = vweird.f32 %v5508_v43  ;;  %vm765_vm8 = vweird.f32 %v5529_v38 }
 0x1b2   : > { %958 = vadd.xlane.f32.xlu0 %v941_v52  ;;  %v728_v1 = vsel %vm727_vm1, %v4797_v3, %v724_v49  ;;  %v751_v63 = vmul.f32 %v5508_v43, %v750_v50  ;;  %4804 = vrsqrt.f32 %v5532_v0  ;;  %vm757_vm6 = vmor %vm755_vm2, %vm756_vm3  ;;  %v744_v32 = vmul.f32 %v5503_v59, %v743_v7 }
 0x1b3   : > { %4305 = vmatmul.msk.bf16.gmra.mxu0 %vm455_vm0, %v850_v62  ;;  %v807_v55 = vmul.f32 %v728_v1, %v5353_v12  ;;  %v824_v12 = vmul.f32 %v808_v15, %v5350_v11  ;;  %4806 = vrcp.f32 %v5145_v61 }
 0x1b4   : > { %v752_v13 = vmul.f32 0.5, %v751_v63  ;;  %v748_v26 = vsel %vm747_vm7, %v5503_v59, %v744_v32 }
 0x1b5   : > { %v905_v36 = vpop.f32.mrf.mxu0  ;;  %v823_v58 = vmul.f32 %v807_v55, %v5350_v11  ;;  %v840_v23 = vadd.f32 %v824_v12, %v5367_v22  ;;  %v809_v2 = vmul.f32 %v748_v26, %v5315_v17  ;;  %v603_v55 = vpop.xlane.xlu0 %602 }
 0x1b6   : > { %v5540_v10 = vadd.f32 %v905_v36, %v5473_v4  ;;  %v753_v20 = vsub.f32 1.5, %v752_v13  ;;  %v621_v15 = vmul.f32 %v603_v55, %v5232_v24 }
 0x1b7   : > { %v4803_v46 = vpop.eup %4802  ;;  %v839_v27 = vadd.f32 %v823_v58, %v5367_v22  ;;  %v825_v59 = vmul.f32 %v809_v2, %v5350_v11 }
 0x1b8   : > { %v942_v28 = vmax.f32 %v5540_v10, 0.0  ;;  %v4805_v8 = vpop.eup %4804  ;;  %v754_v29 = vmul.f32 %v5508_v43, %v753_v20  ;;  %v760_v51 = vmul.f32 %v4803_v46, %v5529_v38  ;;  %vm766_vm9 = vweird.f32 %v4803_v46 }
 0x1b9   : > { %v770_v33 = vmul.f32 %v4805_v8, %v5532_v0  ;;  %v851_v5 = vpack.c.bf16 %v840_v23, %v839_v27  ;;  %vm776_vm11 = vweird.f32 %v4805_v8  ;;  %vm767_vm12 = vmor %vm765_vm8, %vm766_vm9  ;;  %v841_v17 = vadd.f32 %v825_v59, %v5367_v22  ;;  %v4807_v13 = vpop.eup %4806 }
 0x1ba   : > { %960 = vadd.xlane.f32.xlu1 %v942_v28  ;;  %v758_v34 = vsel %vm757_vm6, %v5508_v43, %v754_v29  ;;  %v761_v35 = vmul.f32 %v4803_v46, %v760_v51  ;;  %vm777_vm13 = vmor %vm775_vm10, %vm776_vm11  ;;  %v637_v14 = vadd.f32 1e-05, %v621_v15  ;;  %vm993_vm14 = vweird.f32 %v4807_v13 }
 0x1bb   : > { %v771_v40 = vmul.f32 %v4805_v8, %v770_v33  ;;  %v810_v56 = vmul.f32 %v758_v34, %v5400_v53 }
 0x1bc   : > { %v762_v47 = vmul.f32 0.5, %v761_v35  ;;  %4808 = vrsqrt.f32 %v637_v14  ;;  %vm785_vm15 = vweird.f32 %v637_v14 }
 0x1bd   : > { %v907_v3 = vpop.f32.mrf.mxu0  ;;  %v772_v48 = vmul.f32 0.5, %v771_v40  ;;  %v826_v43 = vmul.f32 %v810_v56, %v5350_v11 }
 0x1be   : > { %v5554_v6 = vadd.f32 %v907_v3, %v5473_v4  ;;  %v763_v49 = vsub.f32 1.5, %v762_v47 }
 0x1bf   : > { %v773_v50 = vsub.f32 1.5, %v772_v48  ;;  %v842_v53 = vadd.f32 %v826_v43, %v5367_v22 }
 0x1c0   : > { %v943_v30 = vmax.f32 %v5554_v6, 0.0  ;;  %v764_v21 = vmul.f32 %v4803_v46, %v763_v49 }
 0x1c1   : > { %v774_v44 = vmul.f32 %v4805_v8, %v773_v50  ;;  %v852_v57 = vpack.c.bf16 %v842_v53, %v841_v17 }
 0x1c2   : > { %962 = vadd.xlane.f32.xlu2 %v943_v30  ;;  %v768_v42 = vsel %vm767_vm12, %v4803_v46, %v764_v21  ;;  %v4809_v20 = vpop.eup %4808 }
 0x1c3   : > { %4306 = vmatmul.msk.bf16.gmra.mxu0 %vm455_vm0, %v851_v5  ;;  %v778_v60 = vsel %vm777_vm13, %v4805_v8, %v774_v44  ;;  %v811_v62 = vmul.f32 %v768_v42, %v5426_v18  ;;  %v989_v18 = vmul.f32 128.0, %v4807_v13  ;;  %v780_v3 = vmul.f32 %v4809_v20, %v637_v14 }
 0x1c4   : > { %v812_v38 = vmul.f32 %v778_v60, %v5403_v54  ;;  %vm786_vm1 = vweird.f32 %v4809_v20 }
 0x1c5   : > { %v910_v39 = vpop.f32.mrf.mxu0  ;;  %v827_v1 = vmul.f32 %v811_v62, %v5350_v11  ;;  %v990_v54 = vsub.f32 1.0, %v989_v18  ;;  %v781_v8 = vmul.f32 %v4809_v20, %v780_v3  ;;  %vm787_vm2 = vmor %vm785_vm15, %vm786_vm1 }
 0x1c6   : > { %v5571_v41 = vadd.f32 %v910_v39, %v5473_v4  ;;  %v828_v63 = vmul.f32 %v812_v38, %v5350_v11 }
 0x1c7   : > { %v843_v0 = vadd.f32 %v827_v1, %v5367_v22  ;;  %v991_v58 = vmul.f32 %v4807_v13, %v990_v54  ;;  %v782_v33 = vmul.f32 0.5, %v781_v8 }
 0x1c8   : > { %v944_v31 = vmax.f32 %v5571_v41, 0.0  ;;  %v844_v36 = vadd.f32 %v828_v63, %v5367_v22 }
 0x1c9   : > { %v992_v46 = vadd.f32 %v4807_v13, %v991_v58  ;;  %v783_v26 = vsub.f32 1.5, %v782_v33  ;;  %v4671_v33 = vld [vmem:[%s8754_s4 + $0x38] sm:$0xff] }
 0x1ca   : > { %964 = vadd.xlane.f32.xlu2 %v944_v31  ;;  %v853_v9 = vpack.c.bf16 %v844_v36, %v843_v0 }
 0x1cb   : > { %v5593_v12 = vsel %vm993_vm14, %v4807_v13, %v992_v46  ;;  %v784_v56 = vmul.f32 %v4809_v20, %v783_v26 }
 0x1cc   : > { %8779 = vst [vmem:[#allocation2_spill] sm:$0xff] %v5593_v12 }
 0x1cd   : > { %v912_v34 = vpop.f32.mrf.mxu0 }
 0x1ce   : > { %v5605_v40 = vadd.f32 %v912_v34, %v5473_v4  ;;  %v4669_v34 = vld [vmem:[%s8754_s4 + $0x28] sm:$0xff] }
 0x1d0   : > { %v945_v2 = vmax.f32 %v5605_v40, 0.0 }
 0x1d3   : > { %4307 = vmatmul.msk.bf16.gmra.mxu0 %vm455_vm0, %v852_v57 }
 0x1e3   : > { %4308 = vmatmul.msk.bf16.gmra.mxu0 %vm455_vm0, %v853_v9 }
 0x21d   : > { %v957_v7 = vpop.xlane.xlu2 %956 }
 0x21e   : > { %v995_v27 = vmul.f32 %v5593_v12, %v957_v7 }
 0x21f   : > { %v606_v29 = vpop.xlane.xlu1 %605 }
 0x220   : > { %v622_v51 = vmul.f32 %v606_v29, %v5232_v24  ;;  %v5599_v23 = vsub.f32 %v940_v25, %v995_v27 }
 0x222   : > { %v638_v32 = vadd.f32 1e-05, %v622_v51  ;;  %v1027_v5 = vmul.f32 %v5599_v23, %v5599_v23  ;;  %v4673_v51 = vld [vmem:[%s8754_s4 + $0x48] sm:$0xff] }
 0x223   : > { %1371 = vmatpush.bf16.msra.mxu1 %v4673_v51  ;;  %4746 = vmatpush.bf16.msra.mxu3 %v4673_v51 }
 0x224   : > { %4810 = vrsqrt.f32 %v638_v32  ;;  %1043 = vadd.xlane.f32.xlu0 %v1027_v5  ;;  %vm795_vm4 = vweird.f32 %v638_v32  ;;  %v4670_v5 = vld [vmem:[%s8754_s4 + $0x30] sm:$0xff] }
 0x225   : > { %v959_v35 = vpop.xlane.xlu0 %958 }
 0x226   : > { %v996_v39 = vmul.f32 %v5593_v12, %v959_v35  ;;  %v4668_v35 = vld [vmem:[%s8754_s4 + $0x20] sm:$0xff] }
 0x228   : > { %v5609_v24 = vsub.f32 %v941_v52, %v996_v39  ;;  %v788_v52 = vsel %vm787_vm2, %v4809_v20, %v784_v56  ;;  %v4667_v39 = vld [vmem:[%s8754_s4 + $0x18] sm:$0xff]  ;;  %v4666_v56 = vld [vmem:[%s8754_s4 + $0x10] sm:$0xff] }
 0x229   : > { %v813_v53 = vmul.f32 %v788_v52, %v5429_v19 }
 0x22a   : > { %v4811_v16 = vpop.eup %4810  ;;  %v1028_v25 = vmul.f32 %v5609_v24, %v5609_v24 }
 0x22b   : > { %v790_v47 = vmul.f32 %v4811_v16, %v638_v32  ;;  %vm796_vm3 = vweird.f32 %v4811_v16  ;;  %v829_v19 = vmul.f32 %v813_v53, %v5350_v11  ;;  %v4672_v32 = vld [vmem:[%s8754_s4 + $0x40] sm:$0xff] }
 0x22c   : > { %1045 = vadd.xlane.f32.xlu1 %v1028_v25  ;;  %966 = vadd.xlane.f32.xlu0 %v945_v2  ;;  %vm797_vm5 = vmor %vm795_vm4, %vm796_vm3 }
 0x22d   : > { %v791_v48 = vmul.f32 %v4811_v16, %v790_v47  ;;  %v961_v43 = vpop.xlane.xlu1 %960  ;;  %v845_v36 = vadd.f32 %v829_v19, %v5367_v22  ;;  %1372 = vmatpush.bf16.msra.mxu1 %v4672_v32  ;;  %4747 = vmatpush.bf16.msra.mxu3 %v4672_v32 }
 0x22e   : > { %v997_v45 = vmul.f32 %v5593_v12, %v961_v43 }
 0x22f   : > { %v792_v49 = vmul.f32 0.5, %v791_v48 }
 0x230   : > { %v5619_v59 = vsub.f32 %v942_v28, %v997_v45  ;;  %v915_v21 = vpop.f32.mrf.mxu0 }
 0x231   : > { %v793_v50 = vsub.f32 1.5, %v792_v49  ;;  %v5625_v57 = vadd.f32 %v915_v21, %v5473_v4  ;;  %1373 = vmatpush.bf16.msra.mxu1 %v4671_v33  ;;  %4748 = vmatpush.bf16.msra.mxu3 %v4671_v33 }
 0x232   : > { %v1029_v17 = vmul.f32 %v5619_v59, %v5619_v59 }
 0x233   : > { %v794_v44 = vmul.f32 %v4811_v16, %v793_v50  ;;  %v946_v10 = vmax.f32 %v5625_v57, 0.0 }
 0x234   : > { %1047 = vadd.xlane.f32.xlu1 %v1029_v17 }
 0x235   : > { %v798_v42 = vsel %vm797_vm5, %v4811_v16, %v794_v44  ;;  %v963_v28 = vpop.xlane.xlu2 %962  ;;  %968 = vadd.xlane.f32.xlu0 %v946_v10  ;;  %1374 = vmatpush.bf16.msra.mxu1 %v4670_v5 }
 0x236   : > { %v814_v60 = vmul.f32 %v798_v42, %v5486_v37  ;;  %v998_v62 = vmul.f32 %v5593_v12, %v963_v28  ;;  %4749 = vmatpush.bf16.msra.mxu3 %v4670_v5  ;;  %v5736_v5 = vld [vmem:[%s8756_s6 + $0x3] ss:$0 sm:$0xff] }
 0x238   : > { %v5635_v38 = vsub.f32 %v943_v30, %v998_v62  ;;  %v830_v1 = vmul.f32 %v814_v60, %v5350_v11  ;;  %v917_v63 = vpop.f32.mrf.mxu0 }
 0x239   : > { %v5643_v9 = vadd.f32 %v917_v63, %v5473_v4  ;;  %1375 = vmatpush.bf16.msra.mxu1 %v4669_v34 }
 0x23a   : > { %v1030_v0 = vmul.f32 %v5635_v38, %v5635_v38  ;;  %v846_v37 = vadd.f32 %v830_v1, %v5367_v22  ;;  %4750 = vmatpush.bf16.msra.mxu3 %v4669_v34 }
 0x23b   : > { %v947_v6 = vmax.f32 %v5643_v9, 0.0 }
 0x23c   : > { %1049 = vadd.xlane.f32.xlu2 %v1030_v0  ;;  %v854_v61 = vpack.c.bf16 %v846_v37, %v845_v36 }
 0x23d   : > { %v965_v55 = vpop.xlane.xlu2 %964  ;;  %970 = vadd.xlane.f32.xlu1 %v947_v6  ;;  %1376 = vmatpush.bf16.msra.mxu1 %v4668_v35 }
 0x23e   : > { %v999_v30 = vmul.f32 %v5593_v12, %v965_v55  ;;  %4309 = vmatmul.msk.bf16.gmra.mxu0 %vm455_vm0, %v854_v61  ;;  %4751 = vmatpush.bf16.msra.mxu3 %v4668_v35 }
 0x240   : > { %v5652_v11 = vsub.f32 %v944_v31, %v999_v30  ;;  %v920_v22 = vpop.f32.mrf.mxu0 }
 0x241   : > { %v5655_v13 = vadd.f32 %v920_v22, %v5473_v4  ;;  %1377 = vmatpush.bf16.msra.mxu1 %v4667_v39 }
 0x242   : > { %v1031_v15 = vmul.f32 %v5652_v11, %v5652_v11  ;;  %4752 = vmatpush.bf16.msra.mxu3 %v4667_v39 }
 0x243   : > { %v948_v18 = vmax.f32 %v5655_v13, 0.0 }
 0x245   : > { %972 = vadd.xlane.f32.xlu2 %v948_v18  ;;  %1051 = vadd.xlane.f32.xlu1 %v1031_v15 }
 0x246   : > { %1378 = vmatpush.bf16.msra.mxu1 %v4666_v56  ;;  %4753 = vmatpush.bf16.msra.mxu3 %v4666_v56 }
 0x248   : > { %v922_v14 = vpop.f32.mrf.mxu0 }
 0x249   : > { %v5663_v54 = vadd.f32 %v922_v14, %v5473_v4 }
 0x24b   : > { %v949_v41 = vmax.f32 %v5663_v54, 0.0 }
 0x24d   : > { %974 = vadd.xlane.f32.xlu0 %v949_v41 }
 0x250   : > { %v925_v31 = vpop.f32.mrf.mxu0 }
 0x251   : > { %v5669_v58 = vadd.f32 %v925_v31, %v5473_v4 }
 0x253   : > { %v950_v20 = vmax.f32 %v5669_v58, 0.0 }
 0x255   : > { %976 = vadd.xlane.f32.xlu0 %v950_v20 }
 0x258   : > { %v927_v46 = vpop.f32.mrf.mxu0 }
 0x259   : > { %v5675_v3 = vadd.f32 %v927_v46, %v5473_v4 }
 0x25b   : > { %v951_v7 = vmax.f32 %v5675_v3, 0.0 }
 0x25d   : > { %978 = vadd.xlane.f32.xlu1 %v951_v7 }
 0x260   : > { %v930_v8 = vpop.f32.mrf.mxu0 }
 0x261   : > { %v5681_v27 = vadd.f32 %v930_v8, %v5473_v4 }
 0x263   : > { %v952_v29 = vmax.f32 %v5681_v27, 0.0 }
 0x265   : > { %980 = vadd.xlane.f32.xlu1 %v952_v29 }
 0x268   : > { %v932_v37 = vpop.f32.mrf.mxu0 }
 0x269   : > { %v5729_v46 = vadd.f32 %v932_v37, %v5473_v4 }
 0x26b   : > { %v953_v56 = vmax.f32 %v5729_v46, 0.0 }
 0x297   : > { %v1044_v26 = vpop.xlane.xlu0 %1043 }
 0x298   : > { %v1075_v16 = vmul.f32 %v1044_v26, %v5593_v12 }
 0x29a   : > { %v1091_v25 = vadd.f32 1e-05, %v1075_v16 }
 0x29c   : > { %4812 = vrsqrt.f32 %v1091_v25  ;;  %vm1113_vm6 = vweird.f32 %v1091_v25 }
 0x29f   : > { %v1046_v47 = vpop.xlane.xlu1 %1045  ;;  %v967_v43 = vpop.xlane.xlu0 %966 }
 0x2a0   : > { %v1076_v48 = vmul.f32 %v1046_v47, %v5593_v12  ;;  %v1000_v45 = vmul.f32 %v5593_v12, %v967_v43  ;;  %v5750_v47 = vld [vmem:[%s8756_s6 + $0x4] ss:$0 sm:$0xff] }
 0x2a2   : > { %v1092_v52 = vadd.f32 1e-05, %v1076_v48  ;;  %v4813_v49 = vpop.eup %4812  ;;  %v5715_v50 = vsub.f32 %v945_v2, %v1000_v45 }
 0x2a3   : > { %v1108_v53 = vmul.f32 %v4813_v49, %v1091_v25  ;;  %vm1114_vm0 = vweird.f32 %v4813_v49 }
 0x2a4   : > { %4814 = vrsqrt.f32 %v1092_v52  ;;  %v1032_v21 = vmul.f32 %v5715_v50, %v5715_v50  ;;  %vm1115_vm7 = vmor %vm1113_vm6, %vm1114_vm0  ;;  %vm1123_vm9 = vweird.f32 %v1092_v52 }
 0x2a5   : > { %v1109_v17 = vmul.f32 %v4813_v49, %v1108_v53 }
 0x2a6   : > { %1053 = vadd.xlane.f32.xlu2 %v1032_v21 }
 0x2a7   : > { %v1048_v44 = vpop.xlane.xlu1 %1047  ;;  %v1110_v42 = vmul.f32 0.5, %v1109_v17 }
 0x2a8   : > { %v1077_v28 = vmul.f32 %v1048_v44, %v5593_v12  ;;  %v969_v1 = vpop.xlane.xlu0 %968 }
 0x2a9   : > { %v1111_v62 = vsub.f32 1.5, %v1110_v42  ;;  %v1001_v40 = vmul.f32 %v5593_v12, %v969_v1 }
 0x2aa   : > { %v4815_v60 = vpop.eup %4814  ;;  %v1093_v19 = vadd.f32 1e-05, %v1077_v28 }
 0x2ab   : > { %v1118_v63 = vmul.f32 %v4815_v60, %v1092_v52  ;;  %v1112_v2 = vmul.f32 %v4813_v49, %v1111_v62  ;;  %v5723_v36 = vsub.f32 %v946_v10, %v1001_v40  ;;  %vm1124_vm8 = vweird.f32 %v4815_v60 }
 0x2ac   : > { %4816 = vrsqrt.f32 %v1093_v19  ;;  %vm1125_vm10 = vmor %vm1123_vm9, %vm1124_vm8  ;;  %vm1133_vm12 = vweird.f32 %v1093_v19 }
 0x2ad   : > { %v1119_v0 = vmul.f32 %v4815_v60, %v1118_v63  ;;  %v1033_v30 = vmul.f32 %v5723_v36, %v5723_v36  ;;  %v1116_v22 = vsel %vm1115_vm7, %v4813_v49, %v1112_v2 }
 0x2ae   : > { %v1267_v8 = vmul.f32 %v1116_v22, %v5599_v23 }
 0x2af   : > { %v1120_v61 = vmul.f32 0.5, %v1119_v0  ;;  %v1050_v55 = vpop.xlane.xlu2 %1049  ;;  %1055 = vadd.xlane.f32.xlu2 %v1033_v30 }
 0x2b0   : > { %v1078_v15 = vmul.f32 %v1050_v55, %v5593_v12  ;;  %v971_v10 = vpop.xlane.xlu1 %970  ;;  %v1283_v26 = vmul.f32 %v1267_v8, %v5736_v5 }
 0x2b1   : > { %v1121_v14 = vsub.f32 1.5, %v1120_v61  ;;  %v1002_v33 = vmul.f32 %v5593_v12, %v971_v10 }
 0x2b2   : > { %v4817_v31 = vpop.eup %4816  ;;  %v1094_v57 = vadd.f32 1e-05, %v1078_v15  ;;  %v1299_v43 = vadd.f32 %v1283_v26, %v5750_v47 }
 0x2b3   : > { %v1122_v51 = vmul.f32 %v4815_v60, %v1121_v14  ;;  %v1128_v32 = vmul.f32 %v4817_v31, %v1093_v19  ;;  %v5740_v35 = vsub.f32 %v947_v6, %v1002_v33  ;;  %vm1134_vm11 = vweird.f32 %v4817_v31 }
 0x2b4   : > { %4818 = vrsqrt.f32 %v1094_v57  ;;  %vm1135_vm13 = vmor %vm1133_vm12, %vm1134_vm11  ;;  %vm1143_vm15 = vweird.f32 %v1094_v57 }
 0x2b5   : > { %v1129_v34 = vmul.f32 %v4817_v31, %v1128_v32  ;;  %v1126_v39 = vsel %vm1125_vm10, %v4815_v60, %v1122_v51  ;;  %v1034_v25 = vmul.f32 %v5740_v35, %v5740_v35 }
 0x2b6   : > { %v1268_v23 = vmul.f32 %v1126_v39, %v5609_v24 }
 0x2b7   : > { %v1130_v16 = vmul.f32 0.5, %v1129_v34  ;;  %1057 = vadd.xlane.f32.xlu0 %v1034_v25  ;;  %982 = vadd.xlane.f32.xlu2 %v953_v56 }
 0x2b8   : > { %v1284_v9 = vmul.f32 %v1268_v23, %v5736_v5  ;;  %v973_v48 = vpop.xlane.xlu2 %972 }
 0x2b9   : > { %v1131_v6 = vsub.f32 1.5, %v1130_v16  ;;  %v1003_v53 = vmul.f32 %v5593_v12, %v973_v48 }
 0x2ba   : > { %v4819_v24 = vpop.eup %4818  ;;  %v1300_v45 = vadd.f32 %v1284_v9, %v5750_v47 }
 0x2bb   : > { %v1132_v52 = vmul.f32 %v4817_v31, %v1131_v6  ;;  %v1138_v49 = vmul.f32 %v4819_v24, %v1094_v57  ;;  %v935_v21 = vpop.f32.mrf.mxu0  ;;  %v5763_v28 = vsub.f32 %v948_v18, %v1003_v53  ;;  %vm1144_vm14 = vweird.f32 %v4819_v24 }
 0x2bc   : > { %v5759_v17 = vadd.f32 %v935_v21, %v5473_v4  ;;  %v1315_v44 = vpack.c.bf16 %v1300_v45, %v1299_v43  ;;  %vm1145_vm1 = vmor %vm1143_vm15, %vm1144_vm14 }
 0x2bd   : > { %v1139_v42 = vmul.f32 %v4819_v24, %v1138_v49  ;;  %v1035_v1 = vmul.f32 %v5763_v28, %v5763_v28  ;;  %v1136_v63 = vsel %vm1135_vm13, %v4817_v31, %v1132_v52 }
 0x2be   : > { %v954_v60 = vmax.f32 %v5759_v17, 0.0  ;;  %1379 = vmatmul.bf16.vlgmr.msra.gmra.mxu1 %v1315_v44  ;;  %v1269_v13 = vmul.f32 %v1136_v63, %v5619_v59 }
 0x2bf   : > { %v1140_v62 = vmul.f32 0.5, %v1139_v42  ;;  %1059 = vadd.xlane.f32.xlu0 %v1035_v1 }
 0x2c0   : > { %984 = vadd.xlane.f32.xlu2 %v954_v60  ;;  %v975_v19 = vpop.xlane.xlu0 %974  ;;  %v1285_v59 = vmul.f32 %v1269_v13, %v5736_v5 }
 0x2c1   : > { %v1141_v40 = vsub.f32 1.5, %v1140_v62  ;;  %v1004_v2 = vmul.f32 %v5593_v12, %v975_v19 }
 0x2c3   : > { %v1142_v18 = vmul.f32 %v4819_v24, %v1141_v40  ;;  %v937_v0 = vpop.f32.mrf.mxu0  ;;  %v5777_v61 = vsub.f32 %v949_v41, %v1004_v2  ;;  %v1301_v41 = vadd.f32 %v1285_v59, %v5750_v47  ;;  %v5146_v40 = vmov 0  }
 0x2c4   : > { %v5773_v37 = vadd.f32 %v937_v0, %v5473_v4  ;;  %v1052_v4 = vpop.xlane.xlu1 %1051  ;;  %4774 = vset.pattern.permute.xlu1 %v5146_v40  ;;  %4773 = vset.pattern.permute.xlu0 %v5146_v40 }
 0x2c5   : > { %v1146_v55 = vsel %vm1145_vm1, %v4819_v24, %v1142_v18  ;;  %v1036_v15 = vmul.f32 %v5777_v61, %v5777_v61  ;;  %v1079_v26 = vmul.f32 %v1052_v4, %v5593_v12  ;;  %4775 = vset.pattern.permute.xlu2 %v5146_v40 }
 0x2c6   : > { %v955_v30 = vmax.f32 %v5773_v37, 0.0  ;;  %v1270_v22 = vmul.f32 %v1146_v55, %v5635_v38 }
 0x2c7   : > { %1061 = vadd.xlane.f32.xlu1 %v1036_v15  ;;  %v1095_v3 = vadd.f32 1e-05, %v1079_v26 }
 0x2c8   : > { %v1286_v14 = vmul.f32 %v1270_v22, %v5736_v5  ;;  %986 = vadd.xlane.f32.xlu0 %v955_v30  ;;  %v977_v54 = vpop.xlane.xlu0 %976 }
 0x2c9   : > { %v1005_v57 = vmul.f32 %v5593_v12, %v977_v54  ;;  %4820 = vrsqrt.f32 %v1095_v3  ;;  %vm1153_vm3 = vweird.f32 %v1095_v3 }
 0x2ca   : > { %v1302_v31 = vadd.f32 %v1286_v14, %v5750_v47 }
 0x2cb   : > { %v5792_v10 = vsub.f32 %v950_v20, %v1005_v57 }
 0x2cc   : > { %v1316_v38 = vpack.c.bf16 %v1302_v31, %v1301_v41 }
 0x2cd   : > { %v1037_v8 = vmul.f32 %v5792_v10, %v5792_v10 }
 0x2ce   : > { %1384 = vmatmul.bf16.gmra.mxu1 %v1316_v38 }
 0x2cf   : > { %1063 = vadd.xlane.f32.xlu1 %v1037_v8 }
 0x2d0   : > { %v979_v51 = vpop.xlane.xlu1 %978 }
 0x2d1   : > { %v1006_v32 = vmul.f32 %v5593_v12, %v979_v51 }
 0x2d3   : > { %v5799_v33 = vsub.f32 %v951_v7, %v1006_v32  ;;  %v4821_v7 = vpop.eup %4820 }
 0x2d4   : > { %v1148_v16 = vmul.f32 %v4821_v7, %v1095_v3  ;;  %vm1154_vm2 = vweird.f32 %v4821_v7 }
 0x2d5   : > { %v1038_v34 = vmul.f32 %v5799_v33, %v5799_v33  ;;  %vm1155_vm4 = vmor %vm1153_vm3, %vm1154_vm2 }
 0x2d6   : > { %v1149_v25 = vmul.f32 %v4821_v7, %v1148_v16 }
 0x2d7   : > { %1065 = vadd.xlane.f32.xlu2 %v1038_v34 }
 0x2d8   : > { %v981_v39 = vpop.xlane.xlu1 %980  ;;  %v1150_v48 = vmul.f32 0.5, %v1149_v25 }
 0x2d9   : > { %v1007_v58 = vmul.f32 %v5593_v12, %v981_v39 }
 0x2da   : > { %v1151_v27 = vsub.f32 1.5, %v1150_v48 }
 0x2db   : > { %v5806_v20 = vsub.f32 %v952_v29, %v1007_v58 }
 0x2dc   : > { %v1152_v52 = vmul.f32 %v4821_v7, %v1151_v27 }
 0x2dd   : > { %v1039_v23 = vmul.f32 %v5806_v20, %v5806_v20 }
 0x2de   : > { %v1156_v42 = vsel %vm1155_vm4, %v4821_v7, %v1152_v52 }
 0x2df   : > { %1067 = vadd.xlane.f32.xlu0 %v1039_v23  ;;  %v1271_v18 = vmul.f32 %v1156_v42, %v5652_v11  ;;  %v5849_v42 = vld [vmem:[%s8756_s6 + $0x5] ss:$0 sm:$0xff] }
 0x2e1   : > { %v1287_v11 = vmul.f32 %v1271_v18, %v5736_v5 }
 0x2e3   : > { %v1303_v8 = vadd.f32 %v1287_v11, %v5750_v47 }
 0x319   : > { %v1054_v9 = vpop.xlane.xlu2 %1053 }
 0x31a   : > { %v1080_v6 = vmul.f32 %v1054_v9, %v5593_v12 }
 0x31c   : > { %v1096_v24 = vadd.f32 1e-05, %v1080_v6 }
 0x31e   : > { %4822 = vrsqrt.f32 %v1096_v24  ;;  %vm1163_vm0 = vweird.f32 %v1096_v24 }
 0x322   : > { %v1056_v29 = vpop.xlane.xlu2 %1055 }
 0x323   : > { %v1081_v45 = vmul.f32 %v1056_v29, %v5593_v12 }
 0x324   : > { %v4823_v43 = vpop.eup %4822 }
 0x325   : > { %v1158_v49 = vmul.f32 %v4823_v43, %v1096_v24  ;;  %v1097_v53 = vadd.f32 1e-05, %v1081_v45  ;;  %vm1164_vm5 = vweird.f32 %v4823_v43 }
 0x326   : > { %vm1165_vm6 = vmor %vm1163_vm0, %vm1164_vm5 }
 0x327   : > { %v1159_v21 = vmul.f32 %v4823_v43, %v1158_v49  ;;  %4824 = vrsqrt.f32 %v1097_v53  ;;  %vm1173_vm8 = vweird.f32 %v1097_v53 }
 0x329   : > { %v1160_v44 = vmul.f32 0.5, %v1159_v21 }
 0x32a   : > { %v983_v1 = vpop.xlane.xlu2 %982  ;;  %v1058_v63 = vpop.xlane.xlu0 %1057 }
 0x32b   : > { %v1161_v62 = vsub.f32 1.5, %v1160_v44  ;;  %v1008_v19 = vmul.f32 %v5593_v12, %v983_v1  ;;  %v1082_v13 = vmul.f32 %v1058_v63, %v5593_v12 }
 0x32d   : > { %v1162_v2 = vmul.f32 %v4823_v43, %v1161_v62  ;;  %v4825_v0 = vpop.eup %4824  ;;  %v5818_v55 = vsub.f32 %v953_v56, %v1008_v19  ;;  %v1098_v22 = vadd.f32 1e-05, %v1082_v13 }
 0x32e   : > { %v1168_v59 = vmul.f32 %v4825_v0, %v1097_v53  ;;  %vm1174_vm7 = vweird.f32 %v4825_v0 }
 0x32f   : > { %v1166_v15 = vsel %vm1165_vm6, %v4823_v43, %v1162_v2  ;;  %4826 = vrsqrt.f32 %v1098_v22  ;;  %v1040_v14 = vmul.f32 %v5818_v55, %v5818_v55  ;;  %vm1175_vm9 = vmor %vm1173_vm8, %vm1174_vm7  ;;  %vm1183_vm11 = vweird.f32 %v1098_v22 }
 0x330   : > { %v1272_v4 = vmul.f32 %v1166_v15, %v5715_v50  ;;  %v1169_v54 = vmul.f32 %v4825_v0, %v1168_v59 }
 0x331   : > { %1069 = vadd.xlane.f32.xlu1 %v1040_v14 }
 0x332   : > { %v1288_v41 = vmul.f32 %v1272_v4, %v5736_v5  ;;  %v1170_v31 = vmul.f32 0.5, %v1169_v54  ;;  %v1060_v57 = vpop.xlane.xlu0 %1059  ;;  %v1805_v4 = vld [vmem:[%s5863_s26 + $0x8] sm:$0xff] }
 0x333   : > { %v985_v46 = vpop.xlane.xlu2 %984  ;;  %v1083_v56 = vmul.f32 %v1060_v57, %v5593_v12 }
 0x334   : > { %v1009_v38 = vmul.f32 %v5593_v12, %v985_v46  ;;  %v1304_v51 = vadd.f32 %v1288_v41, %v5750_v47  ;;  %v1171_v32 = vsub.f32 1.5, %v1170_v31 }
 0x335   : > { %v4827_v34 = vpop.eup %4826  ;;  %v1099_v50 = vadd.f32 1e-05, %v1083_v56 }
 0x336   : > { %v5831_v39 = vsub.f32 %v954_v60, %v1009_v38  ;;  %v1317_v58 = vpack.c.bf16 %v1304_v51, %v1303_v8  ;;  %v1172_v23 = vmul.f32 %v4825_v0, %v1171_v32  ;;  %v1178_v26 = vmul.f32 %v4827_v34, %v1098_v22 }
 0x337   : > { %4828 = vrsqrt.f32 %v1099_v50  ;;  %vm1184_vm10 = vweird.f32 %v4827_v34  ;;  %vm1193_vm14 = vweird.f32 %v1099_v50 }
 0x338   : > { %1389 = vmatmul.bf16.vlgmr.msra.gmra.mxu3 %v1317_v58  ;;  %v1041_v3 = vmul.f32 %v5831_v39, %v5831_v39  ;;  %v1179_v7 = vmul.f32 %v4827_v34, %v1178_v26  ;;  %v1176_v60 = vsel %vm1175_vm9, %v4825_v0, %v1172_v23  ;;  %vm1185_vm12 = vmor %vm1183_vm11, %vm1184_vm10 }
 0x339   : > { %v1273_v45 = vmul.f32 %v1176_v60, %v5723_v36 }
 0x33a   : > { %1071 = vadd.xlane.f32.xlu2 %v1041_v3  ;;  %v1180_v25 = vmul.f32 0.5, %v1179_v7  ;;  %v1062_v9 = vpop.xlane.xlu1 %1061  ;;  %v1804_v7 = vld [vmem:[%s5863_s26] sm:$0xff] }
 0x33b   : > { %v5835_v16 = vpop.f32.mrf.mxu1  ;;  %v987_v17 = vpop.xlane.xlu0 %986  ;;  %v1084_v6 = vmul.f32 %v1062_v9, %v5593_v12 }
 0x33c   : > { %v1010_v24 = vmul.f32 %v5593_v12, %v987_v17  ;;  %v1181_v48 = vsub.f32 1.5, %v1180_v25 }
 0x33d   : > { %v4829_v27 = vpop.eup %4828  ;;  %v1100_v29 = vadd.f32 1e-05, %v1084_v6 }
 0x33e   : > { %v5841_v43 = vsub.f32 %v955_v30, %v1010_v24  ;;  %v1182_v52 = vmul.f32 %v4827_v34, %v1181_v48  ;;  %v1188_v49 = vmul.f32 %v4829_v27, %v1099_v50  ;;  %v1289_v30 = vmul.f32 %v1273_v45, %v5736_v5 }
 0x33f   : > { %4830 = vrsqrt.f32 %v1100_v29  ;;  %vm1194_vm13 = vweird.f32 %v4829_v27  ;;  %vm1203_vm2 = vweird.f32 %v1100_v29 }
 0x340   : > { %v1042_v53 = vmul.f32 %v5841_v43, %v5841_v43  ;;  %v1189_v21 = vmul.f32 %v4829_v27, %v1188_v49  ;;  %v1186_v44 = vsel %vm1185_vm12, %v4827_v34, %v1182_v52  ;;  %v1305_v0 = vadd.f32 %v1289_v30, %v5750_v47  ;;  %vm1195_vm15 = vmor %vm1193_vm14, %vm1194_vm13  ;;  %v1806_v34 = vld [vmem:[%s5863_s26 + $0x10] sm:$0xff] }
 0x341   : > { %v1274_v36 = vmul.f32 %v1186_v44, %v5740_v35 }
 0x342   : > { %1073 = vadd.xlane.f32.xlu0 %v1042_v53  ;;  %v1190_v62 = vmul.f32 0.5, %v1189_v21  ;;  %v1064_v1 = vpop.xlane.xlu1 %1063 }
 0x343   : > { %v1382_v37 = vpop.f32.mrf.mxu1  ;;  %v1085_v40 = vmul.f32 %v1064_v1, %v5593_v12  ;;  %v1290_v19 = vmul.f32 %v1274_v36, %v5736_v5 }
 0x344   : > { %v5854_v63 = vadd.f32 %v1382_v37, %v5849_v42  ;;  %v1191_v13 = vsub.f32 1.5, %v1190_v62 }
 0x345   : > { %v4831_v35 = vpop.eup %4830  ;;  %v1101_v2 = vadd.f32 1e-05, %v1085_v40  ;;  %v1306_v22 = vadd.f32 %v1290_v19, %v5750_v47 }
 0x346   : > { %v1421_v18 = vmax.f32 %v5854_v63, 0.0  ;;  %v1192_v59 = vmul.f32 %v4829_v27, %v1191_v13  ;;  %v1198_v15 = vmul.f32 %v4831_v35, %v1100_v29  ;;  %vm1204_vm1 = vweird.f32 %v4831_v35 }
 0x347   : > { %4832 = vrsqrt.f32 %v1101_v2  ;;  %v1318_v14 = vpack.c.bf16 %v1306_v22, %v1305_v0  ;;  %vm1205_vm3 = vmor %vm1203_vm2, %vm1204_vm1  ;;  %vm1213_vm5 = vweird.f32 %v1101_v2 }
 0x348   : > { %1438 = vadd.xlane.f32.xlu2 %v1421_v18  ;;  %v1199_v11 = vmul.f32 %v4831_v35, %v1198_v15  ;;  %v1196_v31 = vsel %vm1195_vm15, %v4829_v27, %v1192_v59 }
 0x349   : > { %1394 = vmatmul.bf16.gmra.mxu3 %v1318_v14  ;;  %v1275_v8 = vmul.f32 %v1196_v31, %v5763_v28 }
 0x34a   : > { %v1200_v54 = vmul.f32 0.5, %v1199_v11  ;;  %v1066_v41 = vpop.xlane.xlu2 %1065  ;;  %1827 = vperm.xlu1 %4774, %v1805_v4  }
 0x34b   : > { %v1086_v57 = vmul.f32 %v1066_v41, %v5593_v12  ;;  %v1291_v26 = vmul.f32 %v1275_v8, %v5736_v5  ;;  %v1385_v1 = vpop.f32.mrf.mxu1 }
 0x34c   : > { %v1201_v46 = vsub.f32 1.5, %v1200_v54  ;;  %v5890_v40 = vadd.f32 %v1385_v1, %v5849_v42 }
 0x34d   : > { %v4833_v56 = vpop.eup %4832  ;;  %v1102_v38 = vadd.f32 1e-05, %v1086_v57  ;;  %v1307_v28 = vadd.f32 %v1291_v26, %v5750_v47 }
 0x34e   : > { %v1202_v51 = vmul.f32 %v4831_v35, %v1201_v46  ;;  %v1208_v32 = vmul.f32 %v4833_v56, %v1101_v2  ;;  %vm1214_vm4 = vweird.f32 %v4833_v56  ;;  %v1422_v13 = vmax.f32 %v5890_v40, 0.0 }
 0x34f   : > { %4834 = vrsqrt.f32 %v1102_v38  ;;  %vm1215_vm0 = vmor %vm1213_vm5, %vm1214_vm4  ;;  %vm1223_vm7 = vweird.f32 %v1102_v38 }
 0x350   : > { %v1209_v50 = vmul.f32 %v4833_v56, %v1208_v32  ;;  %v1206_v58 = vsel %vm1205_vm3, %v4831_v35, %v1202_v51 }
 0x351   : > { %v1276_v23 = vmul.f32 %v1206_v58, %v5777_v61 }
 0x352   : > { %v1210_v3 = vmul.f32 0.5, %v1209_v50  ;;  %1832 = vperm.xlu1 %4774, %v1806_v34   ;;  %v1068_v2 = vpop.xlane.xlu0 %1067 }
 0x353   : > { %v1292_v25 = vmul.f32 %v1276_v23, %v5736_v5  ;;  %v1387_v19 = vpop.f32.mrf.mxu1  ;;  %v1087_v0 = vmul.f32 %v1068_v2, %v5593_v12 }
 0x354   : > { %v1211_v9 = vsub.f32 1.5, %v1210_v3  ;;  %v5897_v35 = vadd.f32 %v1387_v19, %v5849_v42 }
 0x355   : > { %v4835_v17 = vpop.eup %4834  ;;  %v1308_v60 = vadd.f32 %v1292_v25, %v5750_v47  ;;  %v1103_v22 = vadd.f32 1e-05, %v1087_v0 }
 0x356   : > { %1822 = vperm.xlu0 %4773, %v1804_v7   ;;  %v1212_v6 = vmul.f32 %v4833_v56, %v1211_v9  ;;  %v1218_v24 = vmul.f32 %v4835_v17, %v1102_v38  ;;  %vm1224_vm6 = vweird.f32 %v4835_v17 }
 0x357   : > { %v1319_v48 = vpack.c.bf16 %v1308_v60, %v1307_v28  ;;  %vm1225_vm8 = vmor %vm1223_vm7, %vm1224_vm6  ;;  %4836 = vrsqrt.f32 %v1103_v22  ;;  %vm1233_vm10 = vweird.f32 %v1103_v22 }
 0x358   : > { %v1219_v61 = vmul.f32 %v4835_v17, %v1218_v24  ;;  %v1216_v29 = vsel %vm1215_vm0, %v4833_v56, %v1212_v6 }
 0x359   : > { %1399 = vmatmul.bf16.gmra.mxu3 %v1319_v48  ;;  %v1277_v52 = vmul.f32 %v1216_v29, %v5792_v10  ;;  %v5887_v10 = vadd.f32 %v5835_v16, %v5849_v42  ;;  %v1423_v16 = vmax.f32 %v5897_v35, 0.0 }
 0x35a   : > { %v1220_v27 = vmul.f32 0.5, %v1219_v61 }
 0x35b   : > { %v1293_v44 = vmul.f32 %v1277_v52, %v5736_v5 }
 0x35c   : > { %v1221_v45 = vsub.f32 1.5, %v1220_v27 }
 0x35d   : > { %v1309_v36 = vadd.f32 %v1293_v44, %v5750_v47  ;;  %v4837_v59 = vpop.eup %4836 }
 0x35e   : > { %v1222_v49 = vmul.f32 %v4835_v17, %v1221_v45  ;;  %v1228_v15 = vmul.f32 %v4837_v59, %v1103_v22  ;;  %vm1234_vm9 = vweird.f32 %v4837_v59 }
 0x35f   : > { %vm1235_vm11 = vmor %vm1233_vm10, %vm1234_vm9 }
 0x360   : > { %v1226_v53 = vsel %vm1225_vm8, %v4835_v17, %v1222_v49  ;;  %v1229_v14 = vmul.f32 %v4837_v59, %v1228_v15 }
 0x361   : > { %v1278_v21 = vmul.f32 %v1226_v53, %v5799_v33  ;;  %v1420_v33 = vmax.f32 %v5887_v10, 0.0 }
 0x362   : > { %v1230_v41 = vmul.f32 0.5, %v1229_v14 }
 0x363   : > { %v1294_v37 = vmul.f32 %v1278_v21, %v5736_v5 }
 0x364   : > { %v1231_v31 = vsub.f32 1.5, %v1230_v41 }
 0x365   : > { %v1310_v30 = vadd.f32 %v1294_v37, %v5750_v47 }
 0x366   : > { %v1232_v8 = vmul.f32 %v4837_v59, %v1231_v31 }
 0x367   : > { %v1320_v62 = vpack.c.bf16 %v1310_v30, %v1309_v36 }
 0x368   : > { %v1236_v58 = vsel %vm1235_vm11, %v4837_v59, %v1232_v8 }
 0x369   : > { %1404 = vmatmul.bf16.gmra.mxu3 %v1320_v62  ;;  %v1279_v25 = vmul.f32 %v1236_v58, %v5806_v20 }
 0x36b   : > { %v1295_v61 = vmul.f32 %v1279_v25, %v5736_v5 }
 0x36d   : > { %v1311_v49 = vadd.f32 %v1295_v61, %v5750_v47 }
 0x37c   : > { %1436 = vadd.xlane.f32.xlu1 %v1420_v33 }
 0x380   : > { %1440 = vadd.xlane.f32.xlu0 %v1422_v13 }
 0x384   : > { %1442 = vadd.xlane.f32.xlu1 %v1423_v16 }
 0x3a4   : > { %v1070_v4 = vpop.xlane.xlu1 %1069 }
 0x3a5   : > { %v1088_v11 = vmul.f32 %v1070_v4, %v5593_v12 }
 0x3a7   : > { %v1104_v54 = vadd.f32 1e-05, %v1088_v11 }
 0x3a9   : > { %4838 = vrsqrt.f32 %v1104_v54  ;;  %vm1243_vm13 = vweird.f32 %v1104_v54 }
 0x3ad   : > { %v1072_v57 = vpop.xlane.xlu2 %1071 }
 0x3ae   : > { %v1089_v46 = vmul.f32 %v1072_v57, %v5593_v12 }
 0x3af   : > { %v4839_v56 = vpop.eup %4838 }
 0x3b0   : > { %v1105_v38 = vadd.f32 1e-05, %v1089_v46  ;;  %v1238_v51 = vmul.f32 %v4839_v56, %v1104_v54  ;;  %vm1244_vm12 = vweird.f32 %v4839_v56 }
 0x3b1   : > { %vm1245_vm14 = vmor %vm1243_vm13, %vm1244_vm12 }
 0x3b2   : > { %4840 = vrsqrt.f32 %v1105_v38  ;;  %v1239_v32 = vmul.f32 %v4839_v56, %v1238_v51  ;;  %vm1253_vm1 = vweird.f32 %v1105_v38 }
 0x3b4   : > { %v1240_v34 = vmul.f32 0.5, %v1239_v32  ;;  %v4568_v32 = vld [vmem:[%s8755_s5 + $0x1c0] sm:$0xf] }
 0x3b5   : > { %v1074_v50 = vpop.xlane.xlu0 %1073 }
 0x3b6   : > { %v1090_v23 = vmul.f32 %v1074_v50, %v5593_v12  ;;  %v1241_v26 = vsub.f32 1.5, %v1240_v34  ;;  %v4740_v34 = vld [vmem:[%s8755_s5 + $0x1cc] sm:$0xf0] }
 0x3b7   : > { %v4569_v58 = vor.u32 %v4740_v34, %v4568_v32 }
 0x3b8   : > { %v4841_v3 = vpop.eup %4840  ;;  %v1106_v7 = vadd.f32 1e-05, %v1090_v23  ;;  %v1242_v9 = vmul.f32 %v4839_v56, %v1241_v26  ;;  %v4552_v23 = vld [vmem:[%s8755_s5 + $0x1a0] sm:$0xf]  ;;  %v4736_v26 = vld [vmem:[%s8755_s5 + $0x1ac] sm:$0xf0] }
 0x3b9   : > { %v1248_v17 = vmul.f32 %v4841_v3, %v1105_v38  ;;  %vm1254_vm15 = vweird.f32 %v4841_v3  ;;  %v4744_v38 = vld [vmem:[%s8755_s5 + $0x1ec] sm:$0xf0]  ;;  %v4553_v25 = vor.u32 %v4736_v26, %v4552_v23 }
 0x3ba   : > { %4842 = vrsqrt.f32 %v1106_v7  ;;  %v1246_v6 = vsel %vm1245_vm14, %v4839_v56, %v1242_v9  ;;  %vm1255_vm2 = vmor %vm1253_vm1, %vm1254_vm15  ;;  %vm1263_vm4 = vweird.f32 %v1106_v7 }
 0x3bb   : > { %v1249_v28 = vmul.f32 %v4841_v3, %v1248_v17  ;;  %v1390_v60 = vpop.f32.mrf.mxu3  ;;  %v1280_v48 = vmul.f32 %v1246_v6, %v5818_v55  ;;  %v4732_v17 = vld [vmem:[%s8755_s5 + $0x18c] sm:$0xf0] }
 0x3bc   : > { %v5910_v24 = vadd.f32 %v1390_v60, %v5849_v42  ;;  %v4520_v60 = vld [vmem:[%s8755_s5 + $0x160] sm:$0xf]  ;;  %v4728_v6 = vld [vmem:[%s8755_s5 + $0x16c] sm:$0xf0] }
 0x3bd   : > { %v1250_v27 = vmul.f32 0.5, %v1249_v28  ;;  %v1296_v20 = vmul.f32 %v1280_v48, %v5736_v5 }
 0x3be   : > { %v1424_v29 = vmax.f32 %v5910_v24, 0.0 }
 0x3bf   : > { %v1251_v45 = vsub.f32 1.5, %v1250_v27  ;;  %v1312_v53 = vadd.f32 %v1296_v20, %v5750_v47  ;;  %v4521_v27 = vor.u32 %v4728_v6, %v4520_v60 }
 0x3c0   : > { %v4843_v52 = vpop.eup %4842  ;;  %1444 = vadd.xlane.f32.xlu1 %v1424_v29 }
 0x3c1   : > { %v1252_v21 = vmul.f32 %v4841_v3, %v1251_v45  ;;  %v1258_v44 = vmul.f32 %v4843_v52, %v1106_v7  ;;  %v1321_v55 = vpack.c.bf16 %v1312_v53, %v1311_v49  ;;  %vm1264_vm3 = vweird.f32 %v4843_v52  ;;  %v4504_v45 = vld [vmem:[%s8755_s5 + $0x140] sm:$0xf] }
 0x3c2   : > { %vm1265_vm5 = vmor %vm1263_vm4, %vm1264_vm3  ;;  %v4488_v53 = vld [vmem:[%s8755_s5 + $0x120] sm:$0xf] }
 0x3c3   : > { %v1259_v37 = vmul.f32 %v4843_v52, %v1258_v44  ;;  %v1392_v36 = vpop.f32.mrf.mxu3  ;;  %1409 = vmatmul.bf16.gmra.mxu3 %v1321_v55  ;;  %v1256_v1 = vsel %vm1255_vm2, %v4841_v3, %v1252_v21  ;;  %v4720_v21 = vld [vmem:[%s8755_s5 + $0x12c] sm:$0xf0] }
 0x3c4   : > { %v5921_v30 = vadd.f32 %v1392_v36, %v5849_v42  ;;  %v1281_v0 = vmul.f32 %v1256_v1, %v5831_v39  ;;  %v1788_v36 = vld [vmem:[%s6003_s14] sm:$0xff] }
 0x3c5   : > { %v1260_v62 = vmul.f32 0.5, %v1259_v37  ;;  %v1789_v37 = vld [vmem:[%s6003_s14 + $0x8] sm:$0xff] }
 0x3c6   : > { %v1425_v19 = vmax.f32 %v5921_v30, 0.0  ;;  %v1297_v14 = vmul.f32 %v1281_v0, %v5736_v5  ;;  %v4716_v0 = vld [vmem:[%s8755_s5 + $0x10c] sm:$0xf0] }
 0x3c7   : > { %v1261_v2 = vsub.f32 1.5, %v1260_v62  ;;  %v4489_v62 = vor.u32 %v4720_v21, %v4488_v53  ;;  %v1811_v21 = vld [vmem:[%s5863_s26 + $0x38] sm:$0xff] }
 0x3c8   : > { %1446 = vadd.xlane.f32.xlu2 %v1425_v19  ;;  %v1313_v31 = vadd.f32 %v1297_v14, %v5750_v47 }
 0x3c9   : > { %v1262_v22 = vmul.f32 %v4843_v52, %v1261_v2  ;;  %v4472_v2 = vld [vmem:[%s8755_s5 + $0x100] sm:$0xf] }
 0x3cb   : > { %v1266_v59 = vsel %vm1265_vm5, %v4843_v52, %v1262_v22  ;;  %v4724_v52 = vld [vmem:[%s8755_s5 + $0x14c] sm:$0xf0]  ;;  %v1828_v22 = vpop.permute.xlu1 %1827 }
 0x3cc   : > { %v1282_v15 = vmul.f32 %v1266_v59, %v5841_v43  ;;  %v1395_v4 = vpop.f32.mrf.mxu3  ;;  %v1439_v43 = vpop.xlane.xlu2 %1438  ;;  %v4505_v49 = vor.u32 %v4724_v52, %v4504_v45  ;;  %v1813_v45 = vld [vmem:[%s5863_s26 + $0x48] sm:$0xff]  ;;  %v1807_v52 = vld [vmem:[%s5863_s26 + $0x18] sm:$0xff] }
 0x3cd   : > { %v5930_v11 = vadd.f32 %v1395_v4, %v5849_v42  ;;  %v1823_v59 = vpop.permute.xlu0 %1822  ;;  %v1808_v4 = vld [vmem:[%s5863_s26 + $0x20] sm:$0xff] }
 0x3ce   : > { %v1298_v54 = vmul.f32 %v1282_v15, %v5736_v5  ;;  %v4584_v5 = vld [vmem:[%s8755_s5 + $0x1e0] sm:$0xf]  ;;  %v6023_v15 = vmul.f32 %v1828_v22, %v1789_v37  ;;  %v6025_v14 = vmul.f32 %v1823_v59, %v1788_v36 }
 0x3cf   : > { %v1426_v41 = vmax.f32 %v5930_v11, 0.0  ;;  %v4585_v51 = vor.u32 %v4744_v38, %v4584_v5  ;;  %v4710_v11 = vld [vmem:[%s8755_s5 + $0xe4] sm:$0xf] }
 0x3d0   : > { %v1314_v39 = vadd.f32 %v1298_v54, %v5750_v47  ;;  %v1469_v47 = vmul.f32 %v1439_v43, %v5593_v12  ;;  %v4473_v54 = vor.u32 %v4716_v0, %v4472_v2 }
 0x3d1   : > { %1448 = vadd.xlane.f32.xlu2 %v1426_v41  ;;  %2374 = vmatpush.bf16.msrb.mxu3 %v4585_v51 }
 0x3d2   : > { %v1322_v57 = vpack.c.bf16 %v1314_v39, %v1313_v31  ;;  %v5959_v50 = vsub.f32 %v1421_v18, %v1469_v47  ;;  %v4536_v18 = vld [vmem:[%s8755_s5 + $0x180] sm:$0xf]  ;;  %v6032_v39 = vpack.c.bf16 %v6023_v15, %v6025_v14 }
 0x3d3   : > { %v4537_v28 = vor.u32 %v4732_v17, %v4536_v18  ;;  %v6048_v51 = vpop.permute.xlu1 %1832 }
 0x3d4   : > { %1414 = vmatmul.bf16.gmra.mxu3 %v1322_v57  ;;  %v1397_v46 = vpop.f32.mrf.mxu3  ;;  %v1501_v63 = vmul.f32 %v5959_v50, %v5959_v50 }
 0x3d5   : > { %v5939_v56 = vadd.f32 %v1397_v46, %v5849_v42  ;;  %2375 = vmatpush.bf16.msrb.mxu3 %v4569_v58 }
 0x3d7   : > { %v1427_v8 = vmax.f32 %v5939_v56, 0.0 }
 0x3d9   : > { %1450 = vadd.xlane.f32.xlu0 %v1427_v8  ;;  %2376 = vmatpush.bf16.msrb.mxu3 %v4553_v25 }
 0x3dc   : > { %v1400_v3 = vpop.f32.mrf.mxu3 }
 0x3dd   : > { %v5968_v7 = vadd.f32 %v1400_v3, %v5849_v42  ;;  %2377 = vmatpush.bf16.msrb.mxu3 %v4537_v28 }
 0x3df   : > { %v1428_v9 = vmax.f32 %v5968_v7, 0.0 }
 0x3e1   : > { %1452 = vadd.xlane.f32.xlu1 %v1428_v9  ;;  %1518 = vadd.xlane.f32.xlu0 %v1501_v63 }
 0x3e2   : > { %2378 = vmatpush.bf16.msrb.mxu3 %v4521_v27 }
 0x3e4   : > { %v1402_v48 = vpop.f32.mrf.mxu3 }
 0x3e5   : > { %v5988_v61 = vadd.f32 %v1402_v48, %v5849_v42 }
 0x3e6   : > { %2379 = vmatpush.bf16.msrb.mxu3 %v4505_v49  ;;  %v1810_v49 = vld [vmem:[%s5863_s26 + $0x30] sm:$0xff] }
 0x3e7   : > { %v1429_v20 = vmax.f32 %v5988_v61, 0.0 }
 0x3e9   : > { %1454 = vadd.xlane.f32.xlu2 %v1429_v20 }
 0x3ea   : > { %2380 = vmatpush.bf16.msrb.mxu3 %v4489_v62 }
 0x3ec   : > { %v1405_v44 = vpop.f32.mrf.mxu3 }
 0x3ed   : > { %v6012_v55 = vadd.f32 %v1405_v44, %v5849_v42 }
 0x3ee   : > { %2381 = vmatpush.bf16.msrb.mxu3 %v4473_v54 }
 0x3ef   : > { %v1430_v1 = vmax.f32 %v6012_v55, 0.0  ;;  %v1437_v32 = vpop.xlane.xlu1 %1436 }
 0x3f0   : > { %v1468_v23 = vmul.f32 %v1437_v32, %v5593_v12 }
 0x3f1   : > { %1456 = vadd.xlane.f32.xlu2 %v1430_v1  ;;  %2382 = vmatmul.bf16.vlgmr.msrb.gmra.mxu3 %v6032_v39 }
 0x3f3   : > { %v1441_v46 = vpop.xlane.xlu0 %1440 }
 0x3f4   : > { %v1407_v31 = vpop.f32.mrf.mxu3  ;;  %v1470_v5 = vmul.f32 %v1441_v46, %v5593_v12  ;;  %v4456_v46 = vld [vmem:[%s8755_s5 + $0xe0] sm:$0xf] }
 0x3f5   : > { %v6035_v57 = vadd.f32 %v1407_v31, %v5849_v42  ;;  %1842 = vperm.xlu0 %4773, %v1808_v4  }
 0x3f6   : > { %v6044_v38 = vsub.f32 %v1422_v13, %v1470_v5  ;;  %v6059_v13 = vsub.f32 %v1420_v33, %v1468_v23  ;;  %v4712_v5 = vld [vmem:[%s8755_s5 + $0xec] sm:$0xf0]  ;;  %v4440_v23 = vld [vmem:[%s8755_s5 + $0xc0] sm:$0xf] }
 0x3f7   : > { %v1431_v43 = vmax.f32 %v6035_v57, 0.0  ;;  %v1443_v25 = vpop.xlane.xlu1 %1442 }
 0x3f8   : > { %v1502_v47 = vmul.f32 %v6044_v38, %v6044_v38  ;;  %v1471_v28 = vmul.f32 %v1443_v25, %v5593_v12  ;;  %v1500_v10 = vmul.f32 %v6059_v13, %v6059_v13 }
 0x3f9   : > { %1458 = vadd.xlane.f32.xlu2 %v1431_v43 }
 0x3fa   : > { %v6079_v56 = vsub.f32 %v1423_v16, %v1471_v28  ;;  %v1809_v16 = vld [vmem:[%s5863_s26 + $0x28] sm:$0xff] }
 0x3fc   : > { %v1503_v27 = vmul.f32 %v6079_v56, %v6079_v56 }
 0x41f   : > { %1520 = vadd.xlane.f32.xlu0 %v1502_v47  ;;  %v4457_v47 = vor.u32 %v4712_v5, %v4456_v46  ;;  %v4376_v5 = vld [vmem:[%s8755_s5 + $0x40] sm:$0xf] }
 0x421   : > { %2325 = vmatpush.bf16.msrb.mxu1 %v4457_v47  ;;  %4754 = vmatpush.bf16.msra.mxu2 %v4457_v47  ;;  %v4692_v47 = vld [vmem:[%s8755_s5 + $0x4c] sm:$0xf0] }
 0x433   : > { %v1445_v31 = vpop.xlane.xlu1 %1444 }
 0x43b   : > { %v1447_v35 = vpop.xlane.xlu2 %1446 }
 0x43c   : > { %v1473_v25 = vmul.f32 %v1447_v35, %v5593_v12 }
 0x444   : > { %v1449_v53 = vpop.xlane.xlu2 %1448 }
 0x446   : > { %v1410_v34 = vpop.f32.mrf.mxu3 }
 0x447   : > { %v6051_v58 = vadd.f32 %v1410_v34, %v5849_v42 }
 0x449   : > { %v1432_v26 = vmax.f32 %v6051_v58, 0.0  ;;  %v4742_v58 = vld [vmem:[%s8755_s5 + $0x1e4] sm:$0xf] }
 0x44b   : > { %1460 = vadd.xlane.f32.xlu2 %v1432_v26 }
 0x44c   : > { %v1451_v40 = vpop.xlane.xlu0 %1450 }
 0x44d   : > { %v1475_v3 = vmul.f32 %v1451_v40, %v5593_v12  ;;  %v4708_v40 = vld [vmem:[%s8755_s5 + $0xcc] sm:$0xf0] }
 0x44e   : > { %v1412_v63 = vpop.f32.mrf.mxu3  ;;  %v4441_v24 = vor.u32 %v4708_v40, %v4440_v23  ;;  %v1812_v40 = vld [vmem:[%s5863_s26 + $0x40] sm:$0xff] }
 0x44f   : > { %v6064_v18 = vsub.f32 %v1427_v8, %v1475_v3  ;;  %v6067_v17 = vadd.f32 %v1412_v63, %v5849_v42  ;;  %v4706_v3 = vld [vmem:[%s8755_s5 + $0xc4] sm:$0xf] }
 0x450   : > { %2326 = vmatpush.bf16.msrb.mxu1 %v4441_v24  ;;  %4755 = vmatpush.bf16.msra.mxu2 %v4441_v24  ;;  %v4688_v24 = vld [vmem:[%s8755_s5 + $0x2c] sm:$0xf0] }
 0x451   : > { %v1433_v60 = vmax.f32 %v6067_v17, 0.0  ;;  %v1507_v33 = vmul.f32 %v6064_v18, %v6064_v18 }
 0x453   : > { %1462 = vadd.xlane.f32.xlu1 %v1433_v60  ;;  %1516 = vadd.xlane.f32.xlu2 %v1500_v10  ;;  %v4424_v10 = vld [vmem:[%s8755_s5 + $0xa0] sm:$0xf] }
 0x454   : > { %1530 = vadd.xlane.f32.xlu0 %v1507_v33  ;;  %v4704_v33 = vld [vmem:[%s8755_s5 + $0xac] sm:$0xf0]  ;;  %v1519_v35 = vpop.xlane.xlu0 %1518 }
 0x455   : > { %v1549_v30 = vmul.f32 %v1519_v35, %v5593_v12  ;;  %v4344_v35 = vld [vmem:[%s8755_s5] sm:$0xf] }
 0x457   : > { %v1415_v8 = vpop.f32.mrf.mxu3 }
 0x458   : > { %v6082_v6 = vadd.f32 %v1415_v8, %v5849_v42  ;;  %v4702_v8 = vld [vmem:[%s8755_s5 + $0xa4] sm:$0xf] }
 0x45a   : > { %v1434_v48 = vmax.f32 %v6082_v6, 0.0 }
 0x45b   : > { %1522 = vadd.xlane.f32.xlu1 %v1503_v27  ;;  %v4425_v27 = vor.u32 %v4704_v33, %v4424_v10 }
 0x45c   : > { %1464 = vadd.xlane.f32.xlu2 %v1434_v48  ;;  %v1455_v44 = vpop.xlane.xlu2 %1454 }
 0x45d   : > { %v1477_v37 = vmul.f32 %v1455_v44, %v5593_v12  ;;  %2327 = vmatpush.bf16.msrb.mxu1 %v4425_v27  ;;  %4756 = vmatpush.bf16.msra.mxu2 %v4425_v27  ;;  %v4410_v44 = vld [vmem:[%s8755_s5 + $0x90] sm:$0xf0] }
 0x45f   : > { %v6097_v36 = vsub.f32 %v1429_v20, %v1477_v37  ;;  %v1417_v59 = vpop.f32.mrf.mxu3  ;;  %v1474_v20 = vmul.f32 %v1449_v53, %v5593_v12  ;;  %v4700_v53 = vld [vmem:[%s8755_s5 + $0x8c] sm:$0xf0] }
 0x460   : > { %v6107_v4 = vadd.f32 %v1417_v59, %v5849_v42  ;;  %v4694_v59 = vld [vmem:[%s8755_s5 + $0x64] sm:$0xf] }
 0x461   : > { %v1509_v0 = vmul.f32 %v6097_v36, %v6097_v36  ;;  %v6117_v55 = vsub.f32 %v1426_v41, %v1474_v20  ;;  %v4458_v41 = vld [vmem:[%s8755_s5 + $0xf0] sm:$0xf0] }
 0x462   : > { %v1435_v54 = vmax.f32 %v6107_v4, 0.0  ;;  %v4461_v34 = vor.u32 %v4710_v11, %v4458_v41  ;;  %v4377_v11 = vor.u32 %v4692_v47, %v4376_v5  ;;  %v4690_v41 = vld [vmem:[%s8755_s5 + $0x44] sm:$0xf]  ;;  %v4570_v47 = vld [vmem:[%s8755_s5 + $0x1d0] sm:$0xf0] }
 0x463   : > { %v1506_v42 = vmul.f32 %v6117_v55, %v6117_v55  ;;  %v4738_v5 = vld [vmem:[%s8755_s5 + $0x1c4] sm:$0xf] }
 0x464   : > { %v1457_v62 = vpop.xlane.xlu2 %1456  ;;  %2423 = vmatpush.bf16.msrb.mxu0 %v4461_v34  ;;  %v4378_v34 = vld [vmem:[%s8755_s5 + $0x50] sm:$0xf0] }
 0x465   : > { %v1478_v2 = vmul.f32 %v1457_v62, %v5593_v12  ;;  %v4381_v23 = vor.u32 %v4690_v41, %v4378_v34  ;;  %v1814_v41 = vld [vmem:[%s5863_s26 + $0x50] sm:$0xff]  ;;  %v4573_v34 = vor.u32 %v4738_v5, %v4570_v47 }
 0x467   : > { %v6104_v22 = vsub.f32 %v1430_v1, %v1478_v2  ;;  %v1472_v1 = vmul.f32 %v1445_v31, %v5593_v12  ;;  %v4392_v2 = vld [vmem:[%s8755_s5 + $0x60] sm:$0xf]  ;;  %v4394_v31 = vld [vmem:[%s8755_s5 + $0x70] sm:$0xf0] }
 0x468   : > { %1867 = vperm.xlu0 %4773, %v1813_v45   ;;  %v4426_v45 = vld [vmem:[%s8755_s5 + $0xb0] sm:$0xf0]  ;;  %v4397_v46 = vor.u32 %v4694_v59, %v4394_v31 }
 0x469   : > { %v1510_v61 = vmul.f32 %v6104_v22, %v6104_v22  ;;  %v6136_v32 = vsub.f32 %v1424_v29, %v1472_v1  ;;  %v4442_v29 = vld [vmem:[%s8755_s5 + $0xd0] sm:$0xf0] }
 0x46a   : > { %v4445_v28 = vor.u32 %v4706_v3, %v4442_v29  ;;  %v4360_v3 = vld [vmem:[%s8755_s5 + $0x20] sm:$0xf]  ;;  %v4686_v29 = vld [vmem:[%s8755_s5 + $0x24] sm:$0xf] }
 0x46b   : > { %v1504_v63 = vmul.f32 %v6136_v32, %v6136_v32 }
 0x46c   : > { %2424 = vmatpush.bf16.msrb.mxu0 %v4445_v28  ;;  %v6198_v1 = vpop.xlane.xlu2 %1458  ;;  %v4362_v28 = vld [vmem:[%s8755_s5 + $0x30] sm:$0xf0] }
 0x474   : > { %1837 = vperm.xlu2 %4775, %v1807_v52   ;;  %1847 = vperm.xlu1 %4774, %v1809_v16   ;;  %v6167_v52 = vsub.f32 %v1425_v19, %v1473_v25  ;;  %v4429_v16 = vor.u32 %v4702_v8, %v4426_v45  ;;  %v6225_v25 = vpop.xlane.xlu1 %1452  ;;  %v4365_v8 = vor.u32 %v4686_v29, %v4362_v28  ;;  %v4730_v29 = vld [vmem:[%s8755_s5 + $0x184] sm:$0xf] }
 0x476   : > { %2425 = vmatpush.bf16.msrb.mxu0 %v4429_v16  ;;  %v1505_v37 = vmul.f32 %v6167_v52, %v6167_v52  ;;  %v4684_v16 = vld [vmem:[%s8755_s5 + $0xc] sm:$0xf0] }
 0x47c   : > { %1852 = vperm.xlu2 %4775, %v1810_v49   ;;  %v4408_v49 = vld [vmem:[%s8755_s5 + $0x80] sm:$0xf] }
 0x47d   : > { %v4409_v19 = vor.u32 %v4700_v53, %v4408_v49 }
 0x47f   : > { %2328 = vmatpush.bf16.msrb.mxu1 %v4409_v19  ;;  %4757 = vmatpush.bf16.msra.mxu2 %v4409_v19  ;;  %v4346_v19 = vld [vmem:[%s8755_s5 + $0x10] sm:$0xf0] }
 0x484   : > { %1857 = vperm.xlu2 %4775, %v1811_v21   ;;  %v4698_v21 = vld [vmem:[%s8755_s5 + $0x84] sm:$0xf] }
 0x485   : > { %v4413_v62 = vor.u32 %v4698_v21, %v4410_v44  ;;  %v4345_v21 = vor.u32 %v4684_v16, %v4344_v35 }
 0x487   : > { %2426 = vmatpush.bf16.msrb.mxu0 %v4413_v62 }
 0x48b   : > { %2427 = vmatpush.bf16.msrb.mxu0 %v4397_v46 }
 0x48f   : > { %2428 = vmatpush.bf16.msrb.mxu0 %v4381_v23 }
 0x492   : > { %1534 = vadd.xlane.f32.xlu0 %v1509_v0  ;;  %v4696_v0 = vld [vmem:[%s8755_s5 + $0x6c] sm:$0xf0] }
 0x493   : > { %v4393_v20 = vor.u32 %v4696_v0, %v4392_v2  ;;  %2429 = vmatpush.bf16.msrb.mxu0 %v4365_v8 }
 0x495   : > { %2329 = vmatpush.bf16.msrb.mxu1 %v4393_v20  ;;  %4758 = vmatpush.bf16.msra.mxu2 %v4393_v20 }
 0x499   : > { %2330 = vmatpush.bf16.msrb.mxu1 %v4377_v11  ;;  %4759 = vmatpush.bf16.msra.mxu2 %v4377_v11 }
 0x49a   : > { %1536 = vadd.xlane.f32.xlu0 %v1510_v61  ;;  %v6193_v61 = vadd.f32 1e-05, %v1549_v30  ;;  %v4682_v30 = vld [vmem:[%s8755_s5 + $0x4] sm:$0xf] }
 0x49c   : > { %4844 = vrsqrt.f32 %v6193_v61  ;;  %vm1596_vm6 = vweird.f32 %v6193_v61 }
 0x49e   : > { %1466 = vadd.xlane.f32.xlu1 %v1435_v54 }
 0x4a2   : > { %v6230_v27 = vpop.eup %4844 }
 0x4a3   : > { %v1591_v44 = vmul.f32 %v6230_v27, %v6193_v61  ;;  %vm1597_vm0 = vweird.f32 %v6230_v27 }
 0x4a4   : > { %vm6312_vm7 = vmor %vm1596_vm6, %vm1597_vm0 }
 0x4a5   : > { %v1592_v59 = vmul.f32 %v6230_v27, %v1591_v44 }
 0x4a6   : > { %1528 = vadd.xlane.f32.xlu1 %v1506_v42  ;;  %v6200_v42 = vpop.permute.xlu0 %1842 }
 0x4a7   : > { %v1593_v23 = vmul.f32 0.5, %v1592_v59 }
 0x4a9   : > { %v1594_v28 = vsub.f32 1.5, %v1593_v23 }
 0x4ad   : > { %1524 = vadd.xlane.f32.xlu2 %v1504_v63  ;;  %v4361_v63 = vor.u32 %v4688_v24, %v4360_v3  ;;  %v4554_v3 = vld [vmem:[%s8755_s5 + $0x1b0] sm:$0xf0] }
 0x4ae   : > { %v1521_v10 = vpop.xlane.xlu0 %1520 }
 0x4af   : > { %2331 = vmatpush.bf16.msrb.mxu1 %v4361_v63  ;;  %4760 = vmatpush.bf16.msra.mxu2 %v4361_v63  ;;  %v1550_v49 = vmul.f32 %v1521_v10, %v5593_v12  ;;  %v4538_v63 = vld [vmem:[%s8755_s5 + $0x190] sm:$0xf0] }
 0x4b0   : > { %v4541_v16 = vor.u32 %v4730_v29, %v4538_v63 }
 0x4b1   : > { %v6260_v2 = vadd.f32 1e-05, %v1550_v49 }
 0x4b3   : > { %2332 = vmatpush.bf16.msrb.mxu1 %v4345_v21  ;;  %4761 = vmatpush.bf16.msra.mxu2 %v4345_v21  ;;  %4846 = vrsqrt.f32 %v6260_v2  ;;  %vm1606_vm15 = vweird.f32 %v6260_v2 }
 0x4b5   : > { %1526 = vadd.xlane.f32.xlu2 %v1505_v37  ;;  %v4349_v37 = vor.u32 %v4682_v30, %v4346_v19  ;;  %v1595_v19 = vmul.f32 %v6230_v27, %v1594_v28 }
 0x4b7   : > { %2430 = vmatpush.bf16.msrb.mxu0 %v4349_v37  ;;  %v1599_v61 = vsel %vm6312_vm7, %v6230_v27, %v1595_v19 }
 0x4b8   : > { %v1741_v29 = vmul.f32 %v1599_v61, %v5959_v50  ;;  %v4718_v50 = vld [vmem:[%s8755_s5 + $0x124] sm:$0xf] }
 0x4b9   : > { %v6286_v8 = vpop.eup %4846 }
 0x4ba   : > { %v1601_v44 = vmul.f32 %v6286_v8, %v6260_v2  ;;  %vm1607_vm12 = vweird.f32 %v6286_v8 }
 0x4bb   : > { %vm1608_vm1 = vmor %vm1606_vm15, %vm1607_vm12 }
 0x4be   : > { %v1461_v33 = vpop.xlane.xlu2 %1460 }
 0x4bf   : > { %v1480_v45 = vmul.f32 %v1461_v33, %v5593_v12  ;;  %1862 = vperm.xlu1 %4774, %v1812_v40   ;;  %v4734_v40 = vld [vmem:[%s8755_s5 + $0x1a4] sm:$0xf] }
 0x4c0   : > { %v4557_v24 = vor.u32 %v4734_v40, %v4554_v3 }
 0x4c1   : > { %v6242_v53 = vsub.f32 %v1432_v26, %v1480_v45  ;;  %v4586_v26 = vld [vmem:[%s8755_s5 + $0x1f0] sm:$0xf0] }
 0x4c2   : > { %v4589_v0 = vor.u32 %v4742_v58, %v4586_v26  ;;  %v4726_v26 = vld [vmem:[%s8755_s5 + $0x164] sm:$0xf] }
 0x4c3   : > { %v1512_v62 = vmul.f32 %v6242_v53, %v6242_v53 }
 0x4c4   : > { %2472 = vmatpush.bf16.msra.mxu1 %v4589_v0  ;;  %v4522_v0 = vld [vmem:[%s8755_s5 + $0x170] sm:$0xf0] }
 0x4c5   : > { %1540 = vadd.xlane.f32.xlu0 %v1512_v62  ;;  %v1790_v62 = vld [vmem:[%s6003_s14 + $0x10] sm:$0xff] }
 0x4c6   : > { %v6263_v20 = vpop.xlane.xlu1 %1462  ;;  %v1517_v31 = vpop.xlane.xlu2 %1516  ;;  %v6327_v23 = vmul.f32 %v6048_v51, %v1790_v62  ;;  %v6340_v51 = vld [vmem:[%s8756_s6 + $0x6] ss:$0 sm:$0xff] }
 0x4c7   : > { %v1548_v46 = vmul.f32 %v1517_v31, %v5593_v12  ;;  %v4525_v31 = vor.u32 %v4726_v26, %v4522_v0 }
 0x4c8   : > { %2473 = vmatpush.bf16.msra.mxu1 %v4573_v34  ;;  %v4506_v34 = vld [vmem:[%s8755_s5 + $0x150] sm:$0xf0] }
 0x4c9   : > { %v1564_v11 = vadd.f32 1e-05, %v1548_v46  ;;  %v1602_v46 = vmul.f32 %v6286_v8, %v1601_v44  ;;  %v6353_v44 = vld [vmem:[%s8756_s6 + $0x7] ss:$0 sm:$0xff] }
 0x4cb   : > { %4848 = vrsqrt.f32 %v1564_v11  ;;  %v1603_v28 = vmul.f32 0.5, %v1602_v46  ;;  %vm1586_vm9 = vweird.f32 %v1564_v11 }
 0x4cc   : > { %2474 = vmatpush.bf16.msra.mxu1 %v4557_v24 }
 0x4cd   : > { %1872 = vperm.xlu2 %4775, %v1814_v41   ;;  %v4722_v41 = vld [vmem:[%s8755_s5 + $0x144] sm:$0xf]  ;;  %v1604_v62 = vsub.f32 1.5, %v1603_v28 }
 0x4ce   : > { %v1523_v10 = vpop.xlane.xlu1 %1522  ;;  %v4509_v27 = vor.u32 %v4722_v41, %v4506_v34  ;;  %v1793_v34 = vld [vmem:[%s6003_s14 + $0x28] sm:$0xff] }
 0x4cf   : > { %v1465_v33 = vpop.xlane.xlu2 %1464  ;;  %v1551_v45 = vmul.f32 %v1523_v10, %v5593_v12  ;;  %v1605_v61 = vmul.f32 %v6286_v8, %v1604_v62 }
 0x4d0   : > { %v1482_v35 = vmul.f32 %v1465_v33, %v5593_v12  ;;  %2475 = vmatpush.bf16.msra.mxu1 %v4541_v16 }
 0x4d1   : > { %v4849_v49 = vpop.eup %4848  ;;  %v6290_v21 = vadd.f32 1e-05, %v1551_v45  ;;  %v4490_v45 = vld [vmem:[%s8755_s5 + $0x130] sm:$0xf0] }
 0x4d2   : > { %v6294_v30 = vsub.f32 %v1434_v48, %v1482_v35  ;;  %v1581_v37 = vmul.f32 %v4849_v49, %v1564_v11  ;;  %v1791_v48 = vld [vmem:[%s6003_s14 + $0x18] sm:$0xff]  ;;  %vm1587_vm8 = vweird.f32 %v4849_v49  ;;  %v4493_v16 = vor.u32 %v4718_v50, %v4490_v45 }
 0x4d3   : > { %4850 = vrsqrt.f32 %v6290_v21  ;;  %vm1588_vm10 = vmor %vm1586_vm9, %vm1587_vm8  ;;  %vm1616_vm13 = vweird.f32 %v6290_v21  ;;  %v1795_v45 = vld [vmem:[%s6003_s14 + $0x38] sm:$0xff] }
 0x4d4   : > { %v1582_v58 = vmul.f32 %v4849_v49, %v1581_v37  ;;  %v1514_v6 = vmul.f32 %v6294_v30, %v6294_v30  ;;  %2476 = vmatpush.bf16.msra.mxu1 %v4525_v31  ;;  %v1757_v37 = vmul.f32 %v1741_v29, %v6340_v51 }
 0x4d6   : > { %v1583_v5 = vmul.f32 0.5, %v1582_v58  ;;  %1544 = vadd.xlane.f32.xlu0 %v1514_v6  ;;  %v4714_v6 = vld [vmem:[%s8755_s5 + $0x104] sm:$0xf]  ;;  %v1773_v31 = vadd.f32 %v1757_v37, %v6353_v44 }
 0x4d7   : > { %v1838_v47 = vpop.permute.xlu2 %1837 }
 0x4d8   : > { %v6329_v40 = vmul.f32 %v1838_v47, %v1791_v48  ;;  %v1584_v3 = vsub.f32 1.5, %v1583_v5  ;;  %2477 = vmatpush.bf16.msra.mxu1 %v4509_v27  ;;  %v1792_v47 = vld [vmem:[%s6003_s14 + $0x20] sm:$0xff] }
 0x4d9   : > { %v4851_v24 = vpop.eup %4850 }
 0x4da   : > { %v6334_v63 = vpack.c.bf16 %v6329_v40, %v6327_v23  ;;  %v1585_v10 = vmul.f32 %v4849_v49, %v1584_v3  ;;  %v1611_v33 = vmul.f32 %v4851_v24, %v6290_v21  ;;  %vm1617_vm11 = vweird.f32 %v4851_v24 }
 0x4db   : > { %vm1618_vm14 = vmor %vm1616_vm13, %vm1617_vm11  ;;  %v1609_v21 = vsel %vm1608_vm1, %v6286_v8, %v1605_v61  ;;  %v1819_v61 = vld [vmem:[%s5863_s26 + $0x78] sm:$0xff] }
 0x4dc   : > { %2387 = vmatmul.bf16.gmra.mxu3 %v6334_v63  ;;  %v1589_v11 = vsel %vm1588_vm10, %v4849_v49, %v1585_v10  ;;  %v1612_v35 = vmul.f32 %v4851_v24, %v1611_v33  ;;  %v4474_v49 = vld [vmem:[%s8755_s5 + $0x110] sm:$0xf0]  ;;  %2478 = vmatpush.bf16.msra.mxu1 %v4493_v16  ;;  %v1742_v28 = vmul.f32 %v1609_v21, %v6044_v38 }
 0x4dd   : > { %v1740_v19 = vmul.f32 %v1589_v11, %v6059_v13  ;;  %v1481_v13 = vmul.f32 %v6263_v20, %v5593_v12  ;;  %v4477_v26 = vor.u32 %v4714_v6, %v4474_v49  ;;  %v1479_v16 = vmul.f32 %v6198_v1, %v5593_v12  ;;  %v1815_v49 = vld [vmem:[%s5863_s26 + $0x58] sm:$0xff] }
 0x4de   : > { %v1613_v58 = vmul.f32 0.5, %v1612_v35  ;;  %v1758_v10 = vmul.f32 %v1742_v28, %v6340_v51  ;;  %v1797_v28 = vld [vmem:[%s6003_s14 + $0x48] sm:$0xff] }
 0x4df   : > { %v1756_v48 = vmul.f32 %v1740_v19, %v6340_v51  ;;  %v6372_v20 = vsub.f32 %v1433_v60, %v1481_v13  ;;  %v6383_v60 = vmul.f32 %v6200_v42, %v1792_v47  ;;  %v1853_v29 = vpop.permute.xlu2 %1852  ;;  %v1476_v42 = vmul.f32 %v6225_v25, %v5593_v12  ;;  %v1794_v19 = vld [vmem:[%s6003_s14 + $0x30] sm:$0xff]  ;;  %v1816_v13 = vld [vmem:[%s5863_s26 + $0x60] sm:$0xff] }
 0x4e0   : > { %v1614_v0 = vsub.f32 1.5, %v1613_v58  ;;  %2479 = vmatpush.bf16.msra.mxu1 %v4477_v26  ;;  %v1774_v50 = vadd.f32 %v1758_v10, %v6353_v44  ;;  %v6419_v7 = vmul.f32 %v1853_v29, %v1794_v19  ;;  %v1531_v26 = vpop.xlane.xlu0 %1530  ;;  %v1818_v29 = vld [vmem:[%s5863_s26 + $0x70] sm:$0xff]  ;;  %v1796_v10 = vld [vmem:[%s6003_s14 + $0x40] sm:$0xff] }
 0x4e1   : > { %v1772_v59 = vadd.f32 %v1756_v48, %v6353_v44  ;;  %v1513_v2 = vmul.f32 %v6372_v20, %v6372_v20  ;;  %v6404_v38 = vsub.f32 %v1428_v9, %v1476_v42  ;;  %v6423_v9 = vsub.f32 %v1431_v43, %v1479_v16 }
 0x4e2   : > { %v1615_v46 = vmul.f32 %v4851_v24, %v1614_v0  ;;  %8783 = vst [vmem:[#allocation4_spill] sm:$0xff] %v6419_v7  ;;  %v1555_v4 = vmul.f32 %v1531_v26, %v5593_v12 }
 0x4e3   : > { %v6374_v5 = vpack.c.bf16 %v1773_v31, %v1772_v59  ;;  %v1508_v25 = vmul.f32 %v6404_v38, %v6404_v38  ;;  %v1511_v62 = vmul.f32 %v6423_v9, %v6423_v9 }
 0x4e4   : > { %v1619_v41 = vsel %vm1618_vm14, %v4851_v24, %v1615_v46  ;;  %v1817_v24 = vld [vmem:[%s5863_s26 + $0x68] sm:$0xff]  ;;  %v6450_v47 = vadd.f32 1e-05, %v1555_v4  ;;  %s7495_s26 = scalar_lea.vmem %s8758_s8, %s5200_s30 }
 0x4e5   : > { %2333 = vmatmul.bf16.vlgmr.msrb.gmra.mxu1 %v6374_v5  ;;  %2431 = vmatmul.bf16.vlgmr.msrb.gmra.mxu0 %v6374_v5  ;;  %v1743_v27 = vmul.f32 %v1619_v41, %v6079_v56 }
 0x4e6   : > { %v1848_v17 = vpop.permute.xlu1 %1847  ;;  %vm1656_vm11 = vweird.f32 %v6450_v47 }
 0x4e7   : > { %v6386_v3 = vmul.f32 %v1848_v17, %v1793_v34  ;;  %v1759_v56 = vmul.f32 %v1743_v27, %v6340_v51  ;;  %v1858_v11 = vpop.permute.xlu2 %1857 }
 0x4e8   : > { %v6415_v37 = vmul.f32 %v1858_v11, %v1795_v45 }
 0x4e9   : > { %v6394_v8 = vpack.c.bf16 %v6386_v3, %v6383_v60  ;;  %1542 = vadd.xlane.f32.xlu1 %v1513_v2  ;;  %v1775_v33 = vadd.f32 %v1759_v56, %v6353_v44  ;;  %v1868_v56 = vpop.permute.xlu0 %1867 }
 0x4ea   : > { %1887 = vperm.xlu0 %4773, %v1817_v24   ;;  %8782 = vst [vmem:[#allocation3_spill] sm:$0xff] %v6415_v37  ;;  %v6427_v1 = vpack.c.bf16 %v6415_v37, %v6419_v7  ;;  %v6464_v19 = vmul.f32 %v1868_v56, %v1797_v28 }
 0x4eb   : > { %v6408_v35 = vpack.c.bf16 %v1775_v33, %v1774_v50 }
 0x4ec   : > { %2392 = vmatmul.bf16.gmra.mxu3 %v6394_v8  ;;  %8784 = vst [vmem:[#allocation5_spill] sm:$0xff] %v6464_v19 }
 0x4f5   : > { %2338 = vmatmul.bf16.gmra.mxu1 %v6408_v35  ;;  %2436 = vmatmul.bf16.gmra.mxu0 %v6408_v35 }
 0x4f6   : > { %1532 = vadd.xlane.f32.xlu2 %v1508_v25 }
 0x4fc   : > { %2397 = vmatmul.bf16.gmra.mxu3 %v6427_v1 }
 0x4fe   : > { %1538 = vadd.xlane.f32.xlu2 %v1511_v62 }
 0x505   : > { %2480 = vmatmul.bf16.vlgmr.msra.gmra.mxu1 %v6032_v39 }
 0x511   : > { %v1467_v58 = vpop.xlane.xlu1 %1466 }
 0x512   : > { %v1483_v6 = vmul.f32 %v1467_v58, %v5593_v12 }
 0x514   : > { %v6437_v57 = vsub.f32 %v1435_v54, %v1483_v6 }
 0x515   : > { %2485 = vmatmul.bf16.gmra.mxu1 %v6334_v63 }
 0x516   : > { %1877 = vperm.xlu2 %4775, %v1815_v49   ;;  %v1515_v43 = vmul.f32 %v6437_v57, %v6437_v57 }
 0x518   : > { %1546 = vadd.xlane.f32.xlu1 %v1515_v43 }
 0x519   : > { %v1529_v48 = vpop.xlane.xlu1 %1528 }
 0x51a   : > { %v1554_v59 = vmul.f32 %v1529_v48, %v5593_v12 }
 0x51c   : > { %v6447_v46 = vadd.f32 1e-05, %v1554_v59 }
 0x51e   : > { %1882 = vperm.xlu2 %4775, %v1816_v13   ;;  %vm1646_vm9 = vweird.f32 %v6447_v46 }
 0x520   : > { %v1525_v0 = vpop.xlane.xlu2 %1524 }
 0x521   : > { %v1552_v31 = vmul.f32 %v1525_v0, %v5593_v12 }
 0x523   : > { %v1568_v54 = vadd.f32 1e-05, %v1552_v31 }
 0x525   : > { %4852 = vrsqrt.f32 %v1568_v54  ;;  %2490 = vmatmul.bf16.gmra.mxu1 %v6394_v8  ;;  %vm1626_vm3 = vweird.f32 %v1568_v54 }
 0x526   : > { %1897 = vperm.xlu2 %4775, %v1819_v61   ;;  %4854 = vrsqrt.f32 %v6447_v46 }
 0x527   : > { %4856 = vrsqrt.f32 %v6450_v47 }
 0x528   : > { %v1527_v41 = vpop.xlane.xlu2 %1526 }
 0x529   : > { %v1553_v34 = vmul.f32 %v1527_v41, %v5593_v12 }
 0x52b   : > { %v4853_v21 = vpop.eup %4852  ;;  %v1569_v17 = vadd.f32 1e-05, %v1553_v34 }
 0x52c   : > { %v1621_v27 = vmul.f32 %v4853_v21, %v1568_v54  ;;  %v6455_v24 = vpop.eup %4854  ;;  %vm1627_vm2 = vweird.f32 %v4853_v21 }
 0x52d   : > { %4858 = vrsqrt.f32 %v1569_v17  ;;  %v6460_v33 = vpop.eup %4856  ;;  %v1641_v50 = vmul.f32 %v6455_v24, %v6447_v46  ;;  %vm1628_vm4 = vmor %vm1626_vm3, %vm1627_vm2  ;;  %vm1636_vm0 = vweird.f32 %v1569_v17  ;;  %vm1647_vm7 = vweird.f32 %v6455_v24 }
 0x52e   : > { %v1622_v2 = vmul.f32 %v4853_v21, %v1621_v27  ;;  %v1651_v62 = vmul.f32 %v6460_v33, %v6450_v47  ;;  %vm1657_vm8 = vweird.f32 %v6460_v33  ;;  %vm1648_vm10 = vmor %vm1646_vm9, %vm1647_vm7 }
 0x52f   : > { %v1642_v43 = vmul.f32 %v6455_v24, %v1641_v50  ;;  %v4594_v50 = vld [vmem:[%s8755_s5 + $0x1f8] sm:$0xf0]  ;;  %vm1658_vm12 = vmor %vm1656_vm11, %vm1657_vm8 }
 0x530   : > { %v1623_v42 = vmul.f32 0.5, %v1622_v2  ;;  %v1652_v48 = vmul.f32 %v6460_v33, %v1651_v62 }
 0x531   : > { %1892 = vperm.xlu1 %4774, %v1818_v29   ;;  %v1863_v11 = vpop.permute.xlu1 %1862  ;;  %v1643_v59 = vmul.f32 0.5, %v1642_v43  ;;  %v4707_v43 = vld [vmem:[%s8755_s5 + $0xcc] sm:$0xf] }
 0x532   : > { %v1624_v45 = vsub.f32 1.5, %v1623_v42  ;;  %v6466_v25 = vmul.f32 %v1863_v11, %v1796_v10  ;;  %v1653_v61 = vmul.f32 0.5, %v1652_v48  ;;  %v4466_v42 = vld [vmem:[%s8755_s5 + $0xf8] sm:$0xf0]  ;;  %v4743_v10 = vld [vmem:[%s8755_s5 + $0x1ec] sm:$0xf] }
 0x533   : > { %v4859_v16 = vpop.eup %4858  ;;  %v1644_v54 = vsub.f32 1.5, %v1643_v59  ;;  %v4597_v62 = vor.u32 %v4743_v10, %v4594_v50  ;;  %v6565_v50 = vpop.permute.xlu2 %1872 }
 0x534   : > { %8785 = vst [vmem:[#allocation6_spill] sm:$0xff] %v6466_v25  ;;  %v1625_v58 = vmul.f32 %v4853_v21, %v1624_v45  ;;  %v1631_v6 = vmul.f32 %v4859_v16, %v1569_v17  ;;  %v6472_v49 = vpack.c.bf16 %v6464_v19, %v6466_v25  ;;  %vm1637_vm5 = vweird.f32 %v4859_v16  ;;  %v4711_v17 = vld [vmem:[%s8755_s5 + $0xec] sm:$0xf]  ;;  %v4697_v25 = vld [vmem:[%s8755_s5 + $0x74] sm:$0xf0] }
 0x535   : > { %2495 = vmatmul.bf16.gmra.mxu1 %v6427_v1  ;;  %vm1638_vm6 = vmor %vm1636_vm0, %vm1637_vm5  ;;  %v1654_v29 = vsub.f32 1.5, %v1653_v61  ;;  %v1645_v56 = vmul.f32 %v6455_v24, %v1644_v54  ;;  %v1535_v54 = vpop.xlane.xlu0 %1534 }
 0x536   : > { %v1632_v13 = vmul.f32 %v4859_v16, %v1631_v6  ;;  %2402 = vmatmul.bf16.gmra.mxu3 %v6472_v49  ;;  %v1629_v26 = vsel %vm1628_vm4, %v4853_v21, %v1625_v58  ;;  %v4592_v21 = vld [vmem:[%s8755_s5 + $0x1e8] sm:$0xf]  ;;  %v4741_v6 = vld [vmem:[%s8755_s5 + $0x1d4] sm:$0xf0]  ;;  %2668 = vmatpush.bf16.msrb.mxu1 %v4597_v62  ;;  %v4562_v62 = vld [vmem:[%s8755_s5 + $0x1b8] sm:$0xf0] }
 0x537   : > { %v1744_v4 = vmul.f32 %v1629_v26, %v6136_v32  ;;  %v4745_v32 = vld [vmem:[%s8755_s5 + $0x1f4] sm:$0xf0]  ;;  %v4576_v58 = vld [vmem:[%s8755_s5 + $0x1c8] sm:$0xf]  ;;  %v4450_v26 = vld [vmem:[%s8755_s5 + $0xd8] sm:$0xf0] }
 0x538   : > { %v1633_v0 = vmul.f32 0.5, %v1632_v13  ;;  %v1655_v13 = vmul.f32 %v6460_v33, %v1654_v29  ;;  %v4577_v48 = vor.u32 %v4741_v6, %v4576_v58  ;;  %v4453_v59 = vor.u32 %v4707_v43, %v4450_v26  ;;  %v6578_v6 = vpop.f32.mrf.mxu3 }
 0x539   : > { %v1760_v2 = vmul.f32 %v1744_v4, %v6340_v51 }
 0x53a   : > { %v1634_v31 = vsub.f32 1.5, %v1633_v0  ;;  %v1659_v46 = vsel %vm1658_vm12, %v6460_v33, %v1655_v13  ;;  %v1557_v33 = vmul.f32 %v1535_v54, %v5593_v12  ;;  %v4544_v54 = vld [vmem:[%s8755_s5 + $0x188] sm:$0xf] }
 0x53b   : > { %v1776_v45 = vadd.f32 %v1760_v2, %v6353_v44  ;;  %v1747_v61 = vmul.f32 %v1659_v46, %v6064_v18  ;;  %v4464_v18 = vld [vmem:[%s8755_s5 + $0xe8] sm:$0xf]  ;;  %v4709_v46 = vld [vmem:[%s8755_s5 + $0xd4] sm:$0xf0] }
 0x53c   : > { %v1635_v41 = vmul.f32 %v4859_v16, %v1634_v31  ;;  %v1649_v31 = vsel %vm1648_vm10, %v6455_v24, %v1645_v56  ;;  %v4560_v56 = vld [vmem:[%s8755_s5 + $0x1a8] sm:$0xf] }
 0x53d   : > { %v1746_v4 = vmul.f32 %v1649_v31, %v6117_v55  ;;  %v1763_v47 = vmul.f32 %v1747_v61, %v6340_v51  ;;  %v4578_v55 = vld [vmem:[%s8755_s5 + $0x1d8] sm:$0xf0]  ;;  %v4448_v31 = vld [vmem:[%s8755_s5 + $0xc8] sm:$0xf] }
 0x53e   : > { %v1639_v34 = vsel %vm1638_vm6, %v4859_v16, %v1635_v41  ;;  %v4469_v16 = vor.u32 %v4711_v17, %v4466_v42  ;;  %v1537_v17 = vpop.xlane.xlu0 %1536  ;;  %v4703_v42 = vld [vmem:[%s8755_s5 + $0xac] sm:$0xf] }
 0x53f   : > { %v1745_v27 = vmul.f32 %v1639_v34, %v6167_v52  ;;  %v4593_v52 = vor.u32 %v4745_v32, %v4592_v21  ;;  %v1762_v41 = vmul.f32 %v1746_v4, %v6340_v51  ;;  %v1779_v34 = vadd.f32 %v1763_v47, %v6353_v44 }
 0x540   : > { %2619 = vmatpush.bf16.msra.mxu0 %v4469_v16  ;;  %v6552_v32 = vadd.f32 1e-05, %v1557_v33  ;;  %v1558_v10 = vmul.f32 %v1537_v17, %v5593_v12  ;;  %v4735_v16 = vld [vmem:[%s8755_s5 + $0x1ac] sm:$0xf] }
 0x541   : > { %v1761_v28 = vmul.f32 %v1745_v27, %v6340_v51  ;;  %2570 = vmatpush.bf16.msra.mxu3 %v4593_v52  ;;  %v1778_v24 = vadd.f32 %v1762_v41, %v6353_v44  ;;  %v4739_v27 = vld [vmem:[%s8755_s5 + $0x1cc] sm:$0xf]  ;;  %v4737_v52 = vld [vmem:[%s8755_s5 + $0x1b4] sm:$0xf0]  ;;  %v4449_v41 = vor.u32 %v4709_v46, %v4448_v31 }
 0x542   : > { %v4581_v29 = vor.u32 %v4739_v27, %v4578_v55  ;;  %4860 = vrsqrt.f32 %v6552_v32  ;;  %v4699_v27 = vld [vmem:[%s8755_s5 + $0x8c] sm:$0xf]  ;;  %vm1676_vm14 = vweird.f32 %v6552_v32 }
 0x543   : > { %v1777_v11 = vadd.f32 %v1761_v28, %v6353_v44  ;;  %v6545_v2 = vpack.c.bf16 %v1779_v34, %v1778_v24  ;;  %v4713_v28 = vld [vmem:[%s8755_s5 + $0xf4] sm:$0xf0]  ;;  %v4731_v33 = vld [vmem:[%s8755_s5 + $0x18c] sm:$0xf] }
 0x544   : > { %2620 = vmatpush.bf16.msra.mxu0 %v4453_v59  ;;  %v4465_v21 = vor.u32 %v4713_v28, %v4464_v18  ;;  %2669 = vmatpush.bf16.msrb.mxu1 %v4581_v29  ;;  %v6584_v59 = vadd.f32 1e-05, %v1558_v10  ;;  %v4733_v34 = vld [vmem:[%s8755_s5 + $0x194] sm:$0xf0]  ;;  %v4418_v18 = vld [vmem:[%s8755_s5 + $0x98] sm:$0xf0]  ;;  %v6615_v28 = vpop.f32.mrf.mxu3 }
 0x545   : > { %v6521_v0 = vpack.c.bf16 %v1777_v11, %v1776_v45  ;;  %2500 = vmatmul.bf16.gmra.mxu1 %v6472_v49  ;;  %2571 = vmatpush.bf16.msra.mxu3 %v4577_v48  ;;  %v4561_v45 = vor.u32 %v4737_v52, %v4560_v56  ;;  %v4434_v11 = vld [vmem:[%s8755_s5 + $0xb8] sm:$0xf0]  ;;  %v4565_v48 = vor.u32 %v4735_v16, %v4562_v62  ;;  %v4432_v52 = vld [vmem:[%s8755_s5 + $0xa8] sm:$0xf]  ;;  %v4705_v10 = vld [vmem:[%s8755_s5 + $0xb4] sm:$0xf0] }
 0x546   : > { %2521 = vmatpush.bf16.msrb.mxu2 %v4465_v21  ;;  %v4437_v13 = vor.u32 %v4703_v42, %v4434_v11  ;;  %4862 = vrsqrt.f32 %v6584_v59  ;;  %v4545_v55 = vor.u32 %v4733_v34, %v4544_v54  ;;  %v4546_v29 = vld [vmem:[%s8755_s5 + $0x198] sm:$0xf0]  ;;  %v4421_v17 = vor.u32 %v4699_v27, %v4418_v18  ;;  %v4293_v11 = vld [vmem:[%s8756_s6 + $0x20] ss:$8 sm:$0xf] }
 0x547   : > { %2343 = vmatmul.bf16.vlgmr.msra.gmra.mxu2 %v6521_v0  ;;  %2441 = vmatmul.bf16.gmra.mxu0 %v6521_v0  ;;  %v4549_v56 = vor.u32 %v4731_v33, %v4546_v29  ;;  %v4433_v16 = vor.u32 %v4705_v10, %v4432_v52  ;;  %v6629_v31 = vperm.slane %v4293_v11, 0  ;;  %v1798_v52 = vld [vmem:[%s6003_s14 + $0x50] sm:$0xff]  ;;  %vm1686_vm4 = vweird.f32 %v6584_v59 }
 0x548   : > { %v6576_v58 = vpop.eup %4860  ;;  %2621 = vmatpush.bf16.msra.mxu0 %v4437_v13  ;;  %2670 = vmatpush.bf16.msrb.mxu1 %v4565_v48  ;;  %v1541_v13 = vpop.xlane.xlu0 %1540 }
 0x549   : > { %2572 = vmatpush.bf16.msra.mxu3 %v4561_v45  ;;  %v1671_v26 = vmul.f32 %v6576_v58, %v6552_v32  ;;  %vm1677_vm13 = vweird.f32 %v6576_v58 }
 0x54a   : > { %2522 = vmatpush.bf16.msrb.mxu2 %v4449_v41  ;;  %vm1678_vm15 = vmor %vm1676_vm14, %vm1677_vm13 }
 0x54b   : > { %v1672_v4 = vmul.f32 %v6576_v58, %v1671_v26 }
 0x54c   : > { %2622 = vmatpush.bf16.msra.mxu0 %v4421_v17  ;;  %2671 = vmatpush.bf16.msrb.mxu1 %v4549_v56  ;;  %v6626_v62 = vpop.eup %4862 }
 0x54d   : > { %v1673_v42 = vmul.f32 0.5, %v1672_v4  ;;  %2573 = vmatpush.bf16.msra.mxu3 %v4545_v55  ;;  %v1681_v4 = vmul.f32 %v6626_v62, %v6584_v59  ;;  %vm1687_vm5 = vweird.f32 %v6626_v62 }
 0x54e   : > { %2523 = vmatpush.bf16.msrb.mxu2 %v4433_v16  ;;  %vm6723_vm6 = vmor %vm1686_vm4, %vm1687_vm5 }
 0x54f   : > { %v1674_v48 = vsub.f32 1.5, %v1673_v42  ;;  %v1682_v56 = vmul.f32 %v6626_v62, %v1681_v4 }
 0x551   : > { %v1675_v18 = vmul.f32 %v6576_v58, %v1674_v48 }
 0x553   : > { %v1679_v16 = vsel %vm1678_vm15, %v6576_v58, %v1675_v18 }
 0x554   : > { %v1749_v58 = vmul.f32 %v1679_v16, %v6097_v36  ;;  %v1545_v36 = vpop.xlane.xlu0 %1544 }
 0x557   : > { %2348 = vmatmul.bf16.gmra.mxu2 %v6545_v2  ;;  %2446 = vmatmul.bf16.gmra.mxu0 %v6545_v2 }
 0x55c   : > { %v1543_v45 = vpop.xlane.xlu1 %1542  ;;  %v1888_v37 = vpop.permute.xlu0 %1887 }
 0x55d   : > { %v1561_v26 = vmul.f32 %v1543_v45, %v5593_v12  ;;  %v1799_v45 = vld [vmem:[%s6003_s14 + $0x58] sm:$0xff] }
 0x55f   : > { %v2388_v27 = vpop.f32.mrf.mxu3  ;;  %v6640_v33 = vadd.f32 1e-05, %v1561_v26  ;;  %v1683_v26 = vmul.f32 0.5, %v1682_v56 }
 0x561   : > { %vm1716_vm11 = vweird.f32 %v6640_v33 }
 0x562   : > { %v6580_v43 = vpop.f32.mrf.mxu1  ;;  %v2432_v4 = vpop.f32.mrf.mxu0 }
 0x569   : > { %v1533_v61 = vpop.xlane.xlu2 %1532 }
 0x56a   : > { %v1556_v47 = vmul.f32 %v1533_v61, %v5593_v12  ;;  %v6595_v24 = vpop.f32.mrf.mxu1 }
 0x56c   : > { %v1572_v21 = vadd.f32 1e-05, %v1556_v47  ;;  %v1560_v47 = vmul.f32 %v1541_v13, %v5593_v12 }
 0x56e   : > { %4864 = vrsqrt.f32 %v1572_v21  ;;  %v6648_v42 = vadd.f32 1e-05, %v1560_v47  ;;  %vm1666_vm2 = vweird.f32 %v1572_v21 }
 0x570   : > { %vm1706_vm13 = vweird.f32 %v6648_v42 }
 0x571   : > { %v1539_v46 = vpop.xlane.xlu2 %1538 }
 0x572   : > { %v1559_v61 = vmul.f32 %v1539_v46, %v5593_v12  ;;  %v2339_v41 = vpop.f32.mrf.mxu1  ;;  %v6654_v46 = vmul.f32 %v6565_v50, %v1798_v52 }
 0x573   : > { %v2340_v54 = vadd.f32 %v2339_v41, %v6629_v31 }
 0x574   : > { %v4865_v34 = vpop.eup %4864  ;;  %v6637_v55 = vadd.f32 1e-05, %v1559_v61  ;;  %8786 = vst [vmem:[#allocation7_spill] sm:$0xff] %v6654_v46 }
 0x575   : > { %v1661_v29 = vmul.f32 %v4865_v34, %v1572_v21  ;;  %v6642_v17 = vadd.f32 %v2388_v27, %v2340_v54  ;;  %vm1667_vm1 = vweird.f32 %v4865_v34  ;;  %v6668_v27 = vperm.slane %v4293_v11, 1 }
 0x576   : > { %4866 = vrsqrt.f32 %v6637_v55  ;;  %vm1668_vm3 = vmor %vm1666_vm2, %vm1667_vm1  ;;  %vm1696_vm7 = vweird.f32 %v6637_v55 }
 0x577   : > { %v1662_v10 = vmul.f32 %v4865_v34, %v1661_v29  ;;  %4868 = vrsqrt.f32 %v6640_v33  ;;  %v1684_v29 = vsub.f32 1.5, %v1683_v26  ;;  %v2433_v16 = vadd.f32 %v2432_v4, %v6668_v27 }
 0x578   : > { %4870 = vrsqrt.f32 %v6648_v42  ;;  %v1562_v4 = vmul.f32 %v1545_v36, %v5593_v12 }
 0x579   : > { %v1663_v13 = vmul.f32 0.5, %v1662_v10  ;;  %v1878_v48 = vpop.permute.xlu2 %1877 }
 0x57a   : > { %v6656_v61 = vmul.f32 %v1878_v48, %v1799_v45  ;;  %v6658_v32 = vpop.f32.mrf.mxu1  ;;  %v1765_v45 = vmul.f32 %v1749_v58, %v6340_v51  ;;  %v4528_v48 = vld [vmem:[%s8755_s5 + $0x168] sm:$0xf] }
 0x57b   : > { %v1664_v41 = vsub.f32 1.5, %v1663_v13 }
 0x57c   : > { %8787 = vst [vmem:[#allocation8_spill] sm:$0xff] %v6656_v61  ;;  %v6661_v47 = vpop.eup %4866  ;;  %v6666_v54 = vpack.c.bf16 %v6656_v61, %v6654_v46  ;;  %v4727_v61 = vld [vmem:[%s8755_s5 + $0x16c] sm:$0xf]  ;;  %v4530_v46 = vld [vmem:[%s8755_s5 + $0x178] sm:$0xf0] }
 0x57d   : > { %v1665_v50 = vmul.f32 %v4865_v34, %v1664_v41  ;;  %v1691_v18 = vmul.f32 %v6661_v47, %v6637_v55  ;;  %v6674_v56 = vpop.eup %4868  ;;  %vm1697_vm0 = vweird.f32 %v6661_v47 }
 0x57e   : > { %2407 = vmatmul.bf16.gmra.mxu3 %v6666_v54  ;;  %2505 = vmatmul.bf16.gmra.mxu1 %v6666_v54  ;;  %v6679_v21 = vpop.eup %4870  ;;  %v1711_v26 = vmul.f32 %v6674_v56, %v6640_v33  ;;  %vm6739_vm8 = vmor %vm1696_vm7, %vm1697_vm0  ;;  %vm1717_vm9 = vweird.f32 %v6674_v56 }
 0x57f   : > { %v1669_v52 = vsel %vm1668_vm3, %v4865_v34, %v1665_v50  ;;  %v1692_v10 = vmul.f32 %v6661_v47, %v1691_v18  ;;  %v4729_v34 = vld [vmem:[%s8755_s5 + $0x174] sm:$0xf0]  ;;  %vm1707_vm10 = vweird.f32 %v6679_v21  ;;  %vm1718_vm12 = vmor %vm1716_vm11, %vm1717_vm9 }
 0x580   : > { %v1748_v11 = vmul.f32 %v1669_v52, %v6404_v38  ;;  %v1685_v38 = vmul.f32 %v6626_v62, %v1684_v29  ;;  %v4529_v50 = vor.u32 %v4729_v34, %v4528_v48  ;;  %v4701_v29 = vld [vmem:[%s8755_s5 + $0x94] sm:$0xf0]  ;;  %v6706_v48 = vpop.f32.mrf.mxu0  ;;  %v4695_v34 = vld [vmem:[%s8755_s5 + $0x6c] sm:$0xf]  ;;  %v1712_v59 = vmul.f32 %v6674_v56, %v1711_v26  ;;  %vm1708_vm14 = vmor %vm1706_vm13, %vm1707_vm10 }
 0x581   : > { %v1693_v13 = vmul.f32 0.5, %v1692_v10  ;;  %v4416_v10 = vld [vmem:[%s8755_s5 + $0x88] sm:$0xf] }
 0x582   : > { %v2481_v41 = vpop.f32.mrf.mxu1  ;;  %v1764_v58 = vmul.f32 %v1748_v11, %v6340_v51  ;;  %v1701_v11 = vmul.f32 %v6679_v21, %v6648_v42  ;;  %2574 = vmatpush.bf16.msra.mxu3 %v4529_v50  ;;  %v1800_v50 = vld [vmem:[%s6003_s14 + $0x60] sm:$0xff]  ;;  %v1689_v19 = vsel %vm6723_vm6, %v6626_v62, %v1685_v38 }
 0x583   : > { %v1694_v18 = vsub.f32 1.5, %v1693_v13  ;;  %v6696_v52 = vadd.f32 %v2481_v41, %v2433_v16  ;;  %v1781_v13 = vadd.f32 %v1765_v45, %v6353_v44  ;;  %v4417_v16 = vor.u32 %v4701_v29, %v4416_v10  ;;  %v4402_v41 = vld [vmem:[%s8755_s5 + $0x78] sm:$0xf0]  ;;  %v1883_v10 = vpop.permute.xlu2 %1882 }
 0x584   : > { %v1780_v36 = vadd.f32 %v1764_v58, %v6353_v44  ;;  %v4405_v29 = vor.u32 %v4695_v34, %v4402_v41  ;;  %v6745_v34 = vadd.f32 1e-05, %v1562_v4  ;;  %v1801_v41 = vld [vmem:[%s6003_s14 + $0x68] sm:$0xff]  ;;  %v1702_v38 = vmul.f32 %v6679_v21, %v1701_v11 }
 0x585   : > { %v1695_v58 = vmul.f32 %v6661_v47, %v1694_v18  ;;  %2524 = vmatpush.bf16.msrb.mxu2 %v4417_v16  ;;  %v4533_v18 = vor.u32 %v4727_v61, %v4530_v46  ;;  %v6752_v26 = vmul.f32 %v1883_v10, %v1800_v50  ;;  %v4400_v46 = vld [vmem:[%s8755_s5 + $0x68] sm:$0xf]  ;;  %v1713_v61 = vmul.f32 0.5, %v1712_v59  ;;  %v4725_v16 = vld [vmem:[%s8755_s5 + $0x154] sm:$0xf0] }
 0x586   : > { %v6743_v55 = vpack.c.bf16 %v1781_v13, %v1780_v36  ;;  %2623 = vmatpush.bf16.msra.mxu0 %v4405_v29  ;;  %v1750_v36 = vmul.f32 %v1689_v19, %v6104_v22  ;;  %v4401_v13 = vor.u32 %v4697_v25, %v4400_v46  ;;  %4872 = vrsqrt.f32 %v6745_v34  ;;  %v4512_v19 = vld [vmem:[%s8755_s5 + $0x148] sm:$0xf]  ;;  %v4514_v10 = vld [vmem:[%s8755_s5 + $0x158] sm:$0xf0]  ;;  %v4721_v25 = vld [vmem:[%s8755_s5 + $0x134] sm:$0xf0] }
 0x587   : > { %v1699_v62 = vsel %vm6739_vm8, %v6661_v47, %v1695_v58  ;;  %8792 = vst [vmem:[#allocation9_spill] sm:$0xff] %v6752_v26  ;;  %2672 = vmatpush.bf16.msrb.mxu1 %v4533_v18  ;;  %v6763_v47 = vmul.f32 %v1888_v37, %v1801_v41  ;;  %v4723_v37 = vld [vmem:[%s8755_s5 + $0x14c] sm:$0xf]  ;;  %v1703_v45 = vmul.f32 0.5, %v1702_v38  ;;  %v4513_v50 = vor.u32 %v4725_v16, %v4512_v19  ;;  %v4496_v46 = vld [vmem:[%s8755_s5 + $0x128] sm:$0xf] }
 0x588   : > { %2353 = vmatmul.bf16.gmra.mxu2 %v6743_v55  ;;  %2451 = vmatmul.bf16.gmra.mxu0 %v6743_v55  ;;  %v1751_v4 = vmul.f32 %v1699_v62, %v6423_v9  ;;  %v4517_v29 = vor.u32 %v4723_v37, %v4514_v10  ;;  %v1714_v59 = vsub.f32 1.5, %v1713_v61  ;;  %v2437_v18 = vpop.f32.mrf.mxu0  ;;  %v1766_v62 = vmul.f32 %v1750_v36, %v6340_v51  ;;  %v4719_v61 = vld [vmem:[%s8755_s5 + $0x12c] sm:$0xf]  ;;  %v4498_v36 = vld [vmem:[%s8755_s5 + $0x138] sm:$0xf0] }
 0x589   : > { %8793 = vst [vmem:[#allocation10_spill] sm:$0xff] %v6763_v47  ;;  %v6780_v9 = vpack.c.bf16 %v6763_v47, %v6752_v26  ;;  %2525 = vmatpush.bf16.msrb.mxu2 %v4401_v13  ;;  %2575 = vmatpush.bf16.msra.mxu3 %v4513_v50  ;;  %v1704_v13 = vsub.f32 1.5, %v1703_v45  ;;  %v2438_v19 = vadd.f32 %v2437_v18, %v6668_v27  ;;  %v4691_v16 = vld [vmem:[%s8755_s5 + $0x4c] sm:$0xf]  ;;  %v4386_v37 = vld [vmem:[%s8755_s5 + $0x58] sm:$0xf0]  ;;  %vm1726_vm4 = vweird.f32 %v6745_v34 }
 0x58a   : > { %v6766_v11 = vpop.f32.mrf.mxu1  ;;  %v1767_v38 = vmul.f32 %v1751_v4, %v6340_v51  ;;  %v4384_v45 = vld [vmem:[%s8755_s5 + $0x48] sm:$0xf]  ;;  %v1782_v10 = vadd.f32 %v1766_v62, %v6353_v44  ;;  %v4389_v18 = vor.u32 %v4691_v16, %v4386_v37  ;;  %v4689_v16 = vld [vmem:[%s8755_s5 + $0x34] sm:$0xf0] }
 0x58b   : > { %v1547_v22 = vpop.xlane.xlu1 %1546  ;;  %2673 = vmatpush.bf16.msrb.mxu1 %v4517_v29  ;;  %v4480_v37 = vld [vmem:[%s8755_s5 + $0x108] sm:$0xf] }
 0x58c   : > { %v1563_v58 = vmul.f32 %v1547_v22, %v5593_v12  ;;  %v4497_v22 = vor.u32 %v4721_v25, %v4496_v46  ;;  %v6804_v4 = vpop.eup %4872  ;;  %v1783_v29 = vadd.f32 %v1767_v38, %v6353_v44  ;;  %v4693_v46 = vld [vmem:[%s8755_s5 + $0x54] sm:$0xf0]  ;;  %v4687_v25 = vld [vmem:[%s8755_s5 + $0x2c] sm:$0xf]  ;;  %v4370_v12 = vld [vmem:[%s8755_s5 + $0x38] sm:$0xf0]  ;;  %2624 = vmatpush.bf16.msra.mxu0 %v4389_v18 }
 0x58d   : > { %v4385_v38 = vor.u32 %v4693_v46, %v4384_v45  ;;  %v4715_v45 = vld [vmem:[%s8755_s5 + $0x10c] sm:$0xf]  ;;  %vm1727_vm1 = vweird.f32 %v6804_v4 }
 0x58e   : > { %v6786_v41 = vadd.f32 1e-05, %v1563_v58  ;;  %2412 = vmatmul.bf16.gmra.mxu3 %v6780_v9  ;;  %2510 = vmatmul.bf16.gmra.mxu1 %v6780_v9  ;;  %v4501_v58 = vor.u32 %v4719_v61, %v4498_v36  ;;  %v1715_v61 = vmul.f32 %v6674_v56, %v1714_v59  ;;  %v4368_v36 = vld [vmem:[%s8755_s5 + $0x28] sm:$0xf]  ;;  %v1705_v59 = vmul.f32 %v6679_v21, %v1704_v13  ;;  %v4482_v13 = vld [vmem:[%s8755_s5 + $0x118] sm:$0xf0]  ;;  %vm1728_vm5 = vmor %vm1726_vm4, %vm1727_vm1 }
 0x58f   : > { %2576 = vmatpush.bf16.msra.mxu3 %v4497_v22  ;;  %v1721_v22 = vmul.f32 %v6804_v4, %v6745_v34  ;;  %2526 = vmatpush.bf16.msrb.mxu2 %v4385_v38  ;;  %v4485_v47 = vor.u32 %v4715_v45, %v4482_v13  ;;  %v6857_v33 = vpack.c.bf16 %v1783_v29, %v1782_v10  ;;  %v4685_v29 = vld [vmem:[%s8755_s5 + $0x14] sm:$0xf0]  ;;  %v1898_v13 = vpop.permute.xlu2 %1897 }
 0x590   : > { %4874 = vrsqrt.f32 %v6786_v41  ;;  %2674 = vmatpush.bf16.msrb.mxu1 %v4501_v58  ;;  %v4373_v58 = vor.u32 %v4687_v25, %v4370_v12  ;;  %v1719_v26 = vsel %vm1718_vm12, %v6674_v56, %v1715_v61  ;;  %v1709_v25 = vsel %vm1708_vm14, %v6679_v21, %v1705_v59  ;;  %v4683_v21 = vld [vmem:[%s8755_s5 + $0xc] sm:$0xf]  ;;  %v1803_v45 = vld [vmem:[%s6003_s14 + $0x78] sm:$0xff] }
 0x591   : > { %v1722_v10 = vmul.f32 %v6804_v4, %v1721_v22  ;;  %v1753_v42 = vmul.f32 %v1719_v26, %v6372_v20  ;;  %v4354_v20 = vld [vmem:[%s8755_s5 + $0x18] sm:$0xf0]  ;;  %v1752_v26 = vmul.f32 %v1709_v25, %v6242_v53  ;;  %v6887_v53 = vmul.f32 %v1898_v13, %v1803_v45 }
 0x592   : > { %v2486_v50 = vpop.f32.mrf.mxu1  ;;  %2625 = vmatpush.bf16.msra.mxu0 %v4373_v58  ;;  %v1802_v58 = vld [vmem:[%s6003_s14 + $0x70] sm:$0xff]  ;;  %vm1736_vm2 = vweird.f32 %v6786_v41 }
 0x593   : > { %v6830_v62 = vadd.f32 %v2486_v50, %v2438_v19  ;;  %v4717_v19 = vld [vmem:[%s8755_s5 + $0x114] sm:$0xf0]  ;;  %v4369_v50 = vor.u32 %v4689_v16, %v4368_v36  ;;  %v4357_v36 = vor.u32 %v4683_v21, %v4354_v20  ;;  %v1723_v16 = vmul.f32 0.5, %v1722_v10  ;;  %8794 = vst [vmem:[#allocation11_spill] sm:$0xff] %v6887_v53 }
 0x594   : > { %v4481_v46 = vor.u32 %v4717_v19, %v4480_v37  ;;  %2675 = vmatpush.bf16.msrb.mxu1 %v4485_v47  ;;  %v4352_v47 = vld [vmem:[%s8755_s5 + $0x8] sm:$0xf]  ;;  %v1769_v37 = vmul.f32 %v1753_v42, %v6340_v51  ;;  %v1768_v22 = vmul.f32 %v1752_v26, %v6340_v51 }
 0x595   : > { %2527 = vmatpush.bf16.msrb.mxu2 %v4369_v50  ;;  %v4353_v61 = vor.u32 %v4685_v29, %v4352_v47  ;;  %v1724_v19 = vsub.f32 1.5, %v1723_v16 }
 0x596   : > { %v4875_v18 = vpop.eup %4874  ;;  %2577 = vmatpush.bf16.msra.mxu3 %v4481_v46  ;;  %2626 = vmatpush.bf16.msra.mxu0 %v4357_v36  ;;  %v1785_v50 = vadd.f32 %v1769_v37, %v6353_v44  ;;  %v1784_v10 = vadd.f32 %v1768_v22, %v6353_v44 }
 0x597   : > { %v1731_v12 = vmul.f32 %v4875_v18, %v6786_v41  ;;  %vm1737_vm15 = vweird.f32 %v4875_v18  ;;  %v1725_v42 = vmul.f32 %v6804_v4, %v1724_v19 }
 0x598   : > { %2358 = vmatmul.bf16.gmra.mxu2 %v6857_v33  ;;  %2456 = vmatmul.bf16.gmra.mxu0 %v6857_v33  ;;  %vm1738_vm3 = vmor %vm1736_vm2, %vm1737_vm15  ;;  %v6899_v47 = vpack.c.bf16 %v1785_v50, %v1784_v10  ;;  %v2335_v10 = vadd.f32 %v6580_v43, %v6629_v31 }
 0x599   : > { %v1732_v56 = vmul.f32 %v4875_v18, %v1731_v12  ;;  %2528 = vmatpush.bf16.msrb.mxu2 %v4353_v61  ;;  %v1729_v21 = vsel %vm1728_vm5, %v6804_v4, %v1725_v42 }
 0x59a   : > { %v1754_v61 = vmul.f32 %v1729_v21, %v6294_v30  ;;  %v6915_v36 = vpop.f32.mrf.mxu1  ;;  %v6921_v30 = vpop.f32.mrf.mxu0 }
 0x59b   : > { %v1733_v38 = vmul.f32 0.5, %v1732_v56 }
 0x59c   : > { %v1770_v34 = vmul.f32 %v1754_v61, %v6340_v51 }
 0x59d   : > { %v1734_v59 = vsub.f32 1.5, %v1733_v38 }
 0x59e   : > { %v1786_v26 = vadd.f32 %v1770_v34, %v6353_v44 }
 0x59f   : > { %v1735_v46 = vmul.f32 %v4875_v18, %v1734_v59 }
 0x5a1   : > { %v1739_v29 = vsel %vm1738_vm3, %v4875_v18, %v1735_v46 }
 0x5a2   : > { %v1755_v41 = vmul.f32 %v1739_v29, %v6437_v57  ;;  %v2491_v57 = vpop.f32.mrf.mxu1 }
 0x5a3   : > { %v1893_v12 = vpop.permute.xlu1 %1892 }
 0x5a4   : > { %v6889_v25 = vmul.f32 %v1893_v12, %v1802_v58  ;;  %v1771_v20 = vmul.f32 %v1755_v41, %v6340_v51  ;;  %v2390_v51 = vpop.f32.mrf.mxu3 }
 0x5a6   : > { %8795 = vst [vmem:[#allocation12_spill] sm:$0xff] %v6889_v25  ;;  %v6897_v56 = vpack.c.bf16 %v6887_v53, %v6889_v25  ;;  %v1787_v18 = vadd.f32 %v1771_v20, %v6353_v44 }
 0x5a8   : > { %2363 = vmatmul.bf16.gmra.mxu2 %v6899_v47  ;;  %2417 = vmatmul.bf16.gmra.mxu3 %v6897_v56  ;;  %v6913_v38 = vpack.c.bf16 %v1787_v18, %v1786_v26  ;;  %v2342_v18 = vadd.f32 %v6658_v32, %v6629_v31 }
 0x5a9   : > { %2461 = vmatmul.bf16.gmra.mxu0 %v6899_v47  ;;  %2515 = vmatmul.bf16.gmra.mxu1 %v6897_v56 }
 0x5aa   : > { %v6930_v37 = vpop.f32.mrf.mxu1  ;;  %v2391_v26 = vadd.f32 %v2390_v51, %v2342_v18  ;;  %v4614_v51 = vmul.f32 -1.442695, %v6696_v52 }
 0x5ac   : > { %v6934_v59 = vpop.f32.mrf.mxu3 }
 0x5b2   : > { %v2496_v45 = vpop.f32.mrf.mxu1 }
 0x5b4   : > { %v6939_v58 = vpop.f32.mrf.mxu3 }
 0x5b8   : > { %2368 = vmatmul.bf16.gmra.mxu2 %v6913_v38  ;;  %2578 = vmatmul.bf16.vlgmr.msra.gmra.mxu3 %v6032_v39 }
 0x5b9   : > { %2466 = vmatmul.bf16.gmra.mxu0 %v6913_v38  ;;  %2676 = vmatmul.bf16.vlgmr.msrb.gmra.mxu1 %v6032_v39 }
 0x5c4   : > { %v2442_v4 = vpop.f32.mrf.mxu0 }
 0x5c5   : > { %v2443_v16 = vadd.f32 %v2442_v4, %v6668_v27 }
 0x5c7   : > { %v6924_v44 = vadd.f32 %v2491_v57, %v2443_v16  ;;  %v4600_v57 = vmul.f32 -1.442695, %v6642_v17  ;;  %v4601_v16 = vmul.f32 -1.442695, %v2391_v26 }
 0x5c8   : > { %2529 = vmatmul.bf16.vlgmr.msrb.gmra.mxu2 %v6374_v5  ;;  %2583 = vmatmul.bf16.gmra.mxu3 %v6334_v63 }
 0x5c9   : > { %2627 = vmatmul.bf16.vlgmr.msra.gmra.mxu0 %v6374_v5  ;;  %2681 = vmatmul.bf16.gmra.mxu1 %v6334_v63  ;;  %v6945_v63 = vpop.f32.mrf.mxu3  ;;  %v6947_v5 = vpop.f32.mrf.mxu1 }
 0x5ca   : > { %v6949_v50 = vpop.f32.mrf.mxu2 }
 0x5cc   : > { %v6932_v39 = vpop.f32.mrf.mxu0 }
 0x5d1   : > { %v6955_v46 = vpop.f32.mrf.mxu3  ;;  %v2501_v12 = vpop.f32.mrf.mxu1 }
 0x5d4   : > { %v2447_v22 = vpop.f32.mrf.mxu0 }
 0x5d5   : > { %v2448_v19 = vadd.f32 %v2447_v22, %v6668_v27 }
 0x5d7   : > { %v6937_v13 = vadd.f32 %v2496_v45, %v2448_v19 }
 0x5d8   : > { %2534 = vmatmul.bf16.gmra.mxu2 %v6408_v35  ;;  %2588 = vmatmul.bf16.gmra.mxu3 %v6394_v8 }
 0x5d9   : > { %2632 = vmatmul.bf16.gmra.mxu0 %v6408_v35  ;;  %2686 = vmatmul.bf16.gmra.mxu1 %v6394_v8  ;;  %v6957_v35 = vpop.f32.mrf.mxu2  ;;  %v6959_v8 = vpop.f32.mrf.mxu3 }
 0x5da   : > { %v2503_v42 = vpop.f32.mrf.mxu1 }
 0x5dc   : > { %v6974_v41 = vpop.f32.mrf.mxu0 }
 0x5e1   : > { %v6965_v29 = vpop.f32.mrf.mxu2  ;;  %v6972_v21 = vpop.f32.mrf.mxu3 }
 0x5e8   : > { %2539 = vmatmul.bf16.gmra.mxu2 %v6521_v0  ;;  %2593 = vmatmul.bf16.gmra.mxu3 %v6427_v1 }
 0x5e9   : > { %2637 = vmatmul.bf16.gmra.mxu0 %v6521_v0  ;;  %2691 = vmatmul.bf16.gmra.mxu1 %v6427_v1  ;;  %v2337_v1 = vadd.f32 %v6595_v24, %v6629_v31  ;;  %v2384_v0 = vadd.f32 %v6578_v6, %v2335_v10 }
 0x5eb   : > { %v2386_v43 = vadd.f32 %v6615_v28, %v2337_v1  ;;  %v4598_v61 = vmul.f32 -1.442695, %v2384_v0 }
 0x5ed   : > { %v4599_v34 = vmul.f32 -1.442695, %v2386_v43  ;;  %4876 = vpow2.f32 %v4598_v61 }
 0x5ef   : > { %4878 = vpow2.f32 %v4599_v34 }
 0x5f0   : > { %4880 = vpow2.f32 %v4600_v57 }
 0x5f1   : > { %4882 = vpow2.f32 %v4601_v16 }
 0x5f2   : > { %4884 = vpow2.f32 %v4614_v51 }
 0x5f3   : > { %v4877_v28 = vpop.eup %4876 }
 0x5f4   : > { %v6994_v17 = vadd.f32 1.0, %v4877_v28 }
 0x5f5   : > { %v4879_v19 = vpop.eup %4878 }
 0x5f6   : > { %4886 = vrcp.f32 %v6994_v17  ;;  %v4881_v52 = vpop.eup %4880  ;;  %vm2786_vm0 = vweird.f32 %v6994_v17 }
 0x5f7   : > { %v4883_v34 = vpop.eup %4882  ;;  %v7012_v18 = vadd.f32 1.0, %v4881_v52 }
 0x5f8   : > { %2544 = vmatmul.bf16.gmra.mxu2 %v6545_v2  ;;  %2598 = vmatmul.bf16.gmra.mxu3 %v6472_v49  ;;  %v7020_v28 = vadd.f32 1.0, %v4883_v34 }
 0x5f9   : > { %2642 = vmatmul.bf16.gmra.mxu0 %v6545_v2  ;;  %2696 = vmatmul.bf16.gmra.mxu1 %v6472_v49  ;;  %v6979_v2 = vpop.f32.mrf.mxu2  ;;  %vm2816_vm14 = vweird.f32 %v7012_v18 }
 0x5fa   : > { %vm2831_vm4 = vweird.f32 %v7020_v28 }
 0x5fb   : > { %v2506_v20 = vpop.f32.mrf.mxu1 }
 0x601   : > { %v6981_v49 = vpop.f32.mrf.mxu3 }
 0x603   : > { %v2508_v32 = vpop.f32.mrf.mxu1 }
 0x605   : > { %v2452_v24 = vpop.f32.mrf.mxu0 }
 0x606   : > { %v2453_v6 = vadd.f32 %v2452_v24, %v6668_v27 }
 0x608   : > { %v6985_v4 = vadd.f32 %v2501_v12, %v2453_v6  ;;  %2549 = vmatmul.bf16.gmra.mxu2 %v6743_v55  ;;  %2603 = vmatmul.bf16.gmra.mxu3 %v6666_v54 }
 0x609   : > { %2647 = vmatmul.bf16.gmra.mxu0 %v6743_v55  ;;  %2701 = vmatmul.bf16.gmra.mxu1 %v6666_v54  ;;  %v6997_v10 = vpop.f32.mrf.mxu3  ;;  %v6999_v55 = vadd.f32 1.0, %v4879_v19  ;;  %v2435_v54 = vadd.f32 %v6706_v48, %v6668_v27  ;;  %v2440_v48 = vadd.f32 %v6921_v30, %v6668_v27 }
 0x60a   : > { %8796 = vst [vmem:[#allocation13_spill] sm:$0xff] %v6997_v10 }
 0x60b   : > { %v6991_v22 = vpop.f32.mrf.mxu2  ;;  %v2484_v0 = vadd.f32 %v6766_v11, %v2435_v54  ;;  %4888 = vrcp.f32 %v6999_v55  ;;  %v7010_v61 = vpop.f32.mrf.mxu1  ;;  %v2489_v11 = vadd.f32 %v6915_v36, %v2440_v48  ;;  %v4616_v36 = vmul.f32 -1.442695, %v6830_v62 }
 0x60c   : > { %4890 = vrcp.f32 %v7012_v18  ;;  %vm2801_vm8 = vweird.f32 %v6999_v55 }
 0x60d   : > { %v2454_v45 = vpop.f32.mrf.mxu0  ;;  %v4615_v6 = vmul.f32 -1.442695, %v2484_v0 }
 0x60e   : > { %v2455_v12 = vadd.f32 %v2454_v45, %v6668_v27  ;;  %v4617_v45 = vmul.f32 -1.442695, %v2489_v11 }
 0x60f   : > { %4892 = vpow2.f32 %v4615_v6 }
 0x610   : > { %v7003_v1 = vadd.f32 %v2503_v42, %v2455_v12  ;;  %v4885_v42 = vpop.eup %4884  ;;  %4894 = vrcp.f32 %v7020_v28 }
 0x611   : > { %v7017_v57 = vpop.eup %4886  ;;  %v7027_v30 = vadd.f32 1.0, %v4885_v42  ;;  %v7029_v51 = vpop.f32.mrf.mxu3 }
 0x612   : > { %v7033_v19 = vpop.eup %4888  ;;  %vm2787_vm6 = vweird.f32 %v7017_v57 }
 0x613   : > { %v7007_v43 = vpop.f32.mrf.mxu2  ;;  %4896 = vrcp.f32 %v7027_v30  ;;  %v7049_v48 = vpop.eup %4890  ;;  %vm7103_vm9 = vmor %vm2786_vm0, %vm2787_vm6  ;;  %vm2802_vm10 = vweird.f32 %v7033_v19  ;;  %vm3090_vm0 = vweird.f32 %v7027_v30 }
 0x614   : > { %4898 = vpow2.f32 %v4616_v36  ;;  %v2812_v36 = vmul.f32 %v7049_v48, %v7012_v18  ;;  %vm7131_vm12 = vmor %vm2801_vm8, %vm2802_vm10  ;;  %vm2817_vm13 = vweird.f32 %v7049_v48 }
 0x615   : > { %v2457_v24 = vpop.f32.mrf.mxu0  ;;  %4900 = vpow2.f32 %v4617_v45  ;;  %vm7173_vm1 = vmor %vm2816_vm14, %vm2817_vm13 }
 0x616   : > { %v2458_v26 = vadd.f32 %v2457_v24, %v6668_v27  ;;  %v4893_v24 = vpop.eup %4892 }
 0x618   : > { %v7022_v16 = vadd.f32 %v2506_v20, %v2458_v26  ;;  %2554 = vmatmul.bf16.gmra.mxu2 %v6857_v33  ;;  %2608 = vmatmul.bf16.gmra.mxu3 %v6780_v9  ;;  %v2782_v20 = vmul.f32 %v7017_v57, %v6994_v17  ;;  %v7053_v26 = vpop.eup %4894 }
 0x619   : > { %2652 = vmatmul.bf16.gmra.mxu0 %v6857_v33  ;;  %2706 = vmatmul.bf16.gmra.mxu1 %v6780_v9  ;;  %v2797_v9 = vmul.f32 %v7033_v19, %v6999_v55  ;;  %v7043_v33 = vpop.f32.mrf.mxu1  ;;  %v2827_v7 = vmul.f32 %v7053_v26, %v7020_v28  ;;  %vm2832_vm2 = vweird.f32 %v7053_v26 }
 0x61a   : > { %v2783_v34 = vsub.f32 1.0, %v2782_v20  ;;  %vm7202_vm5 = vmor %vm2831_vm4, %vm2832_vm2 }
 0x61b   : > { %v2359_v12 = vpop.f32.mrf.mxu2  ;;  %v2798_v6 = vsub.f32 1.0, %v2797_v9 }
 0x61c   : > { %v2360_v54 = vadd.f32 %v2359_v12, %v6629_v31  ;;  %v2784_v11 = vmul.f32 %v7017_v57, %v2783_v34  ;;  %v7058_v12 = vpop.eup %4896  ;;  %v2805_v34 = vand.u32 2147483647, %v6999_v55 }
 0x61d   : > { %v2459_v52 = vpop.f32.mrf.mxu0  ;;  %v4899_v45 = vpop.eup %4898  ;;  %vm3091_vm3 = vweird.f32 %v7058_v12 }
 0x61e   : > { %v7046_v62 = vadd.f32 %v6981_v49, %v2360_v54  ;;  %v2460_v0 = vadd.f32 %v2459_v52, %v6668_v27  ;;  %v7060_v49 = vadd.f32 1.0, %v4893_v24  ;;  %v7062_v54 = vpop.f32.mrf.mxu3  ;;  %v2792_v52 = vand.u32 2147483648, %v6994_v17  ;;  %v4901_v9 = vpop.eup %4900 }
 0x61f   : > { %8799 = vst [vmem:[#allocation16_spill] sm:$0xff] %v7062_v54  ;;  %v3086_v24 = vmul.f32 %v7058_v12, %v7027_v30  ;;  %v2785_v54 = vadd.f32 %v7017_v57, %v2784_v11  ;;  %v7080_v10 = vadd.f32 1.0, %v4899_v45  ;;  %vm7113_vm11 = vcmp.eq.f32.partialorder %v2805_v34, 8.507059e+37 }
 0x620   : > { %8797 = vst [vmem:[#allocation14_spill] sm:$0xff] %v7046_v62  ;;  %v7051_v42 = vadd.f32 %v2508_v32, %v2460_v0  ;;  %v2790_v32 = vand.u32 2147483647, %v6994_v17  ;;  %v2799_v0 = vmul.f32 %v7033_v19, %v2798_v6  ;;  %4902 = vrcp.f32 %v7060_v49 }
 0x621   : > { %v2345_v6 = vadd.f32 %v6949_v50, %v6629_v31  ;;  %v7085_v62 = vadd.f32 1.0, %v4901_v9  ;;  %4904 = vrcp.f32 %v7080_v10 }
 0x622   : > { %8798 = vst [vmem:[#allocation15_spill] sm:$0xff] %v7051_v42  ;;  %v2813_v42 = vsub.f32 1.0, %v2812_v36  ;;  %vm7089_vm7 = vcmp.eq.f32.partialorder %v2790_v32, 8.507059e+37  ;;  %v2793_v36 = vor.u32 1.1754944e-38, %v2792_v52  ;;  %v2800_v50 = vadd.f32 %v7033_v19, %v2799_v0 }
 0x623   : > { %v7064_v20 = vpop.f32.mrf.mxu2  ;;  %v2807_v32 = vand.u32 2147483648, %v6999_v55  ;;  %v4618_v52 = vmul.f32 -1.442695, %v6924_v44  ;;  %v2394_v9 = vadd.f32 %v6934_v59, %v2345_v6  ;;  %4906 = vrcp.f32 %v7085_v62 }
 0x624   : > { %8800 = vst [vmem:[#allocation17_spill] sm:$0xff] %v7064_v20  ;;  %v2814_v17 = vmul.f32 %v7049_v48, %v2813_v42  ;;  %v2820_v44 = vand.u32 2147483647, %v7012_v18  ;;  %vm3135_vm2 = vweird.f32 %v7085_v62 }
 0x625   : > { %v2808_v34 = vor.u32 1.1754944e-38, %v2807_v32  ;;  %4908 = vpow2.f32 %v4618_v52 }
 0x626   : > { %v2462_v53 = vpop.f32.mrf.mxu0  ;;  %v7074_v25 = vpop.f32.mrf.mxu1  ;;  %vm7160_vm15 = vcmp.eq.f32.partialorder %v2820_v44, 8.507059e+37 }
 0x627   : > { %v2463_v20 = vadd.f32 %v2462_v53, %v6668_v27  ;;  %v7136_v59 = vpop.eup %4902 }
 0x628   : > { %2559 = vmatmul.bf16.gmra.mxu2 %v6899_v47  ;;  %2613 = vmatmul.bf16.gmra.mxu3 %v6897_v56  ;;  %vm3106_vm10 = vweird.f32 %v7136_v59 }
 0x629   : > { %v7095_v45 = vadd.f32 %v7010_v61, %v2463_v20  ;;  %2657 = vmatmul.bf16.gmra.mxu0 %v6899_v47  ;;  %2711 = vmatmul.bf16.gmra.mxu1 %v6897_v56  ;;  %v2789_v47 = vsel %vm7103_vm9, %v7017_v57, %v2785_v54  ;;  %v2828_v61 = vsub.f32 1.0, %v2827_v7  ;;  %v3087_v20 = vsub.f32 1.0, %v3086_v24 }
 0x62a   : > { %v2445_v57 = vadd.f32 %v6932_v39, %v6668_v27  ;;  %v7140_v42 = vsel %vm7089_vm7, %v2793_v36, %v2789_v47  ;;  %v2804_v39 = vsel %vm7131_vm12, %v7033_v19, %v2800_v50  ;;  %v2822_v24 = vand.u32 2147483648, %v7012_v18  ;;  %vm7221_vm7 = vmor %vm3090_vm0, %vm3091_vm3 }
 0x62b   : > { %8803 = vst [vmem:[#allocation18_spill] sm:$0xff] %v7095_v45  ;;  %v2364_v0 = vpop.f32.mrf.mxu2  ;;  %v7121_v45 = vpop.f32.mrf.mxu3  ;;  %v2829_v11 = vmul.f32 %v7053_v26, %v2828_v61  ;;  %v4602_v36 = vmul.f32 -1.442695, %v2394_v9  ;;  %v3088_v19 = vmul.f32 %v7058_v12, %v3087_v20  ;;  %v3101_v50 = vmul.f32 %v7136_v59, %v7060_v49 }
 0x62c   : > { %v2365_v54 = vadd.f32 %v2364_v0, %v6629_v31  ;;  %v2815_v0 = vadd.f32 %v7049_v48, %v2814_v17  ;;  %v7164_v17 = vpop.eup %4904  ;;  %v7171_v52 = vsel %vm7113_vm11, %v2808_v34, %v2804_v39  ;;  %v2835_v18 = vand.u32 2147483647, %v7020_v28 }
 0x62d   : > { %v7178_v9 = vpop.eup %4906  ;;  %v2837_v56 = vand.u32 2147483648, %v7020_v28  ;;  %4910 = vpow2.f32 %v4602_v36  ;;  %v2830_v44 = vadd.f32 %v7053_v26, %v2829_v11  ;;  %v3089_v39 = vadd.f32 %v7058_v12, %v3088_v19 }
 0x62e   : > { %v7147_v55 = vadd.f32 %v7029_v51, %v2365_v54  ;;  %v2464_v6 = vpop.f32.mrf.mxu0  ;;  %v7149_v53 = vpop.f32.mrf.mxu1  ;;  %v2494_v51 = vadd.f32 %v6930_v37, %v2445_v57  ;;  %v2823_v37 = vor.u32 1.1754944e-38, %v2822_v24  ;;  %v2347_v57 = vadd.f32 %v6957_v35, %v6629_v31 }
 0x62f   : > { %v2465_v47 = vadd.f32 %v2464_v6, %v6668_v27  ;;  %v3102_v35 = vsub.f32 1.0, %v3101_v50  ;;  %v4909_v24 = vpop.eup %4908  ;;  %v3116_v6 = vmul.f32 %v7164_v17, %v7080_v10  ;;  %v3094_v36 = vand.u32 2147483647, %v7027_v30 }
 0x630   : > { %v4619_v34 = vmul.f32 -1.442695, %v2494_v51  ;;  %v2396_v28 = vadd.f32 %v6939_v58, %v2347_v57  ;;  %vm7215_vm6 = vcmp.eq.f32.partialorder %v2835_v18, 8.507059e+37  ;;  %v2838_v20 = vor.u32 1.1754944e-38, %v2837_v56 }
 0x631   : > { %v7167_v61 = vadd.f32 %v7043_v33, %v2465_v47  ;;  %v2819_v33 = vsel %vm7173_vm1, %v7049_v48, %v2815_v0  ;;  %v3096_v48 = vand.u32 2147483648, %v7027_v30  ;;  %v3131_v0 = vmul.f32 %v7178_v9, %v7085_v62 }
 0x632   : > { %v7213_v50 = vsel %vm7160_vm15, %v2823_v37, %v2819_v33  ;;  %v2834_v30 = vsel %vm7202_vm5, %v7053_v26, %v2830_v44  ;;  %v3093_v32 = vsel %vm7221_vm7, %v7058_v12, %v3089_v39  ;;  %v3109_v37 = vand.u32 2147483647, %v7060_v49 }
 0x633   : > { %8812 = vst [vmem:[#allocation19_spill] sm:$0xff] %v7167_v61  ;;  %v7187_v54 = vpop.f32.mrf.mxu2  ;;  %v7189_v7 = vpop.f32.mrf.mxu3  ;;  %v7233_v18 = vadd.f32 1.0, %v4909_v24  ;;  %4912 = vpow2.f32 %v4619_v34  ;;  %v3097_v57 = vor.u32 1.1754944e-38, %v3096_v48  ;;  %v3103_v33 = vmul.f32 %v7136_v59, %v3102_v35 }
 0x634   : > { %8815 = vst [vmem:[#allocation20_spill] sm:$0xff] %v7189_v7  ;;  %v4911_v56 = vpop.eup %4910  ;;  %v3132_v61 = vsub.f32 1.0, %v3131_v0  ;;  %vm3095_vm8 = vcmp.eq.f32.partialorder %v3094_v36, 8.507059e+37  ;;  %v4603_v26 = vmul.f32 -1.442695, %v2396_v28  ;;  %v2450_v12 = vadd.f32 %v6974_v41, %v6668_v27 }
 0x635   : > { %v7243_v7 = vsel %vm3095_vm8, %v3097_v57, %v3093_v32  ;;  %vm3105_vm9 = vweird.f32 %v7060_v49  ;;  %v7250_v35 = vsel %vm7215_vm6, %v2838_v20, %v2834_v30  ;;  %vm7253_vm11 = vcmp.eq.f32.partialorder %v3109_v37, 8.507059e+37 }
 0x636   : > { %v2467_v47 = vpop.f32.mrf.mxu0  ;;  %v7209_v19 = vpop.f32.mrf.mxu1  ;;  %4914 = vrcp.f32 %v7233_v18  ;;  %v7259_v41 = vadd.f32 1.0, %v4911_v56  ;;  %v3104_v48 = vadd.f32 %v7136_v59, %v3103_v33  ;;  %v2350_v24 = vadd.f32 %v6965_v29, %v6629_v31  ;;  %vm7285_vm12 = vmor %vm3105_vm9, %vm3106_vm10 }
 0x637   : > { %v2468_v58 = vadd.f32 %v2467_v47, %v6668_v27  ;;  %v3117_v47 = vsub.f32 1.0, %v3116_v6  ;;  %v3133_v36 = vmul.f32 %v7178_v9, %v3132_v61  ;;  %4916 = vpow2.f32 %v4603_v26 }
 0x638   : > { %2564 = vmatmul.bf16.gmra.mxu2 %v6913_v38  ;;  %v2499_v51 = vadd.f32 %v6947_v5, %v2450_v12  ;;  %v2352_v20 = vadd.f32 %v6979_v2, %v6629_v31  ;;  %v7279_v37 = vmul.f32 %v7243_v7, %v6025_v14  ;;  %4918 = vrcp.f32 %v7259_v41 }
 0x639   : > { %v7238_v11 = vadd.f32 %v7074_v25, %v2468_v58  ;;  %2662 = vmatmul.bf16.gmra.mxu0 %v6913_v38  ;;  %v3111_v38 = vand.u32 2147483648, %v7060_v49  ;;  %v3118_v0 = vmul.f32 %v7164_v17, %v3117_v47  ;;  %v4913_v28 = vpop.eup %4912  ;;  %v4620_v61 = vmul.f32 -1.442695, %v6937_v13 }
 0x63a   : > { %v3108_v14 = vsel %vm7285_vm12, %v7136_v59, %v3104_v48  ;;  %vm3121_vm13 = vweird.f32 %v7164_v17  ;;  %v2399_v49 = vadd.f32 %v6945_v63, %v2350_v24  ;;  %v4621_v47 = vmul.f32 -1.442695, %v2499_v51  ;;  %v5132_v63 = vld [vmem:[%s8756_s6 + $0x20] ss:$8 sm:$0xf] }
 0x63b   : > { %8822 = vst [vmem:[#allocation21_spill] sm:$0xff] %v7238_v11  ;;  %v2369_v44 = vpop.f32.mrf.mxu2  ;;  %v7246_v39 = vpop.f32.mrf.mxu3  ;;  %v3112_v2 = vor.u32 1.1754944e-38, %v3111_v38  ;;  %v3119_v33 = vadd.f32 %v7164_v17, %v3118_v0  ;;  %v2401_v13 = vadd.f32 %v6955_v46, %v2352_v20  ;;  %v3134_v26 = vadd.f32 %v7178_v9, %v3133_v36 }
 0x63c   : > { %v2370_v34 = vadd.f32 %v2369_v44, %v6629_v31  ;;  %v7303_v56 = vpop.eup %4914  ;;  %vm3136_vm14 = vweird.f32 %v7178_v9  ;;  %vm3120_vm15 = vweird.f32 %v7080_v10  ;;  %v3124_v44 = vand.u32 2147483647, %v7080_v10 }
 0x63d   : > { %v3141_v46 = vand.u32 2147483648, %v7085_v62  ;;  %v4917_v38 = vpop.eup %4916  ;;  %4920 = vpow2.f32 %v4620_v61  ;;  %vm7326_vm1 = vmor %vm3120_vm15, %vm3121_vm13  ;;  %v3139_v24 = vand.u32 2147483647, %v7085_v62  ;;  %v4604_v0 = vmul.f32 -1.442695, %v2399_v49 }
 0x63e   : > { %v7272_v58 = vadd.f32 %v7121_v45, %v2370_v34  ;;  %v2469_v30 = vpop.f32.mrf.mxu0  ;;  %v7274_v32 = vpop.f32.mrf.mxu1  ;;  %v3126_v45 = vand.u32 2147483648, %v7080_v10  ;;  %v7322_v34 = vsel %vm7253_vm11, %v3112_v2, %v3108_v14  ;;  %v3146_v10 = vmul.f32 %v7303_v56, %v7233_v18  ;;  %vm7340_vm3 = vmor %vm3135_vm2, %vm3136_vm14 }
 0x63f   : > { %v2470_v29 = vadd.f32 %v2469_v30, %v6668_v27  ;;  %v7296_v27 = vadd.f32 1.0, %v4913_v28  ;;  %v3123_v25 = vsel %vm7326_vm1, %v7164_v17, %v3119_v33  ;;  %v7344_v28 = vpop.eup %4918  ;;  %v4605_v62 = vmul.f32 -1.442695, %v2401_v13 }
 0x640   : > { %v3127_v30 = vor.u32 1.1754944e-38, %v3126_v45  ;;  %v7351_v5 = vadd.f32 1.0, %v4917_v38  ;;  %vm3125_vm4 = vcmp.eq.f32.partialorder %v3124_v44, 8.507059e+37  ;;  %v3142_v2 = vor.u32 1.1754944e-38, %v3141_v46 }
 0x641   : > { %v7300_v57 = vadd.f32 %v7149_v53, %v2470_v29  ;;  %v7315_v53 = vperm.slane %v5132_v63, 3  ;;  %4922 = vrcp.f32 %v7296_v27  ;;  %v3138_v29 = vsel %vm7340_vm3, %v7178_v9, %v3134_v26 }
 0x642   : > { %4924 = vpow2.f32 %v4621_v47  ;;  %v7354_v61 = vperm.slane %v5132_v63, 2  ;;  %v7357_v49 = vsel %vm3125_vm4, %v3127_v30, %v3123_v25  ;;  %vm3140_vm5 = vcmp.eq.f32.partialorder %v3139_v24, 8.507059e+37 }
 0x643   : > { %8827 = vst [vmem:[#allocation22_spill] sm:$0xff] %v7300_v57  ;;  %v7308_v59 = vpop.f32.mrf.mxu2  ;;  %v7310_v12 = vpop.f32.mrf.mxu3  ;;  %4926 = vpow2.f32 %v4604_v0  ;;  %v2842_v45 = vmul.f32 %v7344_v28, %v7259_v41  ;;  %v7361_v33 = vsel %vm3140_vm5, %v3142_v2, %v3138_v29  ;;  %v3147_v9 = vsub.f32 1.0, %v3146_v10 }
 0x644   : > { %8828 = vst [vmem:[#allocation23_spill] sm:$0xff] %v7308_v59  ;;  %v4921_v47 = vpop.eup %4920  ;;  %4928 = vpow2.f32 %v4605_v62  ;;  %v7366_v26 = vmul.f32 %v7322_v34, %v6023_v15  ;;  %v3156_v63 = vand.u32 2147483648, %v7233_v18  ;;  %v7377_v24 = vmul.f32 %v7357_v49, %v6327_v23 }
 0x645   : > { %4930 = vrcp.f32 %v7351_v5  ;;  %v2852_v0 = vand.u32 2147483648, %v7259_v41  ;;  %v7385_v36 = vmul.f32 %v7361_v33, %v6329_v40  ;;  %v7387_v62 = vadd.f32 1.0, %v4921_v47 }
 0x646   : > { %v2628_v51 = vpop.f32.mrf.mxu0  ;;  %v7346_v20 = vpop.f32.mrf.mxu1  ;;  %v3148_v30 = vmul.f32 %v7303_v56, %v3147_v9  ;;  %vm3150_vm0 = vweird.f32 %v7233_v18  ;;  %v3171_v25 = vand.u32 2147483648, %v7296_v27  ;;  %vm2846_vm6 = vweird.f32 %v7259_v41 }
 0x647   : > { %v2629_v17 = vadd.f32 %v2628_v51, %v7315_v53  ;;  %v7369_v44 = vpop.eup %4922  ;;  %v2843_v51 = vsub.f32 1.0, %v2842_v45  ;;  %v2850_v45 = vand.u32 2147483647, %v7259_v41  ;;  %vm3151_vm8 = vweird.f32 %v7303_v56 }
 0x648   : > { %v4925_v10 = vpop.eup %4924  ;;  %4932 = vrcp.f32 %v7387_v62  ;;  %v3149_v14 = vadd.f32 %v7303_v56, %v3148_v30  ;;  %vm2847_vm9 = vweird.f32 %v7344_v28  ;;  %v4622_v59 = vmul.f32 -1.442695, %v6985_v4  ;;  %vm7441_vm11 = vmor %vm3150_vm0, %vm3151_vm8 }
 0x649   : > { %v2678_v13 = vadd.f32 %v7209_v19, %v2629_v17  ;;  %v3154_v19 = vand.u32 2147483647, %v7233_v18  ;;  %v4927_v48 = vpop.eup %4926  ;;  %v7396_v40 = vadd.f32 1.0, %v4925_v10  ;;  %v3169_v10 = vand.u32 2147483647, %v7296_v27  ;;  %vm7470_vm14 = vmor %vm2846_vm6, %vm2847_vm9 }
 0x64a   : > { %v7417_v6 = vadd.f32 1.0, %v4927_v48  ;;  %vm7430_vm10 = vcmp.eq.f32.partialorder %v2850_v45, 8.507059e+37  ;;  %v2355_v4 = vadd.f32 %v6991_v22, %v6629_v31  ;;  %vm3165_vm12 = vweird.f32 %v7296_v27 }
 0x64b   : > { %v2530_v46 = vpop.f32.mrf.mxu2  ;;  %v7372_v38 = vpop.f32.mrf.mxu3  ;;  %v3325_v23 = vmul.f32 %v7140_v42, %v2678_v13  ;;  %vm7401_vm7 = vcmp.eq.f32.partialorder %v3154_v19, 8.507059e+37  ;;  %v3161_v42 = vmul.f32 %v7369_v44, %v7296_v27  ;;  %v2844_v19 = vmul.f32 %v7344_v28, %v2843_v51 }
 0x64c   : > { %v2531_v15 = vadd.f32 %v2530_v46, %v7354_v61  ;;  %v3157_v46 = vor.u32 1.1754944e-38, %v3156_v63  ;;  %v7407_v63 = vor.u32 1.1754944e-38, %v2852_v0  ;;  %vm3166_vm13 = vweird.f32 %v7369_v44 }
 0x64d   : > { %v3162_v51 = vsub.f32 1.0, %v3161_v42  ;;  %v3153_v42 = vsel %vm7441_vm11, %v7303_v56, %v3149_v14  ;;  %vm7486_vm15 = vcmp.eq.f32.partialorder %v3169_v10, 8.507059e+37  ;;  %vm2861_vm1 = vweird.f32 %v7351_v5  ;;  %vm7539_vm3 = vmor %vm3165_vm12, %vm3166_vm13 }
 0x64e   : > { %v2580_v29 = vadd.f32 %v7246_v39, %v2531_v15  ;;  %v2630_v17 = vpop.f32.mrf.mxu0  ;;  %v7393_v2 = vpop.f32.mrf.mxu1  ;;  %vm3180_vm0 = vweird.f32 %v7387_v62  ;;  %vm3195_vm6 = vweird.f32 %v7396_v40  ;;  %vm2876_vm8 = vweird.f32 %v7417_v6 }
 0x64f   : > { %v2631_v47 = vadd.f32 %v2630_v17, %v7315_v53  ;;  %v4929_v39 = vpop.eup %4928  ;;  %v2867_v17 = vand.u32 2147483648, %v7351_v5  ;;  %v3163_v14 = vmul.f32 %v7369_v44, %v3162_v51  ;;  %v2404_v51 = vadd.f32 %v6959_v8, %v2355_v4 }
 0x650   : > { %v3341_v13 = vadd.f32 %v3325_v23, %v2580_v29  ;;  %v7411_v15 = vpop.eup %4930  ;;  %v7420_v23 = vor.u32 1.1754944e-38, %v3171_v25  ;;  %v7423_v29 = vadd.f32 1.0, %v4929_v39 }
 0x651   : > { %v2680_v0 = vadd.f32 %v7274_v32, %v2631_v47  ;;  %v2857_v32 = vmul.f32 %v7411_v15, %v7351_v5  ;;  %v7448_v45 = vor.u32 1.1754944e-38, %v2867_v17  ;;  %v7460_v22 = vpop.eup %4932  ;;  %vm2862_vm2 = vweird.f32 %v7411_v15 }
 0x652   : > { %4934 = vtanh.f32 %v3341_v13  ;;  %v3176_v8 = vmul.f32 %v7460_v22, %v7387_v62  ;;  %vm3181_vm5 = vweird.f32 %v7460_v22  ;;  %vm2891_vm13 = vweird.f32 %v7423_v29 }
 0x653   : > { %4936 = vrcp.f32 %v7396_v40  ;;  %v2532_v57 = vpop.f32.mrf.mxu2  ;;  %v7425_v11 = vpop.f32.mrf.mxu3  ;;  %v3326_v18 = vmul.f32 %v7171_v52, %v2680_v0  ;;  %v2858_v0 = vsub.f32 1.0, %v2857_v32  ;;  %v3186_v32 = vand.u32 2147483648, %v7387_v62 }
 0x654   : > { %v2533_v48 = vadd.f32 %v2532_v57, %v7354_v61  ;;  %v2845_v57 = vadd.f32 %v7344_v28, %v2844_v19  ;;  %4938 = vrcp.f32 %v7417_v6  ;;  %v3184_v19 = vand.u32 2147483647, %v7387_v62 }
 0x655   : > { %4940 = vrcp.f32 %v7423_v29  ;;  %v3177_v30 = vsub.f32 1.0, %v3176_v8  ;;  %v2897_v62 = vand.u32 2147483648, %v7423_v29 }
 0x656   : > { %v2582_v39 = vadd.f32 %v7310_v12, %v2533_v48  ;;  %v2633_v13 = vpop.f32.mrf.mxu0  ;;  %v7457_v25 = vpop.f32.mrf.mxu1  ;;  %4942 = vpow2.f32 %v4622_v59  ;;  %v7476_v48 = vsel %vm7401_vm7, %v3157_v46, %v3153_v42  ;;  %v8841_v59 = vsub.f32 1.0, %v7243_v7  ;;  %vm7584_vm7 = vmor %vm2861_vm1, %vm2862_vm2 }
 0x657   : > { %v2634_v56 = vadd.f32 %v2633_v13, %v7315_v53  ;;  %v2849_v41 = vsel %vm7470_vm14, %v7344_v28, %v2845_v57  ;;  %v2882_v46 = vand.u32 2147483648, %v7417_v6  ;;  %v2357_v28 = vadd.f32 %v7007_v43, %v6629_v31  ;;  %vm7639_vm14 = vmor %vm3180_vm0, %vm3181_vm5 }
 0x658   : > { %v4935_v17 = vpop.eup %4934  ;;  %v3342_v52 = vadd.f32 %v3326_v18, %v2582_v39  ;;  %v3377_v57 = vsub.f32 1.0, %v7476_v48  ;;  %v3164_v42 = vadd.f32 %v7369_v44, %v3163_v14  ;;  %v7515_v43 = vmul.f32 %v7476_v48, %v6383_v60 }
 0x659   : > { %v7478_v47 = vpop.eup %4936  ;;  %v3389_v18 = vmul.f32 %v4935_v17, %v8841_v59  ;;  %v2683_v7 = vadd.f32 %v7346_v20, %v2634_v56  ;;  %v2859_v56 = vmul.f32 %v7411_v15, %v2858_v0  ;;  %v7525_v14 = vsel %vm7430_vm10, %v7407_v63, %v2849_v41 }
 0x65a   : > { %4944 = vtanh.f32 %v3342_v52  ;;  %v7509_v13 = vpop.eup %4938  ;;  %v3191_v17 = vmul.f32 %v7478_v47, %v7396_v40  ;;  %v4606_v52 = vmul.f32 -1.442695, %v2404_v51  ;;  %v2880_v12 = vand.u32 2147483647, %v7417_v6 }
 0x65b   : > { %v2535_v9 = vpop.f32.mrf.mxu2  ;;  %v7503_v10 = vpop.f32.mrf.mxu3  ;;  %v3421_v4 = vadd.f32 %v7279_v37, %v3389_v18  ;;  %v3327_v60 = vmul.f32 %v7213_v50, %v2683_v7  ;;  %v7533_v51 = vor.u32 1.1754944e-38, %v2882_v46  ;;  %v4623_v41 = vmul.f32 -1.442695, %v7003_v1 }
 0x65c   : > { %v2536_v20 = vadd.f32 %v2535_v9, %v7354_v61  ;;  %v7519_v37 = vpop.eup %4940  ;;  %v2406_v50 = vadd.f32 %v6972_v21, %v2357_v28  ;;  %v8846_v7 = vand.u32 2147483647, %v7351_v5  ;;  %v3168_v27 = vsel %vm7539_vm3, %v7369_v44, %v3164_v42 }
 0x65d   : > { %3453 = vadd.xlane.f32.xlu2 %v3421_v4  ;;  %3437 = vst [vmem:[%s7495_s26] sm:$0xff] %v3421_v4  ;;  %v4943_v0 = vpop.eup %4942  ;;  %v2860_v1 = vadd.f32 %v7411_v15, %v2859_v56  ;;  %v2872_v21 = vmul.f32 %v7509_v13, %v7417_v6  ;;  %v3192_v28 = vsub.f32 1.0, %v3191_v17  ;;  %4946 = vpow2.f32 %v4606_v52 }
 0x65e   : > { %v2585_v59 = vadd.f32 %v7372_v38, %v2536_v20  ;;  %v2635_v18 = vpop.f32.mrf.mxu0  ;;  %v7531_v9 = vpop.f32.mrf.mxu1  ;;  %vm7548_vm4 = vcmp.eq.f32.partialorder %v8846_v7, 8.507059e+37  ;;  %v7559_v20 = vadd.f32 1.0, %v4943_v0  ;;  %v2887_v63 = vmul.f32 %v7519_v37, %v7423_v29 }
 0x65f   : > { %v2636_v38 = vadd.f32 %v2635_v18, %v7315_v53  ;;  %v8849_v18 = vsub.f32 1.0, %v7322_v34  ;;  %v7570_v42 = vsel %vm7486_vm15, %v7420_v23, %v3168_v27  ;;  %v7572_v56 = vor.u32 1.1754944e-38, %v3186_v32 }
 0x660   : > { %v4945_v4 = vpop.eup %4944  ;;  %v3343_v8 = vadd.f32 %v3327_v60, %v2585_v59  ;;  %v4607_v17 = vmul.f32 -1.442695, %v2406_v50  ;;  %v3178_v60 = vmul.f32 %v7460_v22, %v3177_v30  ;;  %v2873_v39 = vsub.f32 1.0, %v2872_v21 }
 0x661   : > { %v3390_v7 = vmul.f32 %v4945_v4, %v8849_v18  ;;  %v2685_v44 = vadd.f32 %v7393_v2, %v2636_v38  ;;  %v3199_v32 = vand.u32 2147483647, %v7396_v40  ;;  %v3201_v59 = vand.u32 2147483648, %v7396_v40 }
 0x662   : > { %4948 = vtanh.f32 %v3343_v8  ;;  %v2888_v30 = vsub.f32 1.0, %v2887_v63  ;;  %v3193_v5 = vmul.f32 %v7478_v47, %v3192_v28  ;;  %v3378_v27 = vsub.f32 1.0, %v7570_v42 }
 0x663   : > { %4950 = vpow2.f32 %v4623_v41  ;;  %v2537_v34 = vpop.f32.mrf.mxu2  ;;  %v7574_v52 = vpop.f32.mrf.mxu3  ;;  %v3422_v0 = vadd.f32 %v7366_v26, %v3390_v7  ;;  %v2864_v26 = vsel %vm7584_vm7, %v7411_v15, %v2860_v1  ;;  %v3328_v41 = vmul.f32 %v7250_v35, %v2685_v44 }
 0x664   : > { %v2538_v2 = vadd.f32 %v2537_v34, %v7354_v61  ;;  %4952 = vrcp.f32 %v7559_v20  ;;  %v7602_v4 = vmul.f32 %v7570_v42, %v6386_v3  ;;  %vm7606_vm9 = vcmp.eq.f32.partialorder %v3184_v19, 8.507059e+37  ;;  %v4947_v8 = vpop.eup %4946 }
 0x665   : > { %3455 = vadd.xlane.f32.xlu0 %v3422_v0  ;;  %3438 = vst [vmem:[%s7495_s26 + $0x8] sm:$0xff] %v3422_v0  ;;  %4954 = vpow2.f32 %v4607_v17  ;;  %vm2877_vm10 = vweird.f32 %v7509_v13  ;;  %v3179_v1 = vadd.f32 %v7460_v22, %v3178_v60  ;;  %v7618_v3 = vsel %vm7548_vm4, %v7448_v45, %v2864_v26 }
 0x666   : > { %v2587_v50 = vadd.f32 %v7425_v11, %v2538_v2  ;;  %v2638_v38 = vpop.f32.mrf.mxu0  ;;  %v7611_v11 = vpop.f32.mrf.mxu1  ;;  %v2874_v19 = vmul.f32 %v7509_v13, %v2873_v39  ;;  %v2895_v18 = vand.u32 2147483647, %v7423_v29  ;;  %vm7622_vm11 = vcmp.eq.f32.partialorder %v3199_v32, 8.507059e+37  ;;  %vm7694_vm4 = vmor %vm2876_vm8, %vm2877_vm10 }
 0x667   : > { %v2639_v35 = vadd.f32 %v2638_v38, %v7315_v53  ;;  %v8856_v44 = vsub.f32 1.0, %v7357_v49  ;;  %v2889_v34 = vmul.f32 %v7519_v37, %v2888_v30  ;;  %v3194_v0 = vadd.f32 %v7478_v47, %v3193_v5  ;;  %v8866_v38 = vld [vmem:[#allocation17_spill] sm:$0xff] }
 0x668   : > { %v4949_v21 = vpop.eup %4948  ;;  %v3344_v28 = vadd.f32 %v3328_v41, %v2587_v50  ;;  %vm3196_vm12 = vweird.f32 %v7478_v47  ;;  %v7631_v45 = vadd.f32 1.0, %v4947_v8  ;;  %v4624_v2 = vmul.f32 -1.442695, %v7022_v16  ;;  %v8865_v41 = vld [vmem:[#allocation14_spill] sm:$0xff] }
 0x669   : > { %v4951_v63 = vpop.eup %4950  ;;  %v3391_v17 = vmul.f32 %v4949_v21, %v8856_v44  ;;  %v2688_v46 = vadd.f32 %v7457_v25, %v2639_v35  ;;  %vm7651_vm15 = vcmp.eq.f32.partialorder %v2880_v12, 8.507059e+37  ;;  %v3183_v26 = vsel %vm7639_vm14, %v7460_v22, %v3179_v1  ;;  %vm7672_vm3 = vmor %vm3195_vm6, %vm3196_vm12 }
 0x66a   : > { %4956 = vtanh.f32 %v3344_v28  ;;  %v7643_v60 = vpop.eup %4952  ;;  %v7659_v30 = vadd.f32 1.0, %v4951_v63  ;;  %v2875_v5 = vadd.f32 %v7509_v13, %v2874_v19  ;;  %vm2892_vm1 = vweird.f32 %v7519_v37 }
 0x66b   : > { %v2540_v23 = vpop.f32.mrf.mxu2  ;;  %v7646_v39 = vpop.f32.mrf.mxu3  ;;  %v3423_v25 = vadd.f32 %v7377_v24, %v3391_v17  ;;  %vm7664_vm2 = vcmp.eq.f32.partialorder %v2895_v18, 8.507059e+37  ;;  %v4608_v50 = vmul.f32 -1.442695, %v8865_v41  ;;  %v2362_v8 = vadd.f32 %v8866_v38, %v6629_v31  ;;  %vm7720_vm5 = vmor %vm2891_vm13, %vm2892_vm1 }
 0x66c   : > { %v2541_v16 = vadd.f32 %v2540_v23, %v7354_v61  ;;  %v4955_v22 = vpop.eup %4954  ;;  %v2890_v35 = vadd.f32 %v7519_v37, %v2889_v34  ;;  %v3198_v1 = vsel %vm7672_vm3, %v7478_v47, %v3194_v0  ;;  %v3206_v21 = vmul.f32 %v7643_v60, %v7559_v20  ;;  %v8869_v0 = vld [vmem:[#allocation13_spill] sm:$0xff] }
 0x66d   : > { %3457 = vadd.xlane.f32.xlu1 %v3423_v25  ;;  %3439 = vst [vmem:[%s7495_s26 + $0x10] sm:$0xff] %v3423_v25  ;;  %4958 = vrcp.f32 %v7631_v45  ;;  %v3329_v28 = vmul.f32 %v7525_v14, %v2688_v46  ;;  %v7701_v47 = vsel %vm7606_vm9, %v7572_v56, %v3183_v26  ;;  %v7706_v17 = vadd.f32 1.0, %v4955_v22 }
 0x66e   : > { %v2590_v19 = vadd.f32 %v7503_v10, %v2541_v16  ;;  %v2640_v18 = vpop.f32.mrf.mxu0  ;;  %4960 = vpow2.f32 %v4624_v2  ;;  %v3202_v10 = vor.u32 1.1754944e-38, %v3201_v59  ;;  %v2879_v6 = vsel %vm7694_vm4, %v7509_v13, %v2875_v5  ;;  %v7712_v49 = vpop.f32.mrf.mxu1  ;;  %v8873_v16 = vld [vmem:[#allocation4_spill] sm:$0xff] }
 0x66f   : > { %v2641_v63 = vadd.f32 %v2640_v18, %v7315_v53  ;;  %4962 = vrcp.f32 %v7659_v30  ;;  %v2411_v46 = vadd.f32 %v8869_v0, %v2362_v8  ;;  %v8870_v56 = vsub.f32 1.0, %v7361_v33  ;;  %v8875_v8 = vld [vmem:[#allocation3_spill] sm:$0xff] }
 0x670   : > { %v4957_v14 = vpop.eup %4956  ;;  %v3345_v34 = vadd.f32 %v3329_v28, %v2590_v19  ;;  %4964 = vpow2.f32 %v4608_v50  ;;  %v7726_v59 = vsel %vm7622_vm11, %v3202_v10, %v3198_v1  ;;  %v2894_v33 = vsel %vm7720_vm5, %v7519_v37, %v2890_v35 }
 0x671   : > { %v3392_v15 = vmul.f32 %v4957_v14, %v8870_v56  ;;  %v2690_v13 = vadd.f32 %v7531_v9, %v2641_v63  ;;  %v3207_v2 = vsub.f32 1.0, %v3206_v21  ;;  %v2898_v25 = vor.u32 1.1754944e-38, %v2897_v62  ;;  %v8874_v9 = vld [vmem:[#allocation15_spill] sm:$0xff] }
 0x672   : > { %4966 = vtanh.f32 %v3345_v34  ;;  %v3379_v26 = vsub.f32 1.0, %v7701_v47  ;;  %v7738_v7 = vmul.f32 %v7701_v47, %v8873_v16  ;;  %v4625_v12 = vmul.f32 -1.442695, %v8874_v9 }
 0x673   : > { %v2542_v23 = vpop.f32.mrf.mxu2  ;;  %v7733_v29 = vadd.f32 %v7385_v36, %v3392_v15  ;;  %v7740_v5 = vpop.eup %4958  ;;  %4968 = vrcp.f32 %v7706_v17  ;;  %v2884_v36 = vsel %vm7651_vm15, %v7533_v51, %v2879_v6  ;;  %v4609_v62 = vmul.f32 -1.442695, %v2411_v46 }
 0x674   : > { %v2543_v37 = vadd.f32 %v2542_v23, %v7354_v61  ;;  %v4961_v22 = vpop.eup %4960  ;;  %v7748_v41 = vpop.f32.mrf.mxu3  ;;  %v7755_v50 = vsel %vm7664_vm2, %v2898_v25, %v2894_v33  ;;  %v3380_v38 = vsub.f32 1.0, %v7726_v59  ;;  %v7760_v35 = vmul.f32 %v7726_v59, %v8875_v8 }
 0x675   : > { %3440 = vst [vmem:[%s7495_s26 + $0x18] sm:$0xff] %v7733_v29  ;;  %3459 = vadd.xlane.f32.xlu2 %v7733_v29  ;;  %v7762_v32 = vpop.eup %4962  ;;  %v3330_v51 = vmul.f32 %v7618_v3, %v2690_v13  ;;  %v3208_v28 = vmul.f32 %v7643_v60, %v3207_v2  ;;  %vm3210_vm0 = vweird.f32 %v7559_v20  ;;  %v2912_v18 = vand.u32 2147483648, %v7631_v45 }
 0x676   : > { %v2592_v1 = vadd.f32 %v7574_v52, %v2543_v37  ;;  %v2643_v21 = vpop.f32.mrf.mxu0  ;;  %v4965_v24 = vpop.eup %4964  ;;  %v3214_v63 = vand.u32 2147483647, %v7559_v20  ;;  %v3216_v44 = vand.u32 2147483648, %v7559_v20  ;;  %v7772_v14 = vadd.f32 1.0, %v4961_v22 }
 0x677   : > { %v2644_v19 = vadd.f32 %v2643_v21, %v7315_v53  ;;  %4970 = vpow2.f32 %v4625_v12  ;;  %v2902_v52 = vmul.f32 %v7740_v5, %v7631_v45  ;;  %v3221_v34 = vmul.f32 %v7762_v32, %v7659_v30  ;;  %v7787_v40 = vpop.f32.mrf.mxu1 }
 0x678   : > { %v4967_v10 = vpop.eup %4966  ;;  %v3346_v3 = vadd.f32 %v3330_v51, %v2592_v1  ;;  %4972 = vpow2.f32 %v4609_v62  ;;  %vm3211_vm6 = vweird.f32 %v7643_v60  ;;  %v7783_v46 = vadd.f32 1.0, %v4965_v24 }
 0x679   : > { %v3393_v6 = vmul.f32 %v4967_v10, %v3377_v57  ;;  %v7781_v0 = vpop.eup %4968  ;;  %v2693_v56 = vadd.f32 %v7611_v11, %v2644_v19  ;;  %v3209_v15 = vadd.f32 %v7643_v60, %v3208_v28  ;;  %vm7792_vm7 = vcmp.eq.f32.partialorder %v3214_v63, 8.507059e+37  ;;  %vm7812_vm8 = vmor %vm3210_vm0, %vm3211_vm6 }
 0x67a   : > { %4974 = vtanh.f32 %v3346_v3  ;;  %v3217_v57 = vor.u32 1.1754944e-38, %v3216_v44  ;;  %v3231_v2 = vand.u32 2147483648, %v7659_v30  ;;  %v2903_v11 = vsub.f32 1.0, %v2902_v52 }
 0x67b   : > { %v2545_v13 = vpop.f32.mrf.mxu2  ;;  %v7790_v33 = vadd.f32 %v7515_v43, %v3393_v6  ;;  %4976 = vrcp.f32 %v7772_v14  ;;  %v2910_v25 = vand.u32 2147483647, %v7631_v45  ;;  %v4610_v16 = vmul.f32 -1.442695, %v7147_v55 }
 0x67c   : > { %v2546_v23 = vadd.f32 %v2545_v13, %v7354_v61  ;;  %v7804_v43 = vor.u32 1.1754944e-38, %v2912_v18  ;;  %v2917_v9 = vmul.f32 %v7781_v0, %v7706_v17  ;;  %v3222_v37 = vsub.f32 1.0, %v3221_v34  ;;  %v7824_v21 = vpop.f32.mrf.mxu3 }
 0x67d   : > { %3441 = vst [vmem:[%s7495_s26 + $0x20] sm:$0xff] %v7790_v33  ;;  %3461 = vadd.xlane.f32.xlu2 %v7790_v33  ;;  %v4971_v22 = vpop.eup %4970  ;;  %4978 = vrcp.f32 %v7783_v46  ;;  %v3331_v55 = vmul.f32 %v2884_v36, %v2693_v56  ;;  %vm2906_vm9 = vweird.f32 %v7631_v45  ;;  %v3213_v51 = vsel %vm7812_vm8, %v7643_v60, %v3209_v15  ;;  %v8880_v56 = vld [vmem:[#allocation16_spill] sm:$0xff] }
 0x67e   : > { %v2595_v62 = vadd.f32 %v7646_v39, %v2546_v23  ;;  %v2645_v8 = vpop.f32.mrf.mxu0  ;;  %v4973_v1 = vpop.eup %4972  ;;  %v2367_v20 = vadd.f32 %v7187_v54, %v6629_v31  ;;  %v3229_v24 = vand.u32 2147483647, %v7659_v30  ;;  %v7828_v36 = vor.u32 1.1754944e-38, %v3231_v2 }
 0x67f   : > { %v2646_v28 = vadd.f32 %v2645_v8, %v7315_v53  ;;  %v2904_v18 = vmul.f32 %v7740_v5, %v2903_v11  ;;  %vm2907_vm10 = vweird.f32 %v7740_v5  ;;  %v2927_v60 = vand.u32 2147483648, %v7706_v17 }
 0x680   : > { %v4975_v39 = vpop.eup %4974  ;;  %v3347_v19 = vadd.f32 %v3331_v55, %v2595_v62  ;;  %vm3225_vm11 = vweird.f32 %v7659_v30  ;;  %4980 = vpow2.f32 %v4610_v16  ;;  %v2918_v63 = vsub.f32 1.0, %v2917_v9  ;;  %v7871_v9 = vpop.f32.mrf.mxu1  ;;  %vm7889_vm1 = vmor %vm2906_vm9, %vm2907_vm10 }
 0x681   : > { %v3394_v54 = vmul.f32 %v4975_v39, %v3378_v27  ;;  %v7838_v44 = vsel %vm7792_vm7, %v3217_v57, %v3213_v51  ;;  %v7840_v10 = vpop.eup %4976  ;;  %v7842_v3 = vadd.f32 1.0, %v4973_v1  ;;  %v2695_v52 = vadd.f32 %v7712_v49, %v2646_v28  ;;  %v8883_v57 = vld [vmem:[#allocation18_spill] sm:$0xff] }
 0x682   : > { %4982 = vtanh.f32 %v3347_v19  ;;  %v3223_v34 = vmul.f32 %v7762_v32, %v3222_v37  ;;  %v7846_v6 = vadd.f32 1.0, %v4971_v22  ;;  %v2416_v42 = vadd.f32 %v8880_v56, %v2367_v20 }
 0x683   : > { %v2547_v27 = vpop.f32.mrf.mxu2  ;;  %vm7849_vm12 = vcmp.eq.f32.partialorder %v2910_v25, 8.507059e+37  ;;  %v7854_v13 = vadd.f32 %v7602_v4, %v3394_v54  ;;  %vm2921_vm13 = vweird.f32 %v7706_v17  ;;  %v2925_v48 = vand.u32 2147483647, %v7706_v17  ;;  %v7858_v49 = vpop.eup %4978 }
 0x684   : > { %v4626_v2 = vmul.f32 -1.442695, %v8883_v57  ;;  %v2548_v23 = vadd.f32 %v2547_v27, %v7354_v61  ;;  %v2905_v11 = vadd.f32 %v7740_v5, %v2904_v18  ;;  %v7863_v16 = vor.u32 1.1754944e-38, %v2927_v60  ;;  %v7903_v45 = vpop.f32.mrf.mxu3 }
 0x685   : > { %vm7865_vm14 = vcmp.eq.f32.partialorder %v3229_v24, 8.507059e+37  ;;  %v3236_v4 = vmul.f32 %v7840_v10, %v7772_v14  ;;  %3442 = vst [vmem:[%s7495_s26 + $0x28] sm:$0xff] %v7854_v13  ;;  %3463 = vadd.xlane.f32.xlu0 %v7854_v13  ;;  %v2919_v12 = vmul.f32 %v7781_v0, %v2918_v63  ;;  %v3381_v37 = vsub.f32 1.0, %v7838_v44 }
 0x686   : > { %vm3226_vm15 = vweird.f32 %v7762_v32  ;;  %4984 = vrcp.f32 %v7842_v3  ;;  %v3332_v22 = vmul.f32 %v7755_v50, %v2695_v52  ;;  %v2597_v55 = vadd.f32 %v7748_v41, %v2548_v23  ;;  %v2648_v62 = vpop.f32.mrf.mxu0  ;;  %v4981_v51 = vpop.eup %4980  ;;  %v8892_v52 = vld [vmem:[#allocation19_spill] sm:$0xff] }
 0x687   : > { %v3224_v8 = vadd.f32 %v7762_v32, %v3223_v34  ;;  %4986 = vrcp.f32 %v7846_v6  ;;  %v4611_v1 = vmul.f32 -1.442695, %v2416_v42  ;;  %v2649_v20 = vadd.f32 %v2648_v62, %v7315_v53  ;;  %vm7913_vm4 = vmor %vm3225_vm11, %vm3226_vm15 }
 0x688   : > { %vm7893_vm2 = vcmp.eq.f32.partialorder %v2925_v48, 8.507059e+37  ;;  %v2932_v41 = vmul.f32 %v7858_v49, %v7783_v46  ;;  %v4983_v24 = vpop.eup %4982  ;;  %4988 = vpow2.f32 %v4626_v2  ;;  %v3348_v39 = vadd.f32 %v3332_v22, %v2597_v55  ;;  %v8895_v2 = vld [vmem:[#allocation6_spill] sm:$0xff]  ;;  %v2702_v62 = vpop.f32.mrf.mxu1 }
 0x689   : > { %v2909_v19 = vsel %vm7889_vm1, %v7740_v5, %v2905_v11  ;;  %vm2922_vm3 = vweird.f32 %v7781_v0  ;;  %v2920_v18 = vadd.f32 %v7781_v0, %v2919_v12  ;;  %v3395_v60 = vmul.f32 %v4983_v24, %v3379_v26 }
 0x68a   : > { %v2942_v54 = vand.u32 2147483648, %v7783_v46  ;;  %v3237_v5 = vsub.f32 1.0, %v3236_v4  ;;  %v4627_v34 = vmul.f32 -1.442695, %v8892_v52  ;;  %4990 = vtanh.f32 %v3348_v39  ;;  %vm7937_vm5 = vmor %vm2921_vm13, %vm2922_vm3 }
 0x68b   : > { %v2698_v56 = vadd.f32 %v7787_v40, %v2649_v20  ;;  %v3228_v47 = vsel %vm7913_vm4, %v7762_v32, %v3224_v8  ;;  %v7922_v26 = vadd.f32 1.0, %v4981_v51  ;;  %4992 = vpow2.f32 %v4611_v1  ;;  %v2550_v42 = vpop.f32.mrf.mxu2  ;;  %v8896_v1 = vld [vmem:[#allocation23_spill] sm:$0xff] }
 0x68c   : > { %v7925_v30 = vadd.f32 %v7738_v7, %v3395_v60  ;;  %v2933_v27 = vsub.f32 1.0, %v2932_v41  ;;  %v7927_v48 = vpop.eup %4984  ;;  %v2914_v57 = vsel %vm7849_vm12, %v7804_v43, %v2909_v19  ;;  %v2551_v40 = vadd.f32 %v2550_v42, %v7354_v61  ;;  %v7991_v60 = vpop.f32.mrf.mxu3  ;;  %v8900_v42 = vld [vmem:[#allocation5_spill] sm:$0xff] }
 0x68d   : > { %v2940_v7 = vand.u32 2147483647, %v7783_v46  ;;  %v7944_v23 = vmul.f32 %v7838_v44, %v8895_v2  ;;  %v7946_v11 = vpop.eup %4986  ;;  %v4612_v43 = vmul.f32 -1.442695, %v7272_v58  ;;  %v2924_v15 = vsel %vm7937_vm5, %v7781_v0, %v2920_v18 }
 0x68e   : > { %3443 = vst [vmem:[%s7495_s26 + $0x30] sm:$0xff] %v7925_v30  ;;  %3465 = vadd.xlane.f32.xlu1 %v7925_v30  ;;  %vm2936_vm0 = vweird.f32 %v7783_v46  ;;  %v7956_v17 = vor.u32 1.1754944e-38, %v2942_v54  ;;  %v7961_v4 = vsel %vm7865_vm14, %v7828_v36, %v3228_v47  ;;  %v4989_v12 = vpop.eup %4988  ;;  %4994 = vpow2.f32 %v4627_v34  ;;  %v2650_v55 = vpop.f32.mrf.mxu0  ;;  %v8899_v34 = vld [vmem:[#allocation20_spill] sm:$0xff] }
 0x68f   : > { %v3333_v58 = vmul.f32 %v2914_v57, %v2698_v56  ;;  %v2600_v22 = vadd.f32 %v7824_v21, %v2551_v40  ;;  %v3238_v0 = vmul.f32 %v7840_v10, %v3237_v5  ;;  %4996 = vrcp.f32 %v7922_v26 }
 0x690   : > { %v2651_v8 = vadd.f32 %v2650_v55, %v7315_v53  ;;  %v2934_v51 = vmul.f32 %v7858_v49, %v2933_v27  ;;  %v2947_v25 = vmul.f32 %v7927_v48, %v7842_v3  ;;  %v4991_v36 = vpop.eup %4990  ;;  %v2372_v20 = vadd.f32 %v8896_v1, %v6629_v31  ;;  %v2704_v1 = vpop.f32.mrf.mxu1 }
 0x691   : > { %v3349_v28 = vadd.f32 %v3333_v58, %v2600_v22  ;;  %v2929_v21 = vsel %vm7893_vm2, %v7863_v16, %v2924_v15  ;;  %vm2937_vm6 = vweird.f32 %v7858_v49  ;;  %v4993_v41 = vpop.eup %4992  ;;  %v7976_v24 = vadd.f32 1.0, %v4989_v12  ;;  %v8908_v16 = vld [vmem:[#allocation22_spill] sm:$0xff] }
 0x692   : > { %4998 = vpow2.f32 %v4612_v43  ;;  %v2957_v39 = vand.u32 2147483648, %v7842_v3  ;;  %v3396_v19 = vmul.f32 %v4991_v36, %v3380_v38  ;;  %v7983_v18 = vmul.f32 %v7946_v11, %v7846_v6  ;;  %vm8023_vm9 = vmor %vm2936_vm0, %vm2937_vm6 }
 0x693   : > { %5000 = vtanh.f32 %v3349_v28  ;;  %v2700_v31 = vadd.f32 %v7871_v9, %v2651_v8  ;;  %vm7986_vm7 = vcmp.eq.f32.partialorder %v2940_v7, 8.507059e+37  ;;  %v2955_v50 = vand.u32 2147483647, %v7842_v3  ;;  %v2552_v54 = vpop.f32.mrf.mxu2 }
 0x694   : > { %v2935_v59 = vadd.f32 %v7858_v49, %v2934_v51  ;;  %v2948_v38 = vsub.f32 1.0, %v2947_v25  ;;  %v7995_v63 = vadd.f32 %v7760_v35, %v3396_v19  ;;  %v3382_v5 = vsub.f32 1.0, %v7961_v4  ;;  %v4995_v9 = vpop.eup %4994  ;;  %v8901_v35 = vld [vmem:[#allocation21_spill] sm:$0xff] }
 0x695   : > { %vm3240_vm8 = vweird.f32 %v7772_v14  ;;  %v7999_v52 = vadd.f32 1.0, %v4993_v41  ;;  %v2421_v56 = vadd.f32 %v8899_v34, %v2372_v20  ;;  %v2553_v47 = vadd.f32 %v2552_v54, %v7354_v61  ;;  %v8007_v57 = vpop.eup %4996 }
 0x696   : > { %v8005_v27 = vmul.f32 %v7961_v4, %v8900_v42  ;;  %5002 = vrcp.f32 %v7976_v24  ;;  %v4628_v40 = vmul.f32 -1.442695, %v8901_v35  ;;  %v8011_v32 = vor.u32 1.1754944e-38, %v2957_v39  ;;  %3444 = vst [vmem:[%s7495_s26 + $0x38] sm:$0xff] %v7995_v63  ;;  %v2653_v15 = vpop.f32.mrf.mxu0 }
 0x697   : > { %v8016_v7 = vadd.f32 %v7840_v10, %v3238_v0  ;;  %v3334_v2 = vmul.f32 %v2929_v21, %v2700_v31  ;;  %v2602_v43 = vadd.f32 %v7903_v45, %v2553_v47  ;;  %vm2951_vm10 = vweird.f32 %v7842_v3 }
 0x698   : > { %vm3241_vm11 = vweird.f32 %v7840_v10  ;;  %v3244_v58 = vand.u32 2147483647, %v7772_v14  ;;  %v4999_v22 = vpop.eup %4998  ;;  %v8030_v55 = vadd.f32 1.0, %v4995_v9  ;;  %v2654_v45 = vadd.f32 %v2653_v15, %v7315_v53 }
 0x699   : > { %v2939_v0 = vsel %vm8023_vm9, %v7858_v49, %v2935_v59  ;;  %v2949_v46 = vmul.f32 %v7927_v48, %v2948_v38  ;;  %v5001_v8 = vpop.eup %5000  ;;  %5004 = vrcp.f32 %v7999_v52  ;;  %v4613_v51 = vmul.f32 -1.442695, %v2421_v56  ;;  %vm8067_vm14 = vmor %vm3240_vm8, %vm3241_vm11  ;;  %v2606_v38 = vpop.f32.mrf.mxu3 }
 0x69a   : > { %v3350_v25 = vadd.f32 %v3334_v2, %v2602_v43  ;;  %v2962_v36 = vmul.f32 %v8007_v57, %v7922_v26  ;;  %5006 = vpow2.f32 %v4628_v40  ;;  %v3397_v20 = vmul.f32 %v5001_v8, %v3381_v37 }
 0x69b   : > { %v3246_v28 = vand.u32 2147483648, %v7772_v14  ;;  %v3252_v21 = vsub.f32 1.0, %v7983_v18  ;;  %v2703_v49 = vadd.f32 %v2702_v62, %v2654_v45  ;;  %vm2952_vm12 = vweird.f32 %v7927_v48  ;;  %v2555_v62 = vpop.f32.mrf.mxu2 }
 0x69c   : > { %5008 = vtanh.f32 %v3350_v25  ;;  %vm8045_vm13 = vcmp.eq.f32.partialorder %v2955_v50, 8.507059e+37  ;;  %v2972_v39 = vand.u32 2147483648, %v7922_v26  ;;  %v8050_v19 = vpop.eup %5002  ;;  %v8053_v44 = vadd.f32 1.0, %v4999_v22  ;;  %vm8099_vm2 = vmor %vm2951_vm10, %vm2952_vm12  ;;  %v2707_v25 = vpop.f32.mrf.mxu1 }
 0x69d   : > { %5010 = vrcp.f32 %v8030_v55  ;;  %v2944_v37 = vsel %vm7986_vm7, %v7956_v17, %v2939_v0  ;;  %v8059_v18 = vadd.f32 %v7944_v23, %v3397_v20  ;;  %v2556_v31 = vadd.f32 %v2555_v62, %v7354_v61 }
 0x69e   : > { %5012 = vpow2.f32 %v4613_v51  ;;  %v2950_v50 = vadd.f32 %v7927_v48, %v2949_v46  ;;  %v2963_v54 = vsub.f32 1.0, %v2962_v36  ;;  %v4629_v17 = vmul.f32 -1.442695, %v8908_v16  ;;  %v2655_v35 = vpop.f32.mrf.mxu0 }
 0x69f   : > { %v2970_v23 = vand.u32 2147483647, %v7922_v26  ;;  %3445 = vst [vmem:[%s7495_s26 + $0x40] sm:$0xff] %v8059_v18  ;;  %v3243_v9 = vsel %vm8067_vm14, %v7840_v10, %v8016_v7  ;;  %vm8079_vm15 = vcmp.eq.f32.partialorder %v3244_v58, 8.507059e+37  ;;  %v8083_v14 = vpop.eup %5004  ;;  %v8087_v56 = vmul.f32 %v8050_v19, %v7976_v24 }
 0x6a0   : > { %v3335_v47 = vmul.f32 %v2944_v37, %v2703_v49  ;;  %v2605_v42 = vadd.f32 %v7991_v60, %v2556_v31  ;;  %vm2966_vm1 = vweird.f32 %v7922_v26  ;;  %v8091_v40 = vor.u32 1.1754944e-38, %v2972_v39  ;;  %v5007_v2 = vpop.eup %5006 }
 0x6a1   : > { %5014 = vrcp.f32 %v8053_v44  ;;  %v2656_v10 = vadd.f32 %v2655_v35, %v7315_v53  ;;  %v3247_v43 = vor.u32 1.1754944e-38, %v3246_v28  ;;  %v3253_v60 = vmul.f32 %v7946_v11, %v3252_v21 }
 0x6a2   : > { %v5009_v15 = vpop.eup %5008  ;;  %v3351_v12 = vadd.f32 %v3335_v47, %v2605_v42  ;;  %v2954_v58 = vsel %vm8099_vm2, %v7927_v48, %v2950_v50  ;;  %v2964_v22 = vmul.f32 %v8007_v57, %v2963_v54  ;;  %vm3255_vm3 = vweird.f32 %v7846_v6 }
 0x6a3   : > { %v8109_v45 = vpop.eup %5010  ;;  %5016 = vpow2.f32 %v4629_v17  ;;  %v2977_v3 = vmul.f32 %v8083_v14, %v7999_v52  ;;  %v3398_v0 = vmul.f32 %v5009_v15, %v3382_v5  ;;  %v3248_v46 = vsel %vm8079_vm15, %v3247_v43, %v3243_v9  ;;  %v2557_v4 = vpop.f32.mrf.mxu2 }
 0x6a4   : > { %v5013_v8 = vpop.eup %5012  ;;  %5018 = vtanh.f32 %v3351_v12  ;;  %v2705_v51 = vadd.f32 %v2704_v1, %v2656_v10  ;;  %vm2967_vm4 = vweird.f32 %v8007_v57  ;;  %vm3256_vm5 = vweird.f32 %v7946_v11  ;;  %v2609_v9 = vpop.f32.mrf.mxu3 }
 0x6a5   : > { %v8119_v48 = vadd.f32 1.0, %v5007_v2  ;;  %v2959_v36 = vsel %vm8045_vm13, %v8011_v32, %v2954_v58  ;;  %vm8124_vm0 = vcmp.eq.f32.partialorder %v2970_v23, 8.507059e+37  ;;  %v2985_v20 = vand.u32 2147483647, %v7999_v52  ;;  %vm8152_vm7 = vmor %vm3255_vm3, %vm3256_vm5 }
 0x6a6   : > { %v8130_v1 = vadd.f32 %v8005_v27, %v3398_v0  ;;  %v8134_v28 = vmul.f32 %v8109_v45, %v8030_v55  ;;  %v2558_v21 = vadd.f32 %v2557_v4, %v7354_v61  ;;  %v2965_v49 = vadd.f32 %v8007_v57, %v2964_v22  ;;  %v2658_v54 = vpop.f32.mrf.mxu0  ;;  %vm8163_vm8 = vmor %vm2966_vm1, %vm2967_vm4 }
 0x6a7   : > { %v3254_v32 = vadd.f32 %v7946_v11, %v3253_v60  ;;  %v8139_v41 = vpop.eup %5014  ;;  %v8141_v39 = vadd.f32 1.0, %v5013_v8  ;;  %v2978_v37 = vsub.f32 1.0, %v2977_v3  ;;  %v2987_v62 = vand.u32 2147483648, %v7999_v52 }
 0x6a8   : > { %3446 = vst [vmem:[%s7495_s26 + $0x48] sm:$0xff] %v8130_v1  ;;  %v3267_v27 = vsub.f32 1.0, %v8087_v56  ;;  %v3336_v31 = vmul.f32 %v2959_v36, %v2705_v51  ;;  %v2607_v50 = vadd.f32 %v2606_v38, %v2558_v21  ;;  %vm2981_vm6 = vweird.f32 %v7999_v52  ;;  %v8919_v56 = vld [vmem:[#allocation7_spill] sm:$0xff]  ;;  %v2709_v36 = vpop.f32.mrf.mxu1 }
 0x6a9   : > { %v3383_v59 = vsub.f32 1.0, %v3248_v46  ;;  %v3261_v17 = vand.u32 2147483648, %v7846_v6  ;;  %v5017_v23 = vpop.eup %5016  ;;  %5020 = vrcp.f32 %v8119_v48  ;;  %v2659_v38 = vadd.f32 %v2658_v54, %v7315_v53 }
 0x6aa   : > { %v3415_v47 = vmul.f32 %v3248_v46, %v8919_v56  ;;  %v3259_v42 = vand.u32 2147483647, %v7846_v6  ;;  %v5019_v35 = vpop.eup %5018  ;;  %v3352_v2 = vadd.f32 %v3336_v31, %v2607_v50  ;;  %v2969_v10 = vsel %vm8163_vm8, %v8007_v57, %v2965_v49 }
 0x6ab   : > { %v2992_v7 = vmul.f32 %v8139_v41, %v8053_v44  ;;  %v3258_v26 = vsel %vm8152_vm7, %v7946_v11, %v3254_v32  ;;  %5022 = vrcp.f32 %v8141_v39  ;;  %v2979_v43 = vmul.f32 %v8083_v14, %v2978_v37  ;;  %v2560_v58 = vpop.f32.mrf.mxu2 }
 0x6ac   : > { %v3399_v60 = vmul.f32 %v5019_v35, %v3383_v59  ;;  %v3268_v6 = vmul.f32 %v8050_v19, %v3267_v27  ;;  %v8180_v15 = vadd.f32 1.0, %v5017_v23  ;;  %5024 = vtanh.f32 %v3352_v2 }
 0x6ad   : > { %v2708_v12 = vadd.f32 %v2707_v25, %v2659_v38  ;;  %v3262_v57 = vor.u32 1.1754944e-38, %v3261_v17  ;;  %vm2982_vm9 = vweird.f32 %v8083_v14  ;;  %v2988_v22 = vor.u32 1.1754944e-38, %v2987_v62  ;;  %v8924_v17 = vld [vmem:[#allocation8_spill] sm:$0xff] }
 0x6ae   : > { %v8183_v3 = vadd.f32 %v3415_v47, %v3399_v60  ;;  %vm3260_vm10 = vcmp.eq.f32.partialorder %v3259_v42, 8.507059e+37  ;;  %v2974_v11 = vsel %vm8124_vm0, %v8091_v40, %v2969_v10  ;;  %v2561_v0 = vadd.f32 %v2560_v58, %v7354_v61  ;;  %v2660_v49 = vpop.f32.mrf.mxu0  ;;  %vm8211_vm14 = vmor %vm2981_vm6, %vm2982_vm9 }
 0x6af   : > { %vm8189_vm11 = vcmp.eq.f32.partialorder %v2985_v20, 8.507059e+37  ;;  %v2993_v8 = vsub.f32 1.0, %v2992_v7  ;;  %v3263_v51 = vsel %vm3260_vm10, %v3262_v57, %v3258_v26  ;;  %v8193_v25 = vpop.eup %5020  ;;  %v2980_v4 = vadd.f32 %v8083_v14, %v2979_v43 }
 0x6b0   : > { %3447 = vst [vmem:[%s7495_s26 + $0x50] sm:$0xff] %v8183_v3  ;;  %v3269_v21 = vadd.f32 %v8050_v19, %v3268_v6  ;;  %vm3271_vm12 = vweird.f32 %v8050_v19  ;;  %v3282_v40 = vsub.f32 1.0, %v8134_v28  ;;  %5026 = vrcp.f32 %v8180_v15 }
 0x6b1   : > { %v3337_v5 = vmul.f32 %v2974_v11, %v2708_v12  ;;  %v2610_v20 = vadd.f32 %v2609_v9, %v2561_v0  ;;  %vm2996_vm13 = vweird.f32 %v8053_v44  ;;  %v3276_v32 = vand.u32 2147483648, %v7976_v24  ;;  %v8204_v37 = vpop.eup %5022  ;;  %v2611_v9 = vpop.f32.mrf.mxu3 }
 0x6b2   : > { %v2661_v62 = vadd.f32 %v2660_v49, %v7315_v53  ;;  %v3384_v28 = vsub.f32 1.0, %v3263_v51  ;;  %vm3270_vm15 = vweird.f32 %v7976_v24  ;;  %v3274_v31 = vand.u32 2147483647, %v7976_v24  ;;  %v5025_v50 = vpop.eup %5024 }
 0x6b3   : > { %v3296_v54 = vmul.f32 %v8193_v25, %v8119_v48  ;;  %v3353_v59 = vadd.f32 %v3337_v5, %v2610_v20  ;;  %v2994_v16 = vmul.f32 %v8139_v41, %v2993_v8  ;;  %v3416_v23 = vmul.f32 %v3263_v51, %v8924_v17  ;;  %vm8223_vm1 = vmor %vm3270_vm15, %vm3271_vm12  ;;  %v2562_v2 = vpop.f32.mrf.mxu2 }
 0x6b4   : > { %v2984_v24 = vsel %vm8211_vm14, %v8083_v14, %v2980_v4  ;;  %v3400_v38 = vmul.f32 %v5025_v50, %v3384_v28  ;;  %v3273_v34 = vsel %vm8223_vm1, %v8050_v19, %v3269_v21  ;;  %v3283_v56 = vmul.f32 %v8109_v45, %v3282_v40 }
 0x6b5   : > { %5028 = vtanh.f32 %v3353_v59  ;;  %v2710_v47 = vadd.f32 %v2709_v36, %v2661_v62  ;;  %v3007_v42 = vmul.f32 %v8204_v37, %v8141_v39  ;;  %v3277_v35 = vor.u32 1.1754944e-38, %v3276_v32  ;;  %v2712_v36 = vpop.f32.mrf.mxu1  ;;  %v8931_v62 = vld [vmem:[#allocation9_spill] sm:$0xff] }
 0x6b6   : > { %v3000_v10 = vand.u32 2147483647, %v8053_v44  ;;  %v3002_v7 = vand.u32 2147483648, %v8053_v44  ;;  %v8238_v14 = vadd.f32 %v3416_v23, %v3400_v38  ;;  %vm3275_vm2 = vcmp.eq.f32.partialorder %v3274_v31, 8.507059e+37  ;;  %v8240_v26 = vpop.eup %5026  ;;  %v2663_v0 = vpop.f32.mrf.mxu0 }
 0x6b7   : > { %v2563_v19 = vadd.f32 %v2562_v2, %v7354_v61  ;;  %v2995_v43 = vadd.f32 %v8139_v41, %v2994_v16  ;;  %vm2997_vm3 = vweird.f32 %v8139_v41  ;;  %v3278_v60 = vsel %vm3275_vm2, %v3277_v35, %v3273_v34 }
 0x6b8   : > { %v2989_v6 = vsel %vm8189_vm11, %v2988_v22, %v2984_v24  ;;  %3448 = vst [vmem:[%s7495_s26 + $0x58] sm:$0xff] %v8238_v14  ;;  %v3284_v12 = vadd.f32 %v8109_v45, %v3283_v56  ;;  %vm3286_vm4 = vweird.f32 %v8109_v45  ;;  %v3297_v57 = vsub.f32 1.0, %v3296_v54  ;;  %vm8255_vm5 = vmor %vm2996_vm13, %vm2997_vm3 }
 0x6b9   : > { %v3338_v58 = vmul.f32 %v2989_v6, %v2710_v47  ;;  %v2612_v11 = vadd.f32 %v2611_v9, %v2563_v19  ;;  %v3008_v8 = vsub.f32 1.0, %v3007_v42  ;;  %v3291_v51 = vand.u32 2147483648, %v8030_v55  ;;  %v2614_v54 = vpop.f32.mrf.mxu3 }
 0x6ba   : > { %v2664_v4 = vadd.f32 %v2663_v0, %v7315_v53  ;;  %v3385_v46 = vsub.f32 1.0, %v3278_v60  ;;  %vm3285_vm0 = vweird.f32 %v8030_v55  ;;  %v3289_v21 = vand.u32 2147483647, %v8030_v55 }
 0x6bb   : > { %v5029_v40 = vpop.eup %5028  ;;  %v3311_v5 = vmul.f32 %v8240_v26, %v8180_v15  ;;  %v3354_v20 = vadd.f32 %v3338_v58, %v2612_v11  ;;  %v2999_v49 = vsel %vm8255_vm5, %v8139_v41, %v2995_v43  ;;  %vm8268_vm6 = vmor %vm3285_vm0, %vm3286_vm4  ;;  %v3417_v27 = vmul.f32 %v3278_v60, %v8931_v62  ;;  %v2565_v16 = vpop.f32.mrf.mxu2 }
 0x6bc   : > { %v3401_v32 = vmul.f32 %v5029_v40, %v3385_v46  ;;  %v3288_v55 = vsel %vm8268_vm6, %v8109_v45, %v3284_v12  ;;  %v3298_v28 = vmul.f32 %v8193_v25, %v3297_v57  ;;  %v2713_v31 = vadd.f32 %v2712_v36, %v2664_v4  ;;  %v8936_v57 = vld [vmem:[#allocation10_spill] sm:$0xff] }
 0x6bd   : > { %5030 = vtanh.f32 %v3354_v20  ;;  %v3009_v41 = vmul.f32 %v8204_v37, %v3008_v8  ;;  %v3292_v50 = vor.u32 1.1754944e-38, %v3291_v51  ;;  %vm3001_vm7 = vcmp.eq.f32.partialorder %v3000_v10, 8.507059e+37  ;;  %v2714_v12 = vpop.f32.mrf.mxu1 }
 0x6be   : > { %v3003_v59 = vor.u32 1.1754944e-38, %v3002_v7  ;;  %v8278_v17 = vadd.f32 %v3417_v27, %v3401_v32  ;;  %vm3290_vm8 = vcmp.eq.f32.partialorder %v3289_v21, 8.507059e+37  ;;  %v2566_v23 = vadd.f32 %v2565_v16, %v7354_v61  ;;  %v2665_v47 = vpop.f32.mrf.mxu0 }
 0x6bf   : > { %vm3012_vm9 = vweird.f32 %v8204_v37  ;;  %v3017_v45 = vand.u32 2147483648, %v8141_v39  ;;  %v3293_v52 = vsel %vm3290_vm8, %v3292_v50, %v3288_v55  ;;  %v3299_v24 = vadd.f32 %v8193_v25, %v3298_v28  ;;  %v8937_v55 = vld [vmem:[#allocation12_spill] sm:$0xff] }
 0x6c0   : > { %v3004_v9 = vsel %vm3001_vm7, %v3003_v59, %v2999_v49  ;;  %3449 = vst [vmem:[%s7495_s26 + $0x60] sm:$0xff] %v8278_v17  ;;  %vm3301_vm10 = vweird.f32 %v8193_v25  ;;  %v3312_v38 = vsub.f32 1.0, %v3311_v5  ;;  %v2615_v56 = vadd.f32 %v2614_v54, %v2566_v23  ;;  %v8938_v23 = vld [vmem:[#allocation2_spill] sm:$0xff] }
 0x6c1   : > { %v3339_v34 = vmul.f32 %v3004_v9, %v2713_v31  ;;  %v3010_v42 = vadd.f32 %v8204_v37, %v3009_v41  ;;  %v3306_v35 = vand.u32 2147483648, %v8119_v48  ;;  %v2666_v2 = vadd.f32 %v2665_v47, %v7315_v53  ;;  %v2616_v40 = vpop.f32.mrf.mxu3  ;;  %v8939_v9 = vld [vmem:[#allocation11_spill] sm:$0xff] }
 0x6c2   : > { %v3386_v10 = vsub.f32 1.0, %v3293_v52  ;;  %vm3300_vm11 = vweird.f32 %v8119_v48  ;;  %v3304_v7 = vand.u32 2147483647, %v8119_v48  ;;  %vm3011_vm12 = vweird.f32 %v8141_v39 }
 0x6c3   : > { %v5031_v19 = vpop.eup %5030  ;;  %v3355_v43 = vadd.f32 %v3339_v34, %v2615_v56  ;;  %v3015_v60 = vand.u32 2147483647, %v8141_v39  ;;  %vm8296_vm13 = vmor %vm3300_vm11, %vm3301_vm10  ;;  %v3418_v58 = vmul.f32 %v3293_v52, %v8936_v57  ;;  %v3313_v11 = vmul.f32 %v8240_v26, %v3312_v38  ;;  %v2567_v4 = vpop.f32.mrf.mxu2 }
 0x6c4   : > { %vm8302_vm14 = vmor %vm3011_vm12, %vm3012_vm9  ;;  %v3402_v48 = vmul.f32 %v5031_v19, %v3386_v10  ;;  %v3303_v39 = vsel %vm8296_vm13, %v8193_v25, %v3299_v24  ;;  %v2715_v0 = vadd.f32 %v2714_v12, %v2666_v2  ;;  %v3307_v51 = vor.u32 1.1754944e-38, %v3306_v35  ;;  %v5134_v35 = vld [vmem:[%s7495_s26 + $0x8] sm:$0xff] }
 0x6c5   : > { %5032 = vtanh.f32 %v3355_v43  ;;  %v3014_v8 = vsel %vm8302_vm14, %v8204_v37, %v3010_v42  ;;  %v3018_v36 = vor.u32 1.1754944e-38, %v3017_v45  ;;  %vm3305_vm15 = vcmp.eq.f32.partialorder %v3304_v7, 8.507059e+37  ;;  %v5135_v43 = vld [vmem:[%s7495_s26 + $0x10] sm:$0xff] }
 0x6c6   : > { %v8314_v22 = vadd.f32 %v3418_v58, %v3402_v48  ;;  %vm3016_vm1 = vcmp.eq.f32.partialorder %v3015_v60, 8.507059e+37  ;;  %v2568_v46 = vadd.f32 %v2567_v4, %v7354_v61  ;;  %v3308_v21 = vsel %vm3305_vm15, %v3307_v51, %v3303_v39 }
 0x6c7   : > { %v3019_v25 = vsel %vm3016_vm1, %v3018_v36, %v3014_v8  ;;  %v3314_v5 = vadd.f32 %v8240_v26, %v3313_v11  ;;  %vm3316_vm2 = vweird.f32 %v8240_v26  ;;  %v3321_v49 = vand.u32 2147483648, %v8180_v15 }
 0x6c8   : > { %3450 = vst [vmem:[%s7495_s26 + $0x68] sm:$0xff] %v8314_v22  ;;  %v3340_v20 = vmul.f32 %v3019_v25, %v2715_v0  ;;  %v2617_v37 = vadd.f32 %v2616_v40, %v2568_v46  ;;  %v3387_v44 = vsub.f32 1.0, %v3308_v21  ;;  %vm3315_vm3 = vweird.f32 %v8180_v15 }
 0x6c9   : > { %v3319_v32 = vand.u32 2147483647, %v8180_v15  ;;  %vm3317_vm4 = vmor %vm3315_vm3, %vm3316_vm2  ;;  %v3419_v28 = vmul.f32 %v3308_v21, %v8937_v55  ;;  %v3322_v41 = vor.u32 1.1754944e-38, %v3321_v49 }
 0x6ca   : > { %v3356_v62 = vadd.f32 %v3340_v20, %v2617_v37  ;;  %v3318_v31 = vsel %vm3317_vm4, %v8240_v26, %v3314_v5  ;;  %v5133_v26 = vld [vmem:[%s7495_s26] sm:$0xff]  ;;  %v4679_v20 = vld [vmem:[%s8754_s4 + $0x78] sm:$0xff] }
 0x6cb   : > { %v5033_v61 = vpop.eup %5032  ;;  %vm3320_vm5 = vcmp.eq.f32.partialorder %v3319_v32, 8.507059e+37  ;;  %v4680_v5 = vld [vmem:[%s8754_s4 + $0x80] sm:$0xff] }
 0x6cc   : > { %v3403_v27 = vmul.f32 %v5033_v61, %v3387_v44  ;;  %5034 = vtanh.f32 %v3356_v62  ;;  %v3323_v54 = vsel %vm3320_vm5, %v3322_v41, %v3318_v31  ;;  %v4678_v61 = vld [vmem:[%s8754_s4 + $0x70] sm:$0xff]  ;;  %v4677_v41 = vld [vmem:[%s8754_s4 + $0x68] sm:$0xff] }
 0x6cd   : > { %v3388_v15 = vsub.f32 1.0, %v3323_v54  ;;  %v3420_v24 = vmul.f32 %v3323_v54, %v8939_v9 }
 0x6ce   : > { %v8326_v50 = vadd.f32 %v3419_v28, %v3403_v27 }
 0x6d0   : > { %3451 = vst [vmem:[%s7495_s26 + $0x70] sm:$0xff] %v8326_v50  ;;  %v3454_v16 = vpop.xlane.xlu2 %3453 }
 0x6d1   : > { %v3485_v45 = vmul.f32 %v3454_v16, %v8938_v23 }
 0x6d2   : > { %v5035_v59 = vpop.eup %5034 }
 0x6d3   : > { %v3404_v52 = vmul.f32 %v5035_v59, %v3388_v15  ;;  %v8333_v38 = vsub.f32 %v5133_v26, %v3485_v45 }
 0x6d5   : > { %v8335_v34 = vadd.f32 %v3420_v24, %v3404_v52  ;;  %v3517_v56 = vmul.f32 %v8333_v38, %v8333_v38  ;;  %v4676_v52 = vld [vmem:[%s8754_s4 + $0x60] sm:$0xff] }
 0x6d7   : > { %3452 = vst [vmem:[%s7495_s26 + $0x78] sm:$0xff] %v8335_v34  ;;  %3533 = vadd.xlane.f32.xlu2 %v3517_v56 }
 0x6d8   : > { %v3456_v47 = vpop.xlane.xlu0 %3455 }
 0x6d9   : > { %v3486_v42 = vmul.f32 %v3456_v47, %v8938_v23 }
 0x6db   : > { %v8343_v2 = vsub.f32 %v5134_v35, %v3486_v42 }
 0x6dd   : > { %v3518_v10 = vmul.f32 %v8343_v2, %v8343_v2 }
 0x6df   : > { %3535 = vadd.xlane.f32.xlu0 %v3518_v10  ;;  %3467 = vadd.xlane.f32.xlu2 %v7995_v63  ;;  %v4675_v10 = vld [vmem:[%s8754_s4 + $0x58] sm:$0xff] }
 0x6e0   : > { %v3458_v7 = vpop.xlane.xlu1 %3457 }
 0x6e1   : > { %v3487_v19 = vmul.f32 %v3458_v7, %v8938_v23 }
 0x6e3   : > { %v8350_v60 = vsub.f32 %v5135_v43, %v3487_v19 }
 0x6e5   : > { %v3519_v6 = vmul.f32 %v8350_v60, %v8350_v60 }
 0x6e7   : > { %3537 = vadd.xlane.f32.xlu0 %v3519_v6  ;;  %3469 = vadd.xlane.f32.xlu2 %v8059_v18 }
 0x6e8   : > { %v3460_v12 = vpop.xlane.xlu2 %3459 }
 0x6e9   : > { %v3488_v53 = vmul.f32 %v3460_v12, %v8938_v23 }
 0x6eb   : > { %v8357_v48 = vsub.f32 %v7733_v29, %v3488_v53 }
 0x6ed   : > { %v3520_v57 = vmul.f32 %v8357_v48, %v8357_v48 }
 0x6ef   : > { %3471 = vadd.xlane.f32.xlu0 %v8130_v1  ;;  %3539 = vadd.xlane.f32.xlu1 %v3520_v57  ;;  %v4674_v57 = vld [vmem:[%s8754_s4 + $0x50] sm:$0xff] }
 0x6f0   : > { %v3462_v58 = vpop.xlane.xlu2 %3461 }
 0x6f1   : > { %v3489_v39 = vmul.f32 %v3462_v58, %v8938_v23 }
 0x6f3   : > { %v8364_v11 = vsub.f32 %v7790_v33, %v3489_v39 }
 0x6f5   : > { %v3521_v0 = vmul.f32 %v8364_v11, %v8364_v11 }
 0x6f7   : > { %3473 = vadd.xlane.f32.xlu0 %v8183_v3  ;;  %3541 = vadd.xlane.f32.xlu1 %v3521_v0 }
 0x6f8   : > { %v3464_v29 = vpop.xlane.xlu0 %3463 }
 0x6f9   : > { %v3490_v8 = vmul.f32 %v3464_v29, %v8938_v23 }
 0x6fb   : > { %v8371_v51 = vsub.f32 %v7854_v13, %v3490_v8  ;;  %v4681_v13 = vld [vmem:[%s8754_s4 + $0x88] sm:$0xff] }
 0x6fc   : > { %3861 = vmatpush.bf16.msra.mxu2 %v4681_v13 }
 0x6fd   : > { %v3522_v36 = vmul.f32 %v8371_v51, %v8371_v51 }
 0x6ff   : > { %3543 = vadd.xlane.f32.xlu2 %v3522_v36  ;;  %3475 = vadd.xlane.f32.xlu1 %v8238_v14  ;;  %v8433_v36 = vld [vmem:[%s8756_s6 + $0x21] ss:$0 sm:$0xff] }
 0x700   : > { %3862 = vmatpush.bf16.msra.mxu2 %v4680_v5 }
 0x701   : > { %v3466_v33 = vpop.xlane.xlu1 %3465 }
 0x702   : > { %v3491_v4 = vmul.f32 %v3466_v33, %v8938_v23 }
 0x704   : > { %v8378_v46 = vsub.f32 %v7925_v30, %v3491_v4  ;;  %3863 = vmatpush.bf16.msra.mxu2 %v4679_v20 }
 0x706   : > { %v3523_v21 = vmul.f32 %v8378_v46, %v8378_v46 }
 0x707   : > { %3477 = vadd.xlane.f32.xlu1 %v8278_v17 }
 0x708   : > { %3545 = vadd.xlane.f32.xlu2 %v3523_v21  ;;  %3864 = vmatpush.bf16.msra.mxu2 %v4678_v61 }
 0x70c   : > { %3865 = vmatpush.bf16.msra.mxu2 %v4677_v41 }
 0x710   : > { %3479 = vadd.xlane.f32.xlu2 %v8314_v22  ;;  %3866 = vmatpush.bf16.msra.mxu2 %v4676_v52 }
 0x714   : > { %3867 = vmatpush.bf16.msra.mxu2 %v4675_v10 }
 0x718   : > { %3481 = vadd.xlane.f32.xlu2 %v8326_v50  ;;  %3868 = vmatpush.bf16.msra.mxu2 %v4674_v57 }
 0x74a   : > { %v3534_v40 = vpop.xlane.xlu2 %3533 }
 0x74b   : > { %v3565_v25 = vmul.f32 %v3534_v40, %v8938_v23 }
 0x74d   : > { %v3581_v30 = vadd.f32 1e-05, %v3565_v25  ;;  %v8443_v25 = vld [vmem:[%s8756_s6 + $0x22] ss:$0 sm:$0xff] }
 0x74f   : > { %5036 = vrsqrt.f32 %v3581_v30  ;;  %vm3603_vm6 = vweird.f32 %v3581_v30 }
 0x752   : > { %v3536_v37 = vpop.xlane.xlu0 %3535  ;;  %v3468_v49 = vpop.xlane.xlu2 %3467 }
 0x753   : > { %v3566_v44 = vmul.f32 %v3536_v37, %v8938_v23  ;;  %v3492_v32 = vmul.f32 %v3468_v49, %v8938_v23 }
 0x755   : > { %v5037_v62 = vpop.eup %5036  ;;  %v3582_v27 = vadd.f32 1e-05, %v3566_v44  ;;  %v8401_v55 = vsub.f32 %v7995_v63, %v3492_v32 }
 0x756   : > { %v3598_v28 = vmul.f32 %v5037_v62, %v3581_v30  ;;  %vm3604_vm0 = vweird.f32 %v5037_v62 }
 0x757   : > { %5038 = vrsqrt.f32 %v3582_v27  ;;  %v3524_v31 = vmul.f32 %v8401_v55, %v8401_v55  ;;  %vm3605_vm7 = vmor %vm3603_vm6, %vm3604_vm0  ;;  %vm3613_vm9 = vweird.f32 %v3582_v27 }
 0x758   : > { %v3599_v54 = vmul.f32 %v5037_v62, %v3598_v28 }
 0x759   : > { %3547 = vadd.xlane.f32.xlu0 %v3524_v31 }
 0x75a   : > { %v3600_v15 = vmul.f32 0.5, %v3599_v54  ;;  %v3538_v59 = vpop.xlane.xlu0 %3537  ;;  %v3470_v16 = vpop.xlane.xlu2 %3469 }
 0x75b   : > { %v3567_v45 = vmul.f32 %v3538_v59, %v8938_v23  ;;  %v3493_v63 = vmul.f32 %v3470_v16, %v8938_v23 }
 0x75c   : > { %v3601_v9 = vsub.f32 1.5, %v3600_v15 }
 0x75d   : > { %v5039_v24 = vpop.eup %5038  ;;  %v3583_v26 = vadd.f32 1e-05, %v3567_v45  ;;  %v8414_v56 = vsub.f32 %v8059_v18, %v3493_v63 }
 0x75e   : > { %v3602_v47 = vmul.f32 %v5037_v62, %v3601_v9  ;;  %v3608_v42 = vmul.f32 %v5039_v24, %v3582_v27  ;;  %vm3614_vm8 = vweird.f32 %v5039_v24 }
 0x75f   : > { %5040 = vrsqrt.f32 %v3583_v26  ;;  %v3525_v35 = vmul.f32 %v8414_v56, %v8414_v56  ;;  %vm3615_vm10 = vmor %vm3613_vm9, %vm3614_vm8  ;;  %vm3623_vm12 = vweird.f32 %v3583_v26 }
 0x760   : > { %v3609_v7 = vmul.f32 %v5039_v24, %v3608_v42  ;;  %v3606_v19 = vsel %vm3605_vm7, %v5037_v62, %v3602_v47 }
 0x761   : > { %3549 = vadd.xlane.f32.xlu0 %v3525_v35  ;;  %v3757_v0 = vmul.f32 %v3606_v19, %v8333_v38 }
 0x762   : > { %v3610_v43 = vmul.f32 0.5, %v3609_v7  ;;  %v3472_v18 = vpop.xlane.xlu0 %3471  ;;  %v3540_v6 = vpop.xlane.xlu1 %3539 }
 0x763   : > { %v3494_v12 = vmul.f32 %v3472_v18, %v8938_v23  ;;  %v3568_v53 = vmul.f32 %v3540_v6, %v8938_v23 }
 0x764   : > { %v3611_v58 = vsub.f32 1.5, %v3610_v43 }
 0x765   : > { %v5041_v39 = vpop.eup %5040  ;;  %v8428_v29 = vsub.f32 %v8130_v1, %v3494_v12  ;;  %v3584_v8 = vadd.f32 1e-05, %v3568_v53  ;;  %v3773_v1 = vmul.f32 %v3757_v0, %v8433_v36 }
 0x766   : > { %v3612_v33 = vmul.f32 %v5039_v24, %v3611_v58  ;;  %v3618_v4 = vmul.f32 %v5041_v39, %v3583_v26  ;;  %vm3624_vm11 = vweird.f32 %v5041_v39 }
 0x767   : > { %5042 = vrsqrt.f32 %v3584_v8  ;;  %v3526_v21 = vmul.f32 %v8428_v29, %v8428_v29  ;;  %vm3625_vm13 = vmor %vm3623_vm12, %vm3624_vm11  ;;  %vm3633_vm15 = vweird.f32 %v3584_v8 }
 0x768   : > { %v3616_v13 = vsel %vm3615_vm10, %v5039_v24, %v3612_v33  ;;  %v3619_v38 = vmul.f32 %v5041_v39, %v3618_v4 }
 0x769   : > { %v3758_v40 = vmul.f32 %v3616_v13, %v8343_v2  ;;  %3483 = vadd.xlane.f32.xlu0 %v8335_v34  ;;  %3551 = vadd.xlane.f32.xlu1 %v3526_v21  ;;  %v3789_v2 = vadd.f32 %v3773_v1, %v8443_v25 }
 0x76a   : > { %v3620_v30 = vmul.f32 0.5, %v3619_v38  ;;  %v3474_v5 = vpop.xlane.xlu0 %3473  ;;  %v3542_v20 = vpop.xlane.xlu1 %3541 }
 0x76b   : > { %v3774_v37 = vmul.f32 %v3758_v40, %v8433_v36  ;;  %v3495_v49 = vmul.f32 %v3474_v5, %v8938_v23  ;;  %v3569_v44 = vmul.f32 %v3542_v20, %v8938_v23 }
 0x76c   : > { %v3621_v32 = vsub.f32 1.5, %v3620_v30 }
 0x76d   : > { %v5043_v61 = vpop.eup %5042  ;;  %v3790_v62 = vadd.f32 %v3774_v37, %v8443_v25  ;;  %v8451_v27 = vsub.f32 %v8183_v3, %v3495_v49  ;;  %v3585_v28 = vadd.f32 1e-05, %v3569_v44 }
 0x76e   : > { %v3622_v31 = vmul.f32 %v5041_v39, %v3621_v32  ;;  %v3628_v41 = vmul.f32 %v5043_v61, %v3584_v8  ;;  %vm3634_vm14 = vweird.f32 %v5043_v61 }
 0x76f   : > { %5044 = vrsqrt.f32 %v3585_v28  ;;  %v3805_v54 = vpack.c.bf16 %v3790_v62, %v3789_v2  ;;  %v3527_v15 = vmul.f32 %v8451_v27, %v8451_v27  ;;  %vm3635_vm1 = vmor %vm3633_vm15, %vm3634_vm14  ;;  %vm3643_vm3 = vweird.f32 %v3585_v28 }
 0x770   : > { %v3629_v59 = vmul.f32 %v5043_v61, %v3628_v41  ;;  %v3626_v16 = vsel %vm3625_vm13, %v5041_v39, %v3622_v31 }
 0x771   : > { %3869 = vmatmul.bf16.vlgmr.msra.gmra.mxu2 %v3805_v54  ;;  %3553 = vadd.xlane.f32.xlu1 %v3527_v15  ;;  %v3759_v42 = vmul.f32 %v3626_v16, %v8350_v60 }
 0x772   : > { %v3630_v45 = vmul.f32 0.5, %v3629_v59  ;;  %v3476_v63 = vpop.xlane.xlu1 %3475  ;;  %v3544_v52 = vpop.xlane.xlu2 %3543 }
 0x773   : > { %v3496_v3 = vmul.f32 %v3476_v63, %v8938_v23  ;;  %v3570_v9 = vmul.f32 %v3544_v52, %v8938_v23  ;;  %v3775_v12 = vmul.f32 %v3759_v42, %v8433_v36 }
 0x774   : > { %v3631_v24 = vsub.f32 1.5, %v3630_v45 }
 0x775   : > { %v5045_v47 = vpop.eup %5044  ;;  %v8459_v35 = vsub.f32 %v8238_v14, %v3496_v3  ;;  %v3586_v26 = vadd.f32 1e-05, %v3570_v9  ;;  %v3791_v33 = vadd.f32 %v3775_v12, %v8443_v25 }
 0x776   : > { %v3632_v10 = vmul.f32 %v5043_v61, %v3631_v24  ;;  %v3638_v7 = vmul.f32 %v5045_v47, %v3585_v28  ;;  %vm3644_vm2 = vweird.f32 %v5045_v47 }
 0x777   : > { %5046 = vrsqrt.f32 %v3586_v26  ;;  %v3528_v19 = vmul.f32 %v8459_v35, %v8459_v35  ;;  %vm3645_vm4 = vmor %vm3643_vm3, %vm3644_vm2  ;;  %vm3653_vm0 = vweird.f32 %v3586_v26 }
 0x778   : > { %v3636_v43 = vsel %vm3635_vm1, %v5043_v61, %v3632_v10  ;;  %v3639_v18 = vmul.f32 %v5045_v47, %v3638_v7 }
 0x779   : > { %v3760_v6 = vmul.f32 %v3636_v43, %v8357_v48  ;;  %3555 = vadd.xlane.f32.xlu2 %v3528_v19 }
 0x77a   : > { %v3640_v60 = vmul.f32 0.5, %v3639_v18  ;;  %v3478_v14 = vpop.xlane.xlu1 %3477 }
 0x77b   : > { %v3546_v53 = vpop.xlane.xlu2 %3545  ;;  %v3497_v57 = vmul.f32 %v3478_v14, %v8938_v23  ;;  %v3776_v58 = vmul.f32 %v3760_v6, %v8433_v36 }
 0x77c   : > { %v3641_v39 = vsub.f32 1.5, %v3640_v60 }
 0x77d   : > { %v5047_v0 = vpop.eup %5046  ;;  %v8468_v8 = vsub.f32 %v8278_v17, %v3497_v57  ;;  %v3792_v4 = vadd.f32 %v3776_v58, %v8443_v25 }
 0x77e   : > { %v3642_v48 = vmul.f32 %v5045_v47, %v3641_v39  ;;  %v3648_v21 = vmul.f32 %v5047_v0, %v3586_v26  ;;  %vm3654_vm5 = vweird.f32 %v5047_v0 }
 0x77f   : > { %v3806_v13 = vpack.c.bf16 %v3792_v4, %v3791_v33  ;;  %v3529_v38 = vmul.f32 %v8468_v8, %v8468_v8  ;;  %vm3655_vm6 = vmor %vm3653_vm0, %vm3654_vm5 }
 0x780   : > { %v3649_v1 = vmul.f32 %v5047_v0, %v3648_v21  ;;  %v3646_v40 = vsel %vm3645_vm4, %v5045_v47, %v3642_v48 }
 0x781   : > { %3874 = vmatmul.bf16.gmra.mxu2 %v3806_v13  ;;  %3557 = vadd.xlane.f32.xlu0 %v3529_v38  ;;  %v3761_v37 = vmul.f32 %v3646_v40, %v8364_v11 }
 0x782   : > { %v3650_v30 = vmul.f32 0.5, %v3649_v1 }
 0x783   : > { %v3480_v17 = vpop.xlane.xlu2 %3479  ;;  %v3777_v62 = vmul.f32 %v3761_v37, %v8433_v36 }
 0x784   : > { %v3498_v5 = vmul.f32 %v3480_v17, %v8938_v23  ;;  %v3651_v20 = vsub.f32 1.5, %v3650_v30 }
 0x785   : > { %v3793_v41 = vadd.f32 %v3777_v62, %v8443_v25 }
 0x786   : > { %v8477_v49 = vsub.f32 %v8314_v22, %v3498_v5  ;;  %v3652_v44 = vmul.f32 %v5047_v0, %v3651_v20 }
 0x788   : > { %v3530_v32 = vmul.f32 %v8477_v49, %v8477_v49  ;;  %v3656_v61 = vsel %vm3655_vm6, %v5047_v0, %v3652_v44 }
 0x789   : > { %v3762_v2 = vmul.f32 %v3656_v61, %v8371_v51  ;;  %v3571_v51 = vmul.f32 %v3546_v53, %v8938_v23 }
 0x78a   : > { %3559 = vadd.xlane.f32.xlu1 %v3530_v32 }
 0x78b   : > { %v3482_v28 = vpop.xlane.xlu2 %3481  ;;  %v3778_v11 = vmul.f32 %v3762_v2, %v8433_v36  ;;  %v3587_v16 = vadd.f32 1e-05, %v3571_v51 }
 0x78c   : > { %v3499_v31 = vmul.f32 %v3482_v28, %v8938_v23 }
 0x78d   : > { %v3794_v54 = vadd.f32 %v3778_v11, %v8443_v25  ;;  %5048 = vrsqrt.f32 %v3587_v16  ;;  %vm3663_vm8 = vweird.f32 %v3587_v16 }
 0x78e   : > { %v8486_v22 = vsub.f32 %v8326_v50, %v3499_v31 }
 0x78f   : > { %v3807_v15 = vpack.c.bf16 %v3794_v54, %v3793_v41 }
 0x790   : > { %v3531_v59 = vmul.f32 %v8486_v22, %v8486_v22 }
 0x791   : > { %3879 = vmatmul.bf16.gmra.mxu2 %v3807_v15 }
 0x792   : > { %3561 = vadd.xlane.f32.xlu2 %v3531_v59 }
 0x793   : > { %v5049_v45 = vpop.eup %5048 }
 0x794   : > { %v3658_v63 = vmul.f32 %v5049_v45, %v3587_v16  ;;  %vm3664_vm7 = vweird.f32 %v5049_v45 }
 0x795   : > { %vm3665_vm9 = vmor %vm3663_vm8, %vm3664_vm7 }
 0x796   : > { %v3659_v52 = vmul.f32 %v5049_v45, %v3658_v63 }
 0x798   : > { %v3660_v24 = vmul.f32 0.5, %v3659_v52  ;;  %v3910_v52 = vld [vmem:[%s8514_s17] sm:$0xff] }
 0x799   : > { %vm3926_vm4 = vcmp.gt.f32.partialorder %v3910_v52, 0.0 }
 0x79a   : > { %v3661_v47 = vsub.f32 1.5, %v3660_v24 }
 0x79c   : > { %v3662_v19 = vmul.f32 %v5049_v45, %v3661_v47 }
 0x79e   : > { %v3666_v6 = vsel %vm3665_vm9, %v5049_v45, %v3662_v19 }
 0x79f   : > { %v3763_v0 = vmul.f32 %v3666_v6, %v8378_v46 }
 0x7a1   : > { %v3779_v30 = vmul.f32 %v3763_v0, %v8433_v36 }
 0x7a3   : > { %v3795_v32 = vadd.f32 %v3779_v30, %v8443_v25 }
 0x7cc   : > { %v3548_v3 = vpop.xlane.xlu0 %3547 }
 0x7cd   : > { %v3572_v50 = vmul.f32 %v3548_v3, %v8938_v23 }
 0x7cf   : > { %v3588_v9 = vadd.f32 1e-05, %v3572_v50 }
 0x7d1   : > { %5050 = vrsqrt.f32 %v3588_v9  ;;  %vm3673_vm11 = vweird.f32 %v3588_v9 }
 0x7d4   : > { %v3550_v42 = vpop.xlane.xlu0 %3549 }
 0x7d5   : > { %v3573_v26 = vmul.f32 %v3550_v42, %v8938_v23 }
 0x7d7   : > { %v5051_v10 = vpop.eup %5050  ;;  %v3589_v7 = vadd.f32 1e-05, %v3573_v26 }
 0x7d8   : > { %v3668_v43 = vmul.f32 %v5051_v10, %v3588_v9  ;;  %vm3674_vm10 = vweird.f32 %v5051_v10  ;;  %v8521_v9 = vld [vmem:[%s8756_s6 + $0x23] ss:$0 sm:$0xff] }
 0x7d9   : > { %5052 = vrsqrt.f32 %v3589_v7  ;;  %vm3675_vm12 = vmor %vm3673_vm11, %vm3674_vm10  ;;  %vm3683_vm14 = vweird.f32 %v3589_v7 }
 0x7da   : > { %v3669_v18 = vmul.f32 %v5051_v10, %v3668_v43 }
 0x7dc   : > { %v3670_v12 = vmul.f32 0.5, %v3669_v18  ;;  %v3484_v60 = vpop.xlane.xlu0 %3483  ;;  %v3552_v53 = vpop.xlane.xlu1 %3551 }
 0x7dd   : > { %v3500_v14 = vmul.f32 %v3484_v60, %v8938_v23  ;;  %v3574_v57 = vmul.f32 %v3552_v53, %v8938_v23 }
 0x7de   : > { %v3671_v58 = vsub.f32 1.5, %v3670_v12 }
 0x7df   : > { %v5053_v39 = vpop.eup %5052  ;;  %v8499_v33 = vsub.f32 %v8335_v34, %v3500_v14  ;;  %v3590_v4 = vadd.f32 1e-05, %v3574_v57 }
 0x7e0   : > { %v3672_v48 = vmul.f32 %v5051_v10, %v3671_v58  ;;  %v3678_v21 = vmul.f32 %v5053_v39, %v3589_v7  ;;  %vm3684_vm13 = vweird.f32 %v5053_v39  ;;  %v3911_v58 = vld [vmem:[%s8514_s17 + $0x8] sm:$0xff] }
 0x7e1   : > { %5054 = vrsqrt.f32 %v3590_v4  ;;  %v3532_v13 = vmul.f32 %v8499_v33, %v8499_v33  ;;  %vm3685_vm15 = vmor %vm3683_vm14, %vm3684_vm13  ;;  %vm3693_vm2 = vweird.f32 %v3590_v4  ;;  %vm3927_vm7 = vcmp.gt.f32.partialorder %v3911_v58, 0.0 }
 0x7e2   : > { %v3676_v38 = vsel %vm3675_vm12, %v5051_v10, %v3672_v48  ;;  %v3679_v1 = vmul.f32 %v5053_v39, %v3678_v21 }
 0x7e3   : > { %v3764_v40 = vmul.f32 %v3676_v38, %v8401_v55  ;;  %3563 = vadd.xlane.f32.xlu0 %v3532_v13 }
 0x7e4   : > { %v3680_v46 = vmul.f32 0.5, %v3679_v1  ;;  %v3554_v17 = vpop.xlane.xlu1 %3553 }
 0x7e5   : > { %v3575_v34 = vmul.f32 %v3554_v17, %v8938_v23  ;;  %v3780_v5 = vmul.f32 %v3764_v40, %v8433_v36 }
 0x7e6   : > { %v3681_v20 = vsub.f32 1.5, %v3680_v46 }
 0x7e7   : > { %v5055_v37 = vpop.eup %5054  ;;  %v3591_v44 = vadd.f32 1e-05, %v3575_v34  ;;  %v3796_v61 = vadd.f32 %v3780_v5, %v8443_v25 }
 0x7e8   : > { %v3682_v2 = vmul.f32 %v5053_v39, %v3681_v20  ;;  %v3688_v55 = vmul.f32 %v5055_v37, %v3590_v4  ;;  %vm3694_vm1 = vweird.f32 %v5055_v37  ;;  %v3912_v20 = vld [vmem:[%s8514_s17 + $0x10] sm:$0xff] }
 0x7e9   : > { %5056 = vrsqrt.f32 %v3591_v44  ;;  %v3808_v62 = vpack.c.bf16 %v3796_v61, %v3795_v32  ;;  %vm3695_vm3 = vmor %vm3693_vm2, %vm3694_vm1  ;;  %vm3703_vm0 = vweird.f32 %v3591_v44  ;;  %vm3928_vm11 = vcmp.gt.f32.partialorder %v3912_v20, 0.0 }
 0x7ea   : > { %v3689_v28 = vmul.f32 %v5055_v37, %v3688_v55  ;;  %v3686_v31 = vsel %vm3685_vm15, %v5053_v39, %v3682_v2 }
 0x7eb   : > { %3884 = vmatmul.bf16.gmra.mxu2 %v3808_v62  ;;  %v3765_v51 = vmul.f32 %v3686_v31, %v8414_v56 }
 0x7ec   : > { %v3690_v11 = vmul.f32 0.5, %v3689_v28  ;;  %v3556_v41 = vpop.xlane.xlu2 %3555 }
 0x7ed   : > { %v3576_v54 = vmul.f32 %v3556_v41, %v8938_v23  ;;  %v3781_v47 = vmul.f32 %v3765_v51, %v8433_v36  ;;  %v3913_v51 = vld [vmem:[%s8514_s17 + $0x18] sm:$0xff] }
 0x7ee   : > { %v3691_v15 = vsub.f32 1.5, %v3690_v11  ;;  %vm3929_vm15 = vcmp.gt.f32.partialorder %v3913_v51, 0.0 }
 0x7ef   : > { %v5057_v59 = vpop.eup %5056  ;;  %v3592_v16 = vadd.f32 1e-05, %v3576_v54 }
 0x7f0   : > { %v3692_v45 = vmul.f32 %v5055_v37, %v3691_v15  ;;  %v3698_v63 = vmul.f32 %v5057_v59, %v3591_v44  ;;  %vm3704_vm5 = vweird.f32 %v5057_v59 }
 0x7f1   : > { %5058 = vrsqrt.f32 %v3592_v16  ;;  %vm3705_vm6 = vmor %vm3703_vm0, %vm3704_vm5  ;;  %vm3713_vm9 = vweird.f32 %v3592_v16 }
 0x7f2   : > { %v3696_v3 = vsel %vm3695_vm3, %v5055_v37, %v3692_v45  ;;  %v3699_v50 = vmul.f32 %v5057_v59, %v3698_v63 }
 0x7f3   : > { %v3766_v24 = vmul.f32 %v3696_v3, %v8428_v29  ;;  %v3797_v29 = vadd.f32 %v3781_v47, %v8443_v25 }
 0x7f4   : > { %v3700_v42 = vmul.f32 0.5, %v3699_v50  ;;  %v3870_v56 = vpop.f32.mrf.mxu2  ;;  %v3558_v26 = vpop.xlane.xlu0 %3557 }
 0x7f5   : > { %v3871_v10 = vadd.f32 %v3870_v56, %v8521_v9  ;;  %v3577_v7 = vmul.f32 %v3558_v26, %v8938_v23  ;;  %v3782_v19 = vmul.f32 %v3766_v24, %v8433_v36  ;;  %v3914_v56 = vld [vmem:[%s8514_s17 + $0x20] sm:$0xff] }
 0x7f6   : > { %v3701_v43 = vsub.f32 1.5, %v3700_v42 }
 0x7f7   : > { %v5059_v18 = vpop.eup %5058  ;;  %v3593_v6 = vadd.f32 1e-05, %v3577_v7  ;;  %v8528_v12 = vsel %vm3926_vm4, %v3871_v10, -1e+10  ;;  %v3798_v60 = vadd.f32 %v3782_v19, %v8443_v25  ;;  %vm3930_vm4 = vcmp.gt.f32.partialorder %v3914_v56, 0.0 }
 0x7f8   : > { %v3702_v53 = vmul.f32 %v5057_v59, %v3701_v43  ;;  %v3708_v14 = vmul.f32 %v5059_v18, %v3592_v16  ;;  %3958 = vmax.xlane.f32.xlu1 %v8528_v12  ;;  %vm3714_vm8 = vweird.f32 %v5059_v18 }
 0x7f9   : > { %5060 = vrsqrt.f32 %v3593_v6  ;;  %v3809_v57 = vpack.c.bf16 %v3798_v60, %v3797_v29  ;;  %vm3715_vm10 = vmor %vm3713_vm9, %vm3714_vm8  ;;  %vm3723_vm13 = vweird.f32 %v3593_v6 }
 0x7fa   : > { %v3709_v39 = vmul.f32 %v5059_v18, %v3708_v14  ;;  %v3706_v0 = vsel %vm3705_vm6, %v5057_v59, %v3702_v53  ;;  %v3915_v53 = vld [vmem:[%s8514_s17 + $0x28] sm:$0xff] }
 0x7fb   : > { %3889 = vmatmul.bf16.gmra.mxu2 %v3809_v57  ;;  %v3767_v30 = vmul.f32 %v3706_v0, %v8451_v27  ;;  %vm3931_vm5 = vcmp.gt.f32.partialorder %v3915_v53, 0.0 }
 0x7fc   : > { %v3710_v4 = vmul.f32 0.5, %v3709_v39  ;;  %v3872_v48 = vpop.f32.mrf.mxu2 }
 0x7fd   : > { %v3560_v21 = vpop.xlane.xlu1 %3559  ;;  %v3873_v13 = vadd.f32 %v3872_v48, %v8521_v9  ;;  %v3783_v61 = vmul.f32 %v3767_v30, %v8433_v36 }
 0x7fe   : > { %v3578_v38 = vmul.f32 %v3560_v21, %v8938_v23  ;;  %v3711_v1 = vsub.f32 1.5, %v3710_v4 }
 0x7ff   : > { %v5061_v40 = vpop.eup %5060  ;;  %v8537_v17 = vsel %vm3927_vm7, %v3873_v13, -1e+10  ;;  %v3799_v41 = vadd.f32 %v3783_v61, %v8443_v25 }
 0x800   : > { %v3594_v46 = vadd.f32 1e-05, %v3578_v38  ;;  %v3712_v34 = vmul.f32 %v5059_v18, %v3711_v1  ;;  %v3718_v5 = vmul.f32 %v5061_v40, %v3593_v6  ;;  %3960 = vmax.xlane.f32.xlu2 %v8537_v17  ;;  %vm3724_vm12 = vweird.f32 %v5061_v40 }
 0x801   : > { %vm3725_vm14 = vmor %vm3723_vm13, %vm3724_vm12 }
 0x802   : > { %5062 = vrsqrt.f32 %v3594_v46  ;;  %v3716_v37 = vsel %vm3715_vm10, %v5059_v18, %v3712_v34  ;;  %v3719_v44 = vmul.f32 %v5061_v40, %v3718_v5  ;;  %vm3733_vm2 = vweird.f32 %v3594_v46 }
 0x803   : > { %v3768_v32 = vmul.f32 %v3716_v37, %v8459_v35 }
 0x804   : > { %v3720_v2 = vmul.f32 0.5, %v3719_v44  ;;  %v3875_v27 = vpop.f32.mrf.mxu2 }
 0x805   : > { %v3876_v55 = vadd.f32 %v3875_v27, %v8521_v9  ;;  %v3784_v62 = vmul.f32 %v3768_v32, %v8433_v36  ;;  %v3562_v58 = vpop.xlane.xlu2 %3561 }
 0x806   : > { %v3721_v28 = vsub.f32 1.5, %v3720_v2  ;;  %v3579_v39 = vmul.f32 %v3562_v58, %v8938_v23  ;;  %v3923_v58 = vld [vmem:[%s8514_s17 + $0x68] sm:$0xff] }
 0x807   : > { %v8545_v11 = vsel %vm3928_vm11, %v3876_v55, -1e+10  ;;  %v3800_v54 = vadd.f32 %v3784_v62, %v8443_v25 }
 0x808   : > { %v5063_v31 = vpop.eup %5062  ;;  %v3722_v15 = vmul.f32 %v5061_v40, %v3721_v28  ;;  %3962 = vmax.xlane.f32.xlu0 %v8545_v11  ;;  %v3595_v0 = vadd.f32 1e-05, %v3579_v39 }
 0x809   : > { %v3728_v35 = vmul.f32 %v5063_v31, %v3594_v46  ;;  %v3810_v59 = vpack.c.bf16 %v3800_v54, %v3799_v41  ;;  %vm3734_vm1 = vweird.f32 %v5063_v31 }
 0x80a   : > { %v3726_v45 = vsel %vm3725_vm14, %v5061_v40, %v3722_v15  ;;  %vm3735_vm3 = vmor %vm3733_vm2, %vm3734_vm1  ;;  %5064 = vrsqrt.f32 %v3595_v0  ;;  %vm3743_vm6 = vweird.f32 %v3595_v0 }
 0x80b   : > { %v3729_v16 = vmul.f32 %v5063_v31, %v3728_v35  ;;  %3894 = vmatmul.bf16.gmra.mxu2 %v3810_v59  ;;  %v3769_v24 = vmul.f32 %v3726_v45, %v8468_v8 }
 0x80c   : > { %v3877_v52 = vpop.f32.mrf.mxu2 }
 0x80d   : > { %v3730_v63 = vmul.f32 0.5, %v3729_v16  ;;  %v3878_v3 = vadd.f32 %v3877_v52, %v8521_v9  ;;  %v3785_v7 = vmul.f32 %v3769_v24, %v8433_v36  ;;  %v3919_v52 = vld [vmem:[%s8514_s17 + $0x48] sm:$0xff] }
 0x80e   : > { %vm3935_vm14 = vcmp.gt.f32.partialorder %v3919_v52, 0.0 }
 0x80f   : > { %v3731_v50 = vsub.f32 1.5, %v3730_v63  ;;  %v8553_v47 = vsel %vm3929_vm15, %v3878_v3, -1e+10  ;;  %v3801_v6 = vadd.f32 %v3785_v7, %v8443_v25  ;;  %v3921_v7 = vld [vmem:[%s8514_s17 + $0x58] sm:$0xff] }
 0x810   : > { %3964 = vmax.xlane.f32.xlu1 %v8553_v47  ;;  %v5065_v4 = vpop.eup %5064  ;;  %vm3937_vm1 = vcmp.gt.f32.partialorder %v3921_v7, 0.0 }
 0x811   : > { %v3732_v42 = vmul.f32 %v5063_v31, %v3731_v50  ;;  %v3738_v48 = vmul.f32 %v5065_v4, %v3595_v0  ;;  %vm3744_vm0 = vweird.f32 %v5065_v4 }
 0x812   : > { %vm3745_vm7 = vmor %vm3743_vm6, %vm3744_vm0 }
 0x813   : > { %v3736_v26 = vsel %vm3735_vm3, %v5063_v31, %v3732_v42  ;;  %v3739_v21 = vmul.f32 %v5065_v4, %v3738_v48  ;;  %v3920_v42 = vld [vmem:[%s8514_s17 + $0x50] sm:$0xff]  ;;  %vm3939_vm3 = vcmp.gt.f32.partialorder %v3923_v58, 0.0 }
 0x814   : > { %v3770_v10 = vmul.f32 %v3736_v26, %v8477_v49  ;;  %v3880_v19 = vpop.f32.mrf.mxu2  ;;  %vm3936_vm15 = vcmp.gt.f32.partialorder %v3920_v42, 0.0 }
 0x815   : > { %v3881_v43 = vadd.f32 %v3880_v19, %v8521_v9  ;;  %v3740_v40 = vmul.f32 0.5, %v3739_v21 }
 0x816   : > { %v3786_v8 = vmul.f32 %v3770_v10, %v8433_v36 }
 0x817   : > { %v8561_v18 = vsel %vm3930_vm4, %v3881_v43, -1e+10  ;;  %v3741_v30 = vsub.f32 1.5, %v3740_v40 }
 0x818   : > { %v3802_v29 = vadd.f32 %v3786_v8, %v8443_v25  ;;  %3966 = vmax.xlane.f32.xlu2 %v8561_v18 }
 0x819   : > { %v3742_v34 = vmul.f32 %v5065_v4, %v3741_v30 }
 0x81a   : > { %v3811_v60 = vpack.c.bf16 %v3802_v29, %v3801_v6  ;;  %v3922_v6 = vld [vmem:[%s8514_s17 + $0x60] sm:$0xff] }
 0x81b   : > { %v3746_v37 = vsel %vm3745_vm7, %v5065_v4, %v3742_v34  ;;  %vm3938_vm2 = vcmp.gt.f32.partialorder %v3922_v6, 0.0 }
 0x81c   : > { %3899 = vmatmul.bf16.gmra.mxu2 %v3811_v60  ;;  %v3882_v49 = vpop.f32.mrf.mxu2  ;;  %v3771_v61 = vmul.f32 %v3746_v37, %v8486_v22 }
 0x81d   : > { %v3883_v14 = vadd.f32 %v3882_v49, %v8521_v9 }
 0x81e   : > { %v3787_v62 = vmul.f32 %v3771_v61, %v8433_v36 }
 0x81f   : > { %v8568_v57 = vsel %vm3931_vm5, %v3883_v14, -1e+10 }
 0x820   : > { %3968 = vmax.xlane.f32.xlu0 %v8568_v57  ;;  %v3803_v22 = vadd.f32 %v3787_v62, %v8443_v25 }
 0x856   : > { %v3564_v13 = vpop.xlane.xlu0 %3563 }
 0x857   : > { %v3580_v38 = vmul.f32 %v3564_v13, %v8938_v23  ;;  %v3916_v23 = vld [vmem:[%s8514_s17 + $0x30] sm:$0xff] }
 0x858   : > { %vm3932_vm11 = vcmp.gt.f32.partialorder %v3916_v23, 0.0 }
 0x859   : > { %v3596_v1 = vadd.f32 1e-05, %v3580_v38 }
 0x85b   : > { %5066 = vrsqrt.f32 %v3596_v1  ;;  %vm3753_vm9 = vweird.f32 %v3596_v1 }
 0x861   : > { %v5067_v46 = vpop.eup %5066 }
 0x862   : > { %v3748_v5 = vmul.f32 %v5067_v46, %v3596_v1  ;;  %vm3754_vm8 = vweird.f32 %v5067_v46 }
 0x863   : > { %vm3755_vm10 = vmor %vm3753_vm9, %vm3754_vm8 }
 0x864   : > { %v3749_v20 = vmul.f32 %v5067_v46, %v3748_v5 }
 0x866   : > { %v3750_v44 = vmul.f32 0.5, %v3749_v20 }
 0x868   : > { %v3751_v32 = vsub.f32 1.5, %v3750_v44  ;;  %v3924_v44 = vld [vmem:[%s8514_s17 + $0x70] sm:$0xff] }
 0x869   : > { %vm3940_vm4 = vcmp.gt.f32.partialorder %v3924_v44, 0.0 }
 0x86a   : > { %v3752_v2 = vmul.f32 %v5067_v46, %v3751_v32 }
 0x86b   : > { %v8611_v53 = vpop.xlane.xlu1 %3958 }
 0x86c   : > { %v3756_v27 = vsel %vm3755_vm10, %v5067_v46, %v3752_v2  ;;  %v3990_v14 = vsub.f32 %v8528_v12, %v8611_v53 }
 0x86d   : > { %v3772_v55 = vmul.f32 %v3756_v27, %v8499_v33  ;;  %v3917_v33 = vld [vmem:[%s8514_s17 + $0x38] sm:$0xff] }
 0x86e   : > { %v3885_v28 = vpop.f32.mrf.mxu2  ;;  %vm3933_vm12 = vcmp.gt.f32.partialorder %v3917_v33, 0.0  ;;  %v4006_v0 = vmul.f32 1.442695, %v3990_v14 }
 0x86f   : > { %v3886_v31 = vadd.f32 %v3885_v28, %v8521_v9  ;;  %v3788_v41 = vmul.f32 %v3772_v55, %v8433_v36  ;;  %v3918_v36 = vld [vmem:[%s8514_s17 + $0x40] sm:$0xff] }
 0x870   : > { %vm3934_vm13 = vcmp.gt.f32.partialorder %v3918_v36, 0.0  ;;  %5068 = vpow2.f32 %v4006_v0 }
 0x871   : > { %v8579_v54 = vsel %vm3932_vm11, %v3886_v31, -1e+10  ;;  %v3804_v15 = vadd.f32 %v3788_v41, %v8443_v25  ;;  %v3925_v41 = vld [vmem:[%s8514_s17 + $0x78] sm:$0xff] }
 0x872   : > { %3970 = vmax.xlane.f32.xlu1 %v8579_v54  ;;  %vm3941_vm5 = vcmp.gt.f32.partialorder %v3925_v41, 0.0 }
 0x873   : > { %v3812_v35 = vpack.c.bf16 %v3804_v15, %v3803_v22  ;;  %v8631_v20 = vpop.xlane.xlu2 %3960 }
 0x874   : > { %v3991_v37 = vsub.f32 %v8537_v17, %v8631_v20 }
 0x875   : > { %3904 = vmatmul.bf16.gmra.mxu2 %v3812_v35 }
 0x876   : > { %v3887_v59 = vpop.f32.mrf.mxu2  ;;  %v5069_v1 = vpop.eup %5068  ;;  %v4008_v61 = vmul.f32 1.442695, %v3991_v37 }
 0x877   : > { %v3888_v51 = vadd.f32 %v3887_v59, %v8521_v9 }
 0x879   : > { %v8586_v16 = vsel %vm3933_vm12, %v3888_v51, -1e+10 }
 0x87a   : > { %3972 = vmax.xlane.f32.xlu2 %v8586_v16 }
 0x87b   : > { %v8636_v2 = vpop.xlane.xlu0 %3962 }
 0x87c   : > { %v3992_v62 = vsub.f32 %v8545_v11, %v8636_v2 }
 0x87e   : > { %v3890_v45 = vpop.f32.mrf.mxu2  ;;  %v4010_v15 = vmul.f32 1.442695, %v3992_v62 }
 0x87f   : > { %v3891_v25 = vadd.f32 %v3890_v45, %v8521_v9 }
 0x881   : > { %v8591_v63 = vsel %vm3934_vm13, %v3891_v25, -1e+10 }
 0x882   : > { %3974 = vmax.xlane.f32.xlu0 %v8591_v63 }
 0x883   : > { %v8620_v48 = vpop.xlane.xlu1 %3964 }
 0x884   : > { %v3993_v13 = vsub.f32 %v8553_v47, %v8620_v48 }
 0x886   : > { %v3892_v3 = vpop.f32.mrf.mxu2  ;;  %v4012_v38 = vmul.f32 1.442695, %v3993_v13 }
 0x887   : > { %v3893_v50 = vadd.f32 %v3892_v3, %v8521_v9 }
 0x888   : > { %5070 = vpow2.f32 %v4012_v38 }
 0x889   : > { %v8596_v24 = vsel %vm3935_vm14, %v3893_v50, -1e+10 }
 0x88a   : > { %3976 = vmax.xlane.f32.xlu1 %v8596_v24 }
 0x88b   : > { %v8639_v27 = vpop.xlane.xlu2 %3966 }
 0x88c   : > { %v3994_v28 = vsub.f32 %v8561_v18, %v8639_v27 }
 0x88e   : > { %v3895_v56 = vpop.f32.mrf.mxu2  ;;  %v5071_v40 = vpop.eup %5070  ;;  %v4014_v59 = vmul.f32 1.442695, %v3994_v28 }
 0x88f   : > { %v3896_v26 = vadd.f32 %v3895_v56, %v8521_v9 }
 0x891   : > { %v8601_v10 = vsel %vm3936_vm15, %v3896_v26, -1e+10 }
 0x892   : > { %3978 = vmax.xlane.f32.xlu2 %v8601_v10 }
 0x893   : > { %v8653_v51 = vpop.xlane.xlu0 %3968 }
 0x894   : > { %v3995_v3 = vsub.f32 %v8568_v57, %v8653_v51 }
 0x896   : > { %v3897_v19 = vpop.f32.mrf.mxu2  ;;  %v4016_v56 = vmul.f32 1.442695, %v3995_v3 }
 0x897   : > { %v3898_v43 = vadd.f32 %v3897_v19, %v8521_v9 }
 0x899   : > { %v8606_v8 = vsel %vm3937_vm1, %v3898_v43, -1e+10 }
 0x89a   : > { %3980 = vmax.xlane.f32.xlu0 %v8606_v8 }
 0x89f   : > { %v3900_v29 = vpop.f32.mrf.mxu2 }
 0x8a0   : > { %v3901_v60 = vadd.f32 %v3900_v29, %v8521_v9 }
 0x8a2   : > { %v8613_v49 = vsel %vm3938_vm2, %v3901_v60, -1e+10 }
 0x8a3   : > { %3982 = vmax.xlane.f32.xlu1 %v8613_v49 }
 0x8a7   : > { %v3902_v39 = vpop.f32.mrf.mxu2 }
 0x8a8   : > { %v3903_v4 = vadd.f32 %v3902_v39, %v8521_v9 }
 0x8aa   : > { %v8622_v21 = vsel %vm3939_vm3, %v3903_v4, -1e+10 }
 0x8ab   : > { %3984 = vmax.xlane.f32.xlu2 %v8622_v21 }
 0x8b3   : > { %4038 = vadd.xlane.f32.xlu2 %v5069_v1 }
 0x8bb   : > { %4044 = vadd.xlane.f32.xlu2 %v5071_v40 }
 0x8e5   : > { %v8627_v30 = vpop.xlane.xlu1 %3970 }
 0x8e6   : > { %v3996_v46 = vsub.f32 %v8579_v54, %v8627_v30 }
 0x8e8   : > { %v4018_v34 = vmul.f32 1.442695, %v3996_v46 }
 0x8ea   : > { %5072 = vpow2.f32 %v4018_v34 }
 0x8eb   : > { %5074 = vpow2.f32 %v4008_v61 }
 0x8ed   : > { %v8656_v45 = vpop.xlane.xlu2 %3972 }
 0x8ee   : > { %v3997_v50 = vsub.f32 %v8586_v16, %v8656_v45 }
 0x8f0   : > { %v5073_v5 = vpop.eup %5072 }
 0x8f1   : > { %4050 = vadd.xlane.f32.xlu2 %v5073_v5  ;;  %v5075_v25 = vpop.eup %5074 }
 0x8f5   : > { %v8665_v26 = vpop.xlane.xlu0 %3974 }
 0x8f6   : > { %v3998_v6 = vsub.f32 %v8591_v63, %v8665_v26 }
 0x8f8   : > { %v3905_v32 = vpop.f32.mrf.mxu2  ;;  %v4022_v60 = vmul.f32 1.442695, %v3998_v6 }
 0x8f9   : > { %v3906_v23 = vadd.f32 %v3905_v32, %v8521_v9 }
 0x8fb   : > { %v8641_v55 = vsel %vm3940_vm4, %v3906_v23, -1e+10 }
 0x8fc   : > { %3986 = vmax.xlane.f32.xlu0 %v8641_v55 }
 0x8fd   : > { %v8648_v31 = vpop.xlane.xlu1 %3976 }
 0x8fe   : > { %v3999_v22 = vsub.f32 %v8596_v24, %v8648_v31 }
 0x900   : > { %v4024_v35 = vmul.f32 1.442695, %v3999_v22  ;;  %v3907_v33 = vpop.f32.mrf.mxu2 }
 0x901   : > { %v3908_v36 = vadd.f32 %v3907_v33, %v8521_v9  ;;  %v4020_v9 = vmul.f32 1.442695, %v3997_v50 }
 0x902   : > { %5076 = vpow2.f32 %v4024_v35 }
 0x903   : > { %v8658_v52 = vsel %vm3941_vm5, %v3908_v36, -1e+10  ;;  %5078 = vpow2.f32 %v4010_v15 }
 0x904   : > { %4040 = vadd.xlane.f32.xlu0 %v5075_v25  ;;  %3988 = vmax.xlane.f32.xlu1 %v8658_v52  ;;  %5080 = vpow2.f32 %v4014_v59 }
 0x905   : > { %v8667_v19 = vpop.xlane.xlu2 %3978  ;;  %5082 = vpow2.f32 %v4016_v56 }
 0x906   : > { %5084 = vpow2.f32 %v4020_v9  ;;  %v4000_v29 = vsub.f32 %v8601_v10, %v8667_v19 }
 0x907   : > { %5086 = vpow2.f32 %v4022_v60 }
 0x908   : > { %v5077_v42 = vpop.eup %5076  ;;  %v4026_v14 = vmul.f32 1.442695, %v4000_v29 }
 0x909   : > { %4056 = vadd.xlane.f32.xlu2 %v5077_v42  ;;  %v5079_v7 = vpop.eup %5078 }
 0x90a   : > { %v5081_v43 = vpop.eup %5080  ;;  %5088 = vpow2.f32 %v4026_v14 }
 0x90b   : > { %v5083_v58 = vpop.eup %5082 }
 0x90c   : > { %4046 = vadd.xlane.f32.xlu0 %v5081_v43  ;;  %4042 = vadd.xlane.f32.xlu1 %v5079_v7  ;;  %v5085_v0 = vpop.eup %5084 }
 0x90d   : > { %v8673_v39 = vpop.xlane.xlu0 %3980  ;;  %v5087_v46 = vpop.eup %5086 }
 0x90e   : > { %v4001_v4 = vsub.f32 %v8606_v8, %v8673_v39 }
 0x910   : > { %v4028_v40 = vmul.f32 1.442695, %v4001_v4  ;;  %v5089_v34 = vpop.eup %5088 }
 0x914   : > { %4052 = vadd.xlane.f32.xlu0 %v5085_v0  ;;  %4048 = vadd.xlane.f32.xlu1 %v5083_v58 }
 0x916   : > { %v8677_v13 = vpop.xlane.xlu1 %3982 }
 0x917   : > { %v4002_v38 = vsub.f32 %v8613_v49, %v8677_v13 }
 0x919   : > { %v4030_v1 = vmul.f32 1.442695, %v4002_v38 }
 0x91b   : > { %5090 = vpow2.f32 %v4030_v1 }
 0x91c   : > { %4058 = vadd.xlane.f32.xlu0 %v5089_v34  ;;  %4054 = vadd.xlane.f32.xlu1 %v5087_v46  ;;  %5092 = vpow2.f32 %v4028_v40 }
 0x91e   : > { %v8681_v5 = vpop.xlane.xlu2 %3984 }
 0x91f   : > { %v4003_v37 = vsub.f32 %v8622_v21, %v8681_v5 }
 0x921   : > { %v5091_v44 = vpop.eup %5090  ;;  %v4032_v32 = vmul.f32 1.442695, %v4003_v37 }
 0x922   : > { %4062 = vadd.xlane.f32.xlu2 %v5091_v44  ;;  %v5093_v61 = vpop.eup %5092 }
 0x923   : > { %5094 = vpow2.f32 %v4032_v32 }
 0x924   : > { %4060 = vadd.xlane.f32.xlu1 %v5093_v61 }
 0x926   : > { %v4039_v23 = vpop.xlane.xlu2 %4038 }
 0x927   : > { %5096 = vlog2.f32 %v4039_v23 }
 0x929   : > { %v5095_v62 = vpop.eup %5094 }
 0x92a   : > { %4064 = vadd.xlane.f32.xlu0 %v5095_v62 }
 0x92d   : > { %v5097_v28 = vpop.eup %5096 }
 0x92e   : > { %v4071_v41 = vmul.f32 0.6931472, %v5097_v28  ;;  %v4045_v22 = vpop.xlane.xlu2 %4044 }
 0x92f   : > { %5098 = vlog2.f32 %v4045_v22 }
 0x930   : > { %v4102_v15 = vadd.f32 %v4071_v41, %v8611_v53 }
 0x932   : > { %v4118_v35 = vsub.f32 %v8528_v12, %v4102_v15 }
 0x934   : > { %4134 = vst [vmem:[%s8690_s22] sm:$0xff] %v4118_v35 }
 0x935   : > { %v5099_v33 = vpop.eup %5098 }
 0x936   : > { %v4077_v59 = vmul.f32 0.6931472, %v5099_v33 }
 0x938   : > { %v4105_v36 = vadd.f32 %v4077_v59, %v8620_v48 }
 0x93a   : > { %v4121_v25 = vsub.f32 %v8553_v47, %v4105_v36 }
 0x93c   : > { %4137 = vst [vmem:[%s8690_s22 + $0x18] sm:$0xff] %v4121_v25 }
 0x964   : > { %v4051_v3 = vpop.xlane.xlu2 %4050 }
 0x965   : > { %5100 = vlog2.f32 %v4051_v3 }
 0x96b   : > { %v5101_v53 = vpop.eup %5100 }
 0x96c   : > { %v4083_v50 = vmul.f32 0.6931472, %v5101_v53 }
 0x96e   : > { %v4108_v42 = vadd.f32 %v4083_v50, %v8627_v30 }
 0x96f   : > { %v8698_v56 = vpop.xlane.xlu0 %3986 }
 0x970   : > { %v4124_v9 = vsub.f32 %v8579_v54, %v4108_v42  ;;  %v4004_v12 = vsub.f32 %v8641_v55, %v8698_v56 }
 0x972   : > { %4140 = vst [vmem:[%s8690_s22 + $0x30] sm:$0xff] %v4124_v9  ;;  %v4034_v7 = vmul.f32 1.442695, %v4004_v12 }
 0x974   : > { %5102 = vpow2.f32 %v4034_v7 }
 0x977   : > { %v4041_v48 = vpop.xlane.xlu0 %4040  ;;  %v8704_v43 = vpop.xlane.xlu1 %3988 }
 0x978   : > { %5104 = vlog2.f32 %v4041_v48  ;;  %v4005_v47 = vsub.f32 %v8658_v52, %v8704_v43 }
 0x97a   : > { %v5103_v6 = vpop.eup %5102  ;;  %v4036_v29 = vmul.f32 1.442695, %v4005_v47 }
 0x97b   : > { %4066 = vadd.xlane.f32.xlu1 %v5103_v6 }
 0x97c   : > { %5106 = vpow2.f32 %v4036_v29  ;;  %v4057_v30 = vpop.xlane.xlu2 %4056 }
 0x97d   : > { %5108 = vlog2.f32 %v4057_v30 }
 0x97e   : > { %v5105_v54 = vpop.eup %5104 }
 0x97f   : > { %v4073_v60 = vmul.f32 0.6931472, %v5105_v54  ;;  %v4047_v14 = vpop.xlane.xlu0 %4046  ;;  %v4043_v58 = vpop.xlane.xlu1 %4042 }
 0x980   : > { %5110 = vlog2.f32 %v4047_v14 }
 0x981   : > { %v4103_v0 = vadd.f32 %v4073_v60, %v8631_v20  ;;  %5112 = vlog2.f32 %v4043_v58 }
 0x982   : > { %v5107_v4 = vpop.eup %5106 }
 0x983   : > { %v5109_v38 = vpop.eup %5108  ;;  %v4119_v1 = vsub.f32 %v8537_v17, %v4103_v0  ;;  %4068 = vadd.xlane.f32.xlu2 %v5107_v4 }
 0x984   : > { %v4089_v40 = vmul.f32 0.6931472, %v5109_v38 }
 0x985   : > { %4135 = vst [vmem:[%s8690_s22 + $0x8] sm:$0xff] %v4119_v1 }
 0x986   : > { %v5111_v46 = vpop.eup %5110  ;;  %v4111_v34 = vadd.f32 %v4089_v40, %v8648_v31 }
 0x987   : > { %v5113_v37 = vpop.eup %5112  ;;  %v4079_v44 = vmul.f32 0.6931472, %v5111_v46  ;;  %v4053_v32 = vpop.xlane.xlu0 %4052 }
 0x988   : > { %v4049_v61 = vpop.xlane.xlu1 %4048  ;;  %v4127_v20 = vsub.f32 %v8596_v24, %v4111_v34  ;;  %v4075_v23 = vmul.f32 0.6931472, %v5113_v37  ;;  %5114 = vlog2.f32 %v4053_v32 }
 0x989   : > { %v4106_v62 = vadd.f32 %v4079_v44, %v8639_v27  ;;  %5116 = vlog2.f32 %v4049_v61 }
 0x98a   : > { %4143 = vst [vmem:[%s8690_s22 + $0x48] sm:$0xff] %v4127_v20  ;;  %v4104_v17 = vadd.f32 %v4075_v23, %v8636_v2 }
 0x98b   : > { %v4122_v28 = vsub.f32 %v8561_v18, %v4106_v62 }
 0x98c   : > { %v4120_v41 = vsub.f32 %v8545_v11, %v4104_v17 }
 0x98d   : > { %4138 = vst [vmem:[%s8690_s22 + $0x20] sm:$0xff] %v4122_v28 }
 0x98e   : > { %v5115_v31 = vpop.eup %5114  ;;  %4136 = vst [vmem:[%s8690_s22 + $0x10] sm:$0xff] %v4120_v41 }
 0x98f   : > { %v5117_v22 = vpop.eup %5116  ;;  %v4085_v15 = vmul.f32 0.6931472, %v5115_v31  ;;  %v4059_v24 = vpop.xlane.xlu0 %4058 }
 0x990   : > { %v4055_v35 = vpop.xlane.xlu1 %4054  ;;  %v4081_v33 = vmul.f32 0.6931472, %v5117_v22  ;;  %5118 = vlog2.f32 %v4059_v24 }
 0x991   : > { %v4109_v27 = vadd.f32 %v4085_v15, %v8656_v45  ;;  %5120 = vlog2.f32 %v4055_v35 }
 0x992   : > { %v4107_v2 = vadd.f32 %v4081_v33, %v8653_v51 }
 0x993   : > { %v4125_v18 = vsub.f32 %v8586_v16, %v4109_v27 }
 0x994   : > { %v4123_v11 = vsub.f32 %v8568_v57, %v4107_v2 }
 0x995   : > { %v4063_v59 = vpop.xlane.xlu2 %4062  ;;  %4141 = vst [vmem:[%s8690_s22 + $0x38] sm:$0xff] %v4125_v18 }
 0x996   : > { %5122 = vlog2.f32 %v4063_v59  ;;  %v5119_v36 = vpop.eup %5118  ;;  %4139 = vst [vmem:[%s8690_s22 + $0x28] sm:$0xff] %v4123_v11 }
 0x997   : > { %v5121_v25 = vpop.eup %5120  ;;  %v4091_v3 = vmul.f32 0.6931472, %v5119_v36 }
 0x998   : > { %v4061_v53 = vpop.xlane.xlu1 %4060  ;;  %v4087_v50 = vmul.f32 0.6931472, %v5121_v25 }
 0x999   : > { %5124 = vlog2.f32 %v4061_v53  ;;  %v4112_v45 = vadd.f32 %v4091_v3, %v8667_v19 }
 0x99a   : > { %v4110_v51 = vadd.f32 %v4087_v50, %v8665_v26 }
 0x99b   : > { %v4128_v57 = vsub.f32 %v8601_v10, %v4112_v45 }
 0x99c   : > { %v5123_v16 = vpop.eup %5122  ;;  %v4126_v42 = vsub.f32 %v8591_v63, %v4110_v51 }
 0x99d   : > { %v4095_v9 = vmul.f32 0.6931472, %v5123_v16  ;;  %v4065_v12 = vpop.xlane.xlu0 %4064  ;;  %4144 = vst [vmem:[%s8690_s22 + $0x50] sm:$0xff] %v4128_v57 }
 0x99e   : > { %5126 = vlog2.f32 %v4065_v12  ;;  %4142 = vst [vmem:[%s8690_s22 + $0x40] sm:$0xff] %v4126_v42 }
 0x99f   : > { %v5125_v7 = vpop.eup %5124  ;;  %v4114_v48 = vadd.f32 %v4095_v9, %v8677_v13 }
 0x9a0   : > { %v4093_v47 = vmul.f32 0.6931472, %v5125_v7 }
 0x9a1   : > { %v4130_v19 = vsub.f32 %v8613_v49, %v4114_v48 }
 0x9a2   : > { %v4113_v26 = vadd.f32 %v4093_v47, %v8673_v39 }
 0x9a3   : > { %4146 = vst [vmem:[%s8690_s22 + $0x60] sm:$0xff] %v4130_v19 }
 0x9a4   : > { %v5127_v10 = vpop.eup %5126  ;;  %v4129_v6 = vsub.f32 %v8606_v8, %v4113_v26 }
 0x9a5   : > { %v4097_v63 = vmul.f32 0.6931472, %v5127_v10 }
 0x9a6   : > { %4145 = vst [vmem:[%s8690_s22 + $0x58] sm:$0xff] %v4129_v6 }
 0x9a7   : > { %v4115_v29 = vadd.f32 %v4097_v63, %v8681_v5 }
 0x9a9   : > { %v4131_v30 = vsub.f32 %v8622_v21, %v4115_v29 }
 0x9ab   : > { %4147 = vst [vmem:[%s8690_s22 + $0x68] sm:$0xff] %v4131_v30 }
 0x9ee   : > { %v4067_v54 = vpop.xlane.xlu1 %4066 }
 0x9ef   : > { %5128 = vlog2.f32 %v4067_v54 }
 0x9f5   : > { %v5129_v13 = vpop.eup %5128 }
 0x9f6   : > { %v4099_v60 = vmul.f32 0.6931472, %v5129_v13  ;;  %v4069_v49 = vpop.xlane.xlu2 %4068 }
 0x9f7   : > { %5130 = vlog2.f32 %v4069_v49 }
 0x9f8   : > { %v4116_v39 = vadd.f32 %v4099_v60, %v8698_v56 }
 0x9fa   : > { %v4132_v14 = vsub.f32 %v8641_v55, %v4116_v39 }
 0x9fc   : > { %4148 = vst [vmem:[%s8690_s22 + $0x70] sm:$0xff] %v4132_v14 }
 0x9fd   : > { %v5131_v8 = vpop.eup %5130 }
 0x9fe   : > { %v4101_v58 = vmul.f32 0.6931472, %v5131_v8 }
 0xa00   : > { %v4117_v0 = vadd.f32 %v4101_v58, %v8704_v43 }
 0xa02   : > { %v4133_v5 = vsub.f32 %v8658_v52, %v4117_v0 }
 0xa04   : > { %4149 = vst [vmem:[%s8690_s22 + $0x78] sm:$0xff] %v4133_v5 }
 0xa05 PF: > { %s19_s27 = sadd.s32 1, %s5142_s27  }
 0xa06   : > { %p16_p4 = scmp.ge.s32.totalorder %s19_s27, 4  }
 0xa08   :  { %18 = sbr.rel (!%p16_p4) target bundleno = 1 (0x1), region = 100 }

</bundles_post_ra>
